<compile_context>
chip_gen: v7x
topology: tpu7x:2x2x1
jax: 0.10.0
libtpu: 0.0.40
codegen_flags: <defaults>
</compile_context>

<pallas_src>
import functools

import jax
import jax.numpy as jnp
from jax import lax
from jax.experimental import pallas as pl
from jax.experimental.pallas import tpu as pltpu

NEG_SLOPE = 0.01          # nn.LeakyReLU default negative_slope

KH1, KW1 = 4, 4           # conv1 kernel
KH2, KW2 = 8, 4           # conv2 kernel
C1, C2 = 64, 128          # conv channel counts
N_FC1 = 128               # fc1 output width


def _leaky(v):
    return jnp.where(v > 0, v, NEG_SLOPE * v)


# -----------------------------------------------------------------------------
# Fused kernel.  One grid step processes a tile of TB batch rows; every
# intermediate activation stays in VMEM.
#
#   x_ref   (TB, H, W)            raw input rows (f32)
#   w1f_ref (KH1, W, W1*C1)       banded conv1 weights: [pi, j, s*C1+c] =
#                                 w_conv1[c, 0, pi, j-s]  (0 outside the band)
#   b1_ref  (1, W1*C1)            conv1 bias tiled over the W1 columns
#   w2f_ref (KH2, KW2*C1, C2)     conv2 weights, kw taps folded into K:
#                                 [ki, kj*C1+c, o] = w_conv2[o, c, ki, kj]
#   b2_ref  (1, C2)
#   wf_ref  (H2, W2*C2, N_FC1)    fc1 weights permuted from the NCHW flatten
#                                 order (c, h, w) to the kernel's (h, (w, c))
#   bf1_ref (1, N_FC1); wr2_ref (1, N_FC1); bf2_ref (1, 1)
#   o_ref   (TB, 1)
#   a1_ref  (TB, H1, W1*C1)       VMEM scratch: conv1 activations
#   a2_ref  (TB, H2, W2*C2)       VMEM scratch: conv2 activations
# -----------------------------------------------------------------------------
def _fused_forward_kernel(x_ref, w1f_ref, b1_ref, w2f_ref, b2_ref,
                          wf_ref, bf1_ref, wr2_ref, bf2_ref,
                          o_ref, a1_ref, a2_ref,
                          *, H1, W1, H2, W2, matmul_dtype):
    TB = x_ref.shape[0]
    md = matmul_dtype

    # ---- conv1: KH1 banded MXU matmuls (the kw taps live inside the banded
    #      weight), bias + LeakyReLU.  Output layout: lanes ordered (s, c). ---
    acc1 = jnp.zeros((TB * H1, W1 * C1), jnp.float32)
    for pi in range(KH1):
        lhs = x_ref[:, pi:pi + H1, :].reshape(TB * H1, -1).astype(md)
        acc1 = acc1 + jnp.dot(lhs, w1f_ref[pi],
                              preferred_element_type=jnp.float32)
    a1 = _leaky(acc1 + b1_ref[...])
    a1_ref[...] = a1.reshape(TB, H1, W1 * C1).astype(a1_ref.dtype)

    # ---- conv2: per output column, the 4 kw taps are folded into K = 256,
    #      so KH2 dots of (TB*H2, 256) x (256, 128) instead of 32 K=64 dots. --
    for w in range(W2):
        acc2 = jnp.zeros((TB * H2, C2), jnp.float32)
        for ki in range(KH2):
            lhs = a1_ref[:, ki:ki + H2, w * C1:(w + KW2) * C1]
            lhs = lhs.reshape(TB * H2, KW2 * C1)
            acc2 = acc2 + jnp.dot(lhs, w2f_ref[ki],
                                  preferred_element_type=jnp.float32)
        a2 = _leaky(acc2 + b2_ref[...])                       # (TB*H2, C2)
        a2_ref[:, :, w * C2:(w + 1) * C2] = (
            a2.reshape(TB, H2, C2).astype(a2_ref.dtype))

    # ---- fc1: contract straight out of the conv2 scratch, one K=256 dot per
    #      row position (weights already permuted to match), then LeakyReLU. --
    h = jnp.zeros((TB, N_FC1), jnp.float32)
    for r in range(H2):
        h = h + jnp.dot(a2_ref[:, r, :], wf_ref[r],
                        preferred_element_type=jnp.float32)
    h = _leaky(h + bf1_ref[...])                              # (TB, 128)

    # ---- fc2 (N = 1): VPU multiply + lane reduction, no degenerate MXU pass.
    y = jnp.sum(h * wr2_ref[...], axis=1, keepdims=True) + bf2_ref[...]
    o_ref[...] = y.astype(o_ref.dtype)


# -----------------------------------------------------------------------------
# Wrapper
# -----------------------------------------------------------------------------
def _pick_batch_tile(batch):
    # 8-32 rows amortize the ~0.35us/step overhead and give the MXU a useful M;
    # B//2 cap keeps >= 2 grid steps so both v7x TensorCores get work.
    return min(32, max(1, batch // 2))


def _prepare_weights(params, H, W, matmul_dtype):
    """One-time weight re-layouts (tiny; hoist out of the hot loop if desired)."""
    H1, W1 = H - KH1 + 1, W - KW1 + 1
    H2, W2 = H1 - KH2 + 1, W1 - KW2 + 1
    md = matmul_dtype

    # conv1 -> banded weights: w1f[pi, j, s*C1 + c] = w_conv1[c, 0, pi, j - s]
    w1_t = jnp.transpose(params["w_conv1"].reshape(C1, KH1, KW1), (1, 2, 0))
    j = jnp.arange(W)[:, None]
    s = jnp.arange(W1)[None, :]
    pj = j - s                                                # (W, W1)
    valid = ((pj >= 0) & (pj < KW1)).astype(w1_t.dtype)
    w1f = w1_t[:, jnp.clip(pj, 0, KW1 - 1), :] * valid[None, :, :, None]
    w1f = w1f.reshape(KH1, W, W1 * C1).astype(md)
    b1t = jnp.tile(params["b_conv1"].reshape(1, 1, C1),
                   (1, W1, 1)).reshape(1, W1 * C1)

    # conv2 weights with the kw taps folded into K: [ki, kj*C1+c, o]
    w2f = jnp.transpose(params["w_conv2"], (2, 3, 1, 0))
    w2f = w2f.reshape(KH2, KW2 * C1, C2).astype(md)
    b2 = params["b_conv2"].reshape(1, C2)

    # fc1 weights: permute rows from PyTorch's NCHW flatten order (c, h, w)
    # to the kernel's per-row-position (h, (w, c)) accumulation order.
    wf = params["w_fc1"].reshape(C2, H2, W2, N_FC1)
    wf = jnp.transpose(wf, (1, 2, 0, 3)).reshape(H2, W2 * C2, N_FC1).astype(md)
    bf1 = params["b_fc1"].reshape(1, N_FC1)
    wr2 = params["w_fc2"].reshape(1, N_FC1)
    bf2 = params["b_fc2"].reshape(1, 1)
    return (w1f, b1t, w2f, b2, wf, bf1, wr2, bf2)


def forward(params, x, *, matmul_dtype=jnp.float32, batch_tile=None):
    """x: (B, 1, seq_len, in_dim) NCHW -> (B, 1).

    matmul_dtype=jnp.bfloat16 halves weight DMA and doubles the MXU rate on
    v6e/v7x (accumulation stays f32); the f32 default keeps the bit-faithful
    path used by the correctness check below (recommended on v5e).
    """
    B = x.shape[0]
    xs = x[:, 0]                                  # (B, H, W)
    H, W = xs.shape[1], xs.shape[2]
    H1, W1 = H - KH1 + 1, W - KW1 + 1
    H2, W2 = H1 - KH2 + 1, W1 - KW2 + 1

    weights = _prepare_weights(params, H, W, matmul_dtype)

    TB = batch_tile or _pick_batch_tile(B)
    n_tiles = pl.cdiv(B, TB)
    B_pad = n_tiles * TB
    if B_pad != B:
        xs = jnp.pad(xs, ((0, B_pad - B), (0, 0), (0, 0)))

    out = pl.pallas_call(
        functools.partial(_fused_forward_kernel, H1=H1, W1=W1, H2=H2, W2=W2,
                          matmul_dtype=matmul_dtype),
        out_shape=jax.ShapeDtypeStruct((n_tiles, TB, 1), jnp.float32),
        grid=(n_tiles,),
        in_specs=[
            pl.BlockSpec((TB, H, W), lambda i: (i, 0, 0)),
            pl.BlockSpec((KH1, W, W1 * C1), lambda i: (0, 0, 0)),
            pl.BlockSpec((1, W1 * C1), lambda i: (0, 0)),
            pl.BlockSpec((KH2, KW2 * C1, C2), lambda i: (0, 0, 0)),
            pl.BlockSpec((1, C2), lambda i: (0, 0)),
            pl.BlockSpec((H2, W2 * C2, N_FC1), lambda i: (0, 0, 0)),
            pl.BlockSpec((1, N_FC1), lambda i: (0, 0)),
            pl.BlockSpec((1, N_FC1), lambda i: (0, 0)),
            pl.BlockSpec((1, 1), lambda i: (0, 0)),
        ],
        out_specs=pl.BlockSpec((None, TB, 1), lambda i: (i, 0, 0)),
        scratch_shapes=[
            pltpu.VMEM((TB, H1, W1 * C1), matmul_dtype),   # conv1 activations
            pltpu.VMEM((TB, H2, W2 * C2), matmul_dtype),   # conv2 activations
        ],
        compiler_params=pltpu.CompilerParams(
            dimension_semantics=("parallel",)),
    )(xs, *weights)

    return out.reshape(B_pad, 1)[:B]


# -----------------------------------------------------------------------------
# Pure-JAX reference (matches PyTorch Conv2d/Linear semantics) + params
# -----------------------------------------------------------------------------
def reference_forward(params, x):
    dn = ("NCHW", "OIHW", "NCHW")
    h = lax.conv_general_dilated(x, params["w_conv1"], (1, 1), "VALID",
                                 dimension_numbers=dn)
    h = _leaky(h + params["b_conv1"].reshape(1, -1, 1, 1))
    h = lax.conv_general_dilated(h, params["w_conv2"], (1, 1), "VALID",
                                 dimension_numbers=dn)
    h = _leaky(h + params["b_conv2"].reshape(1, -1, 1, 1))
    z = h.reshape(x.shape[0], -1)                       # NCHW flatten
    z = _leaky(z @ params["w_fc1"] + params["b_fc1"])
    return z @ params["w_fc2"] + params["b_fc2"]


def init_params(key, in_dim, seq_len):
    ks = jax.random.split(key, 8)

    def init_w(k, shape, fan_in):
        return jax.random.normal(k, shape, jnp.float32) / jnp.sqrt(fan_in)

    h1, w1 = seq_len - 3, in_dim - 3          # after 4x4 conv
    h2, w2 = h1 - 7, w1 - 3                   # after 8x4 conv
    conv_out_dim = 128 * h2 * w2              # == probe_conv_out_dim()

    params = {
        "w_conv1": init_w(ks[0], (C1, 1, KH1, KW1), 1 * KH1 * KW1),
        "b_conv1": init_w(ks[1], (C1,), 16.0),
        "w_conv2": init_w(ks[2], (C2, C1, KH2, KW2), C1 * KH2 * KW2),
        "b_conv2": init_w(ks[3], (C2,), 2048.0),
        "w_fc1": init_w(ks[4], (conv_out_dim, N_FC1), conv_out_dim),
        "b_fc1": init_w(ks[5], (N_FC1,), float(conv_out_dim)),
        "w_fc2": init_w(ks[6], (N_FC1, 1), 128.0),
        "b_fc2": init_w(ks[7], (1,), 128.0),
    }
    return params, conv_out_dim


if __name__ == "__main__":
    B, in_dim, seq_len = 2, 8, 16
    key = jax.random.PRNGKey(0)
    k_param, k_x = jax.random.split(key)

    params, conv_out_dim = init_params(k_param, in_dim, seq_len)
    x = jax.random.normal(k_x, (B, 1, seq_len, in_dim), jnp.float32)

    out = jax.jit(forward)(params, x)
    out = jax.block_until_ready(out)
    assert out.shape == (B, 1), out.shape

    ref = reference_forward(params, x)
    max_err = float(jnp.max(jnp.abs(out - ref)))
    assert bool(jnp.allclose(out, ref, rtol=2e-4, atol=2e-4)), max_err

    print("KERNEL_OK")
</pallas_src>

<mosaic_0001>
module attributes {stable_mosaic.version = 11 : i64} {
  func.func @_fused_forward_kernel(%arg0: i32, %arg1: memref<1x16x8xf32, #tpu.memory_space<vmem>>, %arg2: memref<4x8x320xf32, #tpu.memory_space<vmem>>, %arg3: memref<1x320xf32, #tpu.memory_space<vmem>>, %arg4: memref<8x256x128xf32, #tpu.memory_space<vmem>>, %arg5: memref<1x128xf32, #tpu.memory_space<vmem>>, %arg6: memref<6x256x128xf32, #tpu.memory_space<vmem>>, %arg7: memref<1x128xf32, #tpu.memory_space<vmem>>, %arg8: memref<1x128xf32, #tpu.memory_space<vmem>>, %arg9: memref<1x1xf32, #tpu.memory_space<vmem>>, %arg10: memref<1x1x1xf32, #tpu.memory_space<vmem>>, %arg11: memref<1x13x320xf32, #tpu.memory_space<vmem>>, %arg12: memref<1x6x256xf32, #tpu.memory_space<vmem>>) attributes {dimension_semantics = [#tpu.dimension_semantics<parallel>], iteration_bounds = array<i64: 2>, scalar_prefetch = 0 : i64, scratch_operands = 2 : i64, tpu.core_type = #tpu.core_type<tc>, window_params = [{transform_indices = @transform_0, window_bounds = array<i64: 1, 16, 8>}, {pipeline_mode = #tpu.pipeline_mode<synchronous>, transform_indices = @transform_1, window_bounds = array<i64: 4, 8, 320>}, {pipeline_mode = #tpu.pipeline_mode<synchronous>, transform_indices = @transform_2, window_bounds = array<i64: 1, 320>}, {pipeline_mode = #tpu.pipeline_mode<synchronous>, transform_indices = @transform_3, window_bounds = array<i64: 8, 256, 128>}, {pipeline_mode = #tpu.pipeline_mode<synchronous>, transform_indices = @transform_4, window_bounds = array<i64: 1, 128>}, {pipeline_mode = #tpu.pipeline_mode<synchronous>, transform_indices = @transform_5, window_bounds = array<i64: 6, 256, 128>}, {pipeline_mode = #tpu.pipeline_mode<synchronous>, transform_indices = @transform_6, window_bounds = array<i64: 1, 128>}, {pipeline_mode = #tpu.pipeline_mode<synchronous>, transform_indices = @transform_7, window_bounds = array<i64: 1, 128>}, {pipeline_mode = #tpu.pipeline_mode<synchronous>, transform_indices = @transform_8, window_bounds = array<i64: 1, 1>}, {transform_indices = @transform_9, window_bounds = array<i64: 1, 1, 1>}]} {
    %cst = arith.constant 0.000000e+00 : f32
    %0 = vector.broadcast %cst : f32 to vector<13x320xf32>
    %c0 = arith.constant 0 : index
    %c0_0 = arith.constant 0 : index
    %c0_1 = arith.constant 0 : index
    %1 = vector.load %arg1[%c0, %c0_0, %c0_1] : memref<1x16x8xf32, #tpu.memory_space<vmem>>, vector<1x13x8xf32>
    %2 = vector.shape_cast %1 : vector<1x13x8xf32> to vector<13x8xf32>
    %c0_2 = arith.constant 0 : index
    %c0_3 = arith.constant 0 : index
    %c0_4 = arith.constant 0 : index
    %3 = vector.load %arg2[%c0_2, %c0_3, %c0_4] : memref<4x8x320xf32, #tpu.memory_space<vmem>>, vector<1x8x320xf32>
    %4 = vector.shape_cast %3 : vector<1x8x320xf32> to vector<8x320xf32>
    %cst_5 = arith.constant dense<0.000000e+00> : vector<13x320xf32>
    %5 = tpu.matmul %2, %4, %cst_5 {dimension_numbers = #tpu.dot_dimension_numbers<[1], [0], [0], [1], [0, 0, 1, 1], [], []>} : vector<13x8xf32>, vector<8x320xf32>, vector<13x320xf32> -> vector<13x320xf32>
    %6 = arith.addf %0, %5 : vector<13x320xf32>
    %c0_6 = arith.constant 0 : index
    %c1 = arith.constant 1 : index
    %c0_7 = arith.constant 0 : index
    %7 = vector.load %arg1[%c0_6, %c1, %c0_7] : memref<1x16x8xf32, #tpu.memory_space<vmem>>, vector<1x13x8xf32>
    %8 = vector.shape_cast %7 : vector<1x13x8xf32> to vector<13x8xf32>
    %c1_8 = arith.constant 1 : index
    %c0_9 = arith.constant 0 : index
    %c0_10 = arith.constant 0 : index
    %9 = vector.load %arg2[%c1_8, %c0_9, %c0_10] : memref<4x8x320xf32, #tpu.memory_space<vmem>>, vector<1x8x320xf32>
    %10 = vector.shape_cast %9 : vector<1x8x320xf32> to vector<8x320xf32>
    %cst_11 = arith.constant dense<0.000000e+00> : vector<13x320xf32>
    %11 = tpu.matmul %8, %10, %cst_11 {dimension_numbers = #tpu.dot_dimension_numbers<[1], [0], [0], [1], [0, 0, 1, 1], [], []>} : vector<13x8xf32>, vector<8x320xf32>, vector<13x320xf32> -> vector<13x320xf32>
    %12 = arith.addf %6, %11 : vector<13x320xf32>
    %c0_12 = arith.constant 0 : index
    %c2 = arith.constant 2 : index
    %c0_13 = arith.constant 0 : index
    %13 = vector.load %arg1[%c0_12, %c2, %c0_13] : memref<1x16x8xf32, #tpu.memory_space<vmem>>, vector<1x13x8xf32>
    %14 = vector.shape_cast %13 : vector<1x13x8xf32> to vector<13x8xf32>
    %c2_14 = arith.constant 2 : index
    %c0_15 = arith.constant 0 : index
    %c0_16 = arith.constant 0 : index
    %15 = vector.load %arg2[%c2_14, %c0_15, %c0_16] : memref<4x8x320xf32, #tpu.memory_space<vmem>>, vector<1x8x320xf32>
    %16 = vector.shape_cast %15 : vector<1x8x320xf32> to vector<8x320xf32>
    %cst_17 = arith.constant dense<0.000000e+00> : vector<13x320xf32>
    %17 = tpu.matmul %14, %16, %cst_17 {dimension_numbers = #tpu.dot_dimension_numbers<[1], [0], [0], [1], [0, 0, 1, 1], [], []>} : vector<13x8xf32>, vector<8x320xf32>, vector<13x320xf32> -> vector<13x320xf32>
    %18 = arith.addf %12, %17 : vector<13x320xf32>
    %c0_18 = arith.constant 0 : index
    %c3 = arith.constant 3 : index
    %c0_19 = arith.constant 0 : index
    %19 = vector.load %arg1[%c0_18, %c3, %c0_19] : memref<1x16x8xf32, #tpu.memory_space<vmem>>, vector<1x13x8xf32>
    %20 = vector.shape_cast %19 : vector<1x13x8xf32> to vector<13x8xf32>
    %c3_20 = arith.constant 3 : index
    %c0_21 = arith.constant 0 : index
    %c0_22 = arith.constant 0 : index
    %21 = vector.load %arg2[%c3_20, %c0_21, %c0_22] : memref<4x8x320xf32, #tpu.memory_space<vmem>>, vector<1x8x320xf32>
    %22 = vector.shape_cast %21 : vector<1x8x320xf32> to vector<8x320xf32>
    %cst_23 = arith.constant dense<0.000000e+00> : vector<13x320xf32>
    %23 = tpu.matmul %20, %22, %cst_23 {dimension_numbers = #tpu.dot_dimension_numbers<[1], [0], [0], [1], [0, 0, 1, 1], [], []>} : vector<13x8xf32>, vector<8x320xf32>, vector<13x320xf32> -> vector<13x320xf32>
    %24 = arith.addf %18, %23 : vector<13x320xf32>
    %c0_24 = arith.constant 0 : index
    %c0_25 = arith.constant 0 : index
    %25 = vector.load %arg3[%c0_24, %c0_25] : memref<1x320xf32, #tpu.memory_space<vmem>>, vector<1x320xf32>
    %26 = vector.broadcast %25 : vector<1x320xf32> to vector<13x320xf32>
    %27 = arith.addf %24, %26 : vector<13x320xf32>
    %cst_26 = arith.constant 0.000000e+00 : f32
    %28 = vector.broadcast %cst_26 : f32 to vector<13x320xf32>
    %29 = arith.cmpf ogt, %27, %28 : vector<13x320xf32>
    %cst_27 = arith.constant 0.00999999977 : f32
    %30 = vector.broadcast %cst_27 : f32 to vector<13x320xf32>
    %31 = arith.mulf %30, %27 : vector<13x320xf32>
    %32 = arith.select %29, %27, %31 : vector<13x320xi1>, vector<13x320xf32>
    %33 = vector.shape_cast %32 : vector<13x320xf32> to vector<1x13x320xf32>
    %c0_28 = arith.constant 0 : index
    %c0_29 = arith.constant 0 : index
    %c0_30 = arith.constant 0 : index
    %34 = vector.load %arg11[%c0_28, %c0_29, %c0_30] : memref<1x13x320xf32, #tpu.memory_space<vmem>>, vector<1x13x320xf32>
    tpu.vector_store %arg11[%c0_28, %c0_29, %c0_30], %33 {strides = array<i32>} : memref<1x13x320xf32, #tpu.memory_space<vmem>>, vector<1x13x320xf32>,
    %cst_31 = arith.constant 0.000000e+00 : f32
    %35 = vector.broadcast %cst_31 : f32 to vector<6x128xf32>
    %c0_32 = arith.constant 0 : index
    %c0_33 = arith.constant 0 : index
    %c0_34 = arith.constant 0 : index
    %36 = vector.load %arg11[%c0_32, %c0_33, %c0_34] : memref<1x13x320xf32, #tpu.memory_space<vmem>>, vector<1x6x256xf32>
    %37 = vector.shape_cast %36 : vector<1x6x256xf32> to vector<6x256xf32>
    %c0_35 = arith.constant 0 : index
    %c0_36 = arith.constant 0 : index
    %c0_37 = arith.constant 0 : index
    %38 = vector.load %arg4[%c0_35, %c0_36, %c0_37] : memref<8x256x128xf32, #tpu.memory_space<vmem>>, vector<1x256x128xf32>
    %39 = vector.shape_cast %38 : vector<1x256x128xf32> to vector<256x128xf32>
    %cst_38 = arith.constant dense<0.000000e+00> : vector<6x128xf32>
    %40 = tpu.matmul %37, %39, %cst_38 {dimension_numbers = #tpu.dot_dimension_numbers<[1], [0], [0], [1], [0, 0, 1, 1], [], []>} : vector<6x256xf32>, vector<256x128xf32>, vector<6x128xf32> -> vector<6x128xf32>
    %41 = arith.addf %35, %40 : vector<6x128xf32>
    %c0_39 = arith.constant 0 : index
    %c1_40 = arith.constant 1 : index
    %c0_41 = arith.constant 0 : index
    %42 = vector.load %arg11[%c0_39, %c1_40, %c0_41] : memref<1x13x320xf32, #tpu.memory_space<vmem>>, vector<1x6x256xf32>
    %43 = vector.shape_cast %42 : vector<1x6x256xf32> to vector<6x256xf32>
    %c1_42 = arith.constant 1 : index
    %c0_43 = arith.constant 0 : index
    %c0_44 = arith.constant 0 : index
    %44 = vector.load %arg4[%c1_42, %c0_43, %c0_44] : memref<8x256x128xf32, #tpu.memory_space<vmem>>, vector<1x256x128xf32>
    %45 = vector.shape_cast %44 : vector<1x256x128xf32> to vector<256x128xf32>
    %cst_45 = arith.constant dense<0.000000e+00> : vector<6x128xf32>
    %46 = tpu.matmul %43, %45, %cst_45 {dimension_numbers = #tpu.dot_dimension_numbers<[1], [0], [0], [1], [0, 0, 1, 1], [], []>} : vector<6x256xf32>, vector<256x128xf32>, vector<6x128xf32> -> vector<6x128xf32>
    %47 = arith.addf %41, %46 : vector<6x128xf32>
    %c0_46 = arith.constant 0 : index
    %c2_47 = arith.constant 2 : index
    %c0_48 = arith.constant 0 : index
    %48 = vector.load %arg11[%c0_46, %c2_47, %c0_48] : memref<1x13x320xf32, #tpu.memory_space<vmem>>, vector<1x6x256xf32>
    %49 = vector.shape_cast %48 : vector<1x6x256xf32> to vector<6x256xf32>
    %c2_49 = arith.constant 2 : index
    %c0_50 = arith.constant 0 : index
    %c0_51 = arith.constant 0 : index
    %50 = vector.load %arg4[%c2_49, %c0_50, %c0_51] : memref<8x256x128xf32, #tpu.memory_space<vmem>>, vector<1x256x128xf32>
    %51 = vector.shape_cast %50 : vector<1x256x128xf32> to vector<256x128xf32>
    %cst_52 = arith.constant dense<0.000000e+00> : vector<6x128xf32>
    %52 = tpu.matmul %49, %51, %cst_52 {dimension_numbers = #tpu.dot_dimension_numbers<[1], [0], [0], [1], [0, 0, 1, 1], [], []>} : vector<6x256xf32>, vector<256x128xf32>, vector<6x128xf32> -> vector<6x128xf32>
    %53 = arith.addf %47, %52 : vector<6x128xf32>
    %c0_53 = arith.constant 0 : index
    %c3_54 = arith.constant 3 : index
    %c0_55 = arith.constant 0 : index
    %54 = vector.load %arg11[%c0_53, %c3_54, %c0_55] : memref<1x13x320xf32, #tpu.memory_space<vmem>>, vector<1x6x256xf32>
    %55 = vector.shape_cast %54 : vector<1x6x256xf32> to vector<6x256xf32>
    %c3_56 = arith.constant 3 : index
    %c0_57 = arith.constant 0 : index
    %c0_58 = arith.constant 0 : index
    %56 = vector.load %arg4[%c3_56, %c0_57, %c0_58] : memref<8x256x128xf32, #tpu.memory_space<vmem>>, vector<1x256x128xf32>
    %57 = vector.shape_cast %56 : vector<1x256x128xf32> to vector<256x128xf32>
    %cst_59 = arith.constant dense<0.000000e+00> : vector<6x128xf32>
    %58 = tpu.matmul %55, %57, %cst_59 {dimension_numbers = #tpu.dot_dimension_numbers<[1], [0], [0], [1], [0, 0, 1, 1], [], []>} : vector<6x256xf32>, vector<256x128xf32>, vector<6x128xf32> -> vector<6x128xf32>
    %59 = arith.addf %53, %58 : vector<6x128xf32>
    %c0_60 = arith.constant 0 : index
    %c4 = arith.constant 4 : index
    %c0_61 = arith.constant 0 : index
    %60 = vector.load %arg11[%c0_60, %c4, %c0_61] : memref<1x13x320xf32, #tpu.memory_space<vmem>>, vector<1x6x256xf32>
    %61 = vector.shape_cast %60 : vector<1x6x256xf32> to vector<6x256xf32>
    %c4_62 = arith.constant 4 : index
    %c0_63 = arith.constant 0 : index
    %c0_64 = arith.constant 0 : index
    %62 = vector.load %arg4[%c4_62, %c0_63, %c0_64] : memref<8x256x128xf32, #tpu.memory_space<vmem>>, vector<1x256x128xf32>
    %63 = vector.shape_cast %62 : vector<1x256x128xf32> to vector<256x128xf32>
    %cst_65 = arith.constant dense<0.000000e+00> : vector<6x128xf32>
    %64 = tpu.matmul %61, %63, %cst_65 {dimension_numbers = #tpu.dot_dimension_numbers<[1], [0], [0], [1], [0, 0, 1, 1], [], []>} : vector<6x256xf32>, vector<256x128xf32>, vector<6x128xf32> -> vector<6x128xf32>
    %65 = arith.addf %59, %64 : vector<6x128xf32>
    %c0_66 = arith.constant 0 : index
    %c5 = arith.constant 5 : index
    %c0_67 = arith.constant 0 : index
    %66 = vector.load %arg11[%c0_66, %c5, %c0_67] : memref<1x13x320xf32, #tpu.memory_space<vmem>>, vector<1x6x256xf32>
    %67 = vector.shape_cast %66 : vector<1x6x256xf32> to vector<6x256xf32>
    %c5_68 = arith.constant 5 : index
    %c0_69 = arith.constant 0 : index
    %c0_70 = arith.constant 0 : index
    %68 = vector.load %arg4[%c5_68, %c0_69, %c0_70] : memref<8x256x128xf32, #tpu.memory_space<vmem>>, vector<1x256x128xf32>
    %69 = vector.shape_cast %68 : vector<1x256x128xf32> to vector<256x128xf32>
    %cst_71 = arith.constant dense<0.000000e+00> : vector<6x128xf32>
    %70 = tpu.matmul %67, %69, %cst_71 {dimension_numbers = #tpu.dot_dimension_numbers<[1], [0], [0], [1], [0, 0, 1, 1], [], []>} : vector<6x256xf32>, vector<256x128xf32>, vector<6x128xf32> -> vector<6x128xf32>
    %71 = arith.addf %65, %70 : vector<6x128xf32>
    %c0_72 = arith.constant 0 : index
    %c6 = arith.constant 6 : index
    %c0_73 = arith.constant 0 : index
    %72 = vector.load %arg11[%c0_72, %c6, %c0_73] : memref<1x13x320xf32, #tpu.memory_space<vmem>>, vector<1x6x256xf32>
    %73 = vector.shape_cast %72 : vector<1x6x256xf32> to vector<6x256xf32>
    %c6_74 = arith.constant 6 : index
    %c0_75 = arith.constant 0 : index
    %c0_76 = arith.constant 0 : index
    %74 = vector.load %arg4[%c6_74, %c0_75, %c0_76] : memref<8x256x128xf32, #tpu.memory_space<vmem>>, vector<1x256x128xf32>
    %75 = vector.shape_cast %74 : vector<1x256x128xf32> to vector<256x128xf32>
    %cst_77 = arith.constant dense<0.000000e+00> : vector<6x128xf32>
    %76 = tpu.matmul %73, %75, %cst_77 {dimension_numbers = #tpu.dot_dimension_numbers<[1], [0], [0], [1], [0, 0, 1, 1], [], []>} : vector<6x256xf32>, vector<256x128xf32>, vector<6x128xf32> -> vector<6x128xf32>
    %77 = arith.addf %71, %76 : vector<6x128xf32>
    %c0_78 = arith.constant 0 : index
    %c7 = arith.constant 7 : index
    %c0_79 = arith.constant 0 : index
    %78 = vector.load %arg11[%c0_78, %c7, %c0_79] : memref<1x13x320xf32, #tpu.memory_space<vmem>>, vector<1x6x256xf32>
    %79 = vector.shape_cast %78 : vector<1x6x256xf32> to vector<6x256xf32>
    %c7_80 = arith.constant 7 : index
    %c0_81 = arith.constant 0 : index
    %c0_82 = arith.constant 0 : index
    %80 = vector.load %arg4[%c7_80, %c0_81, %c0_82] : memref<8x256x128xf32, #tpu.memory_space<vmem>>, vector<1x256x128xf32>
    %81 = vector.shape_cast %80 : vector<1x256x128xf32> to vector<256x128xf32>
    %cst_83 = arith.constant dense<0.000000e+00> : vector<6x128xf32>
    %82 = tpu.matmul %79, %81, %cst_83 {dimension_numbers = #tpu.dot_dimension_numbers<[1], [0], [0], [1], [0, 0, 1, 1], [], []>} : vector<6x256xf32>, vector<256x128xf32>, vector<6x128xf32> -> vector<6x128xf32>
    %83 = arith.addf %77, %82 : vector<6x128xf32>
    %c0_84 = arith.constant 0 : index
    %c0_85 = arith.constant 0 : index
    %84 = vector.load %arg5[%c0_84, %c0_85] : memref<1x128xf32, #tpu.memory_space<vmem>>, vector<1x128xf32>
    %85 = vector.broadcast %84 : vector<1x128xf32> to vector<6x128xf32>
    %86 = arith.addf %83, %85 : vector<6x128xf32>
    %cst_86 = arith.constant 0.000000e+00 : f32
    %87 = vector.broadcast %cst_86 : f32 to vector<6x128xf32>
    %88 = arith.cmpf ogt, %86, %87 : vector<6x128xf32>
    %cst_87 = arith.constant 0.00999999977 : f32
    %89 = vector.broadcast %cst_87 : f32 to vector<6x128xf32>
    %90 = arith.mulf %89, %86 : vector<6x128xf32>
    %91 = arith.select %88, %86, %90 : vector<6x128xi1>, vector<6x128xf32>
    %92 = vector.shape_cast %91 : vector<6x128xf32> to vector<1x6x128xf32>
    %c0_88 = arith.constant 0 : index
    %c0_89 = arith.constant 0 : index
    %c0_90 = arith.constant 0 : index
    %93 = vector.load %arg12[%c0_88, %c0_89, %c0_90] : memref<1x6x256xf32, #tpu.memory_space<vmem>>, vector<1x6x128xf32>
    tpu.vector_store %arg12[%c0_88, %c0_89, %c0_90], %92 {strides = array<i32>} : memref<1x6x256xf32, #tpu.memory_space<vmem>>, vector<1x6x128xf32>,
    %cst_91 = arith.constant 0.000000e+00 : f32
    %94 = vector.broadcast %cst_91 : f32 to vector<6x128xf32>
    %c0_92 = arith.constant 0 : index
    %c0_93 = arith.constant 0 : index
    %c64 = arith.constant 64 : index
    %95 = vector.load %arg11[%c0_92, %c0_93, %c64] : memref<1x13x320xf32, #tpu.memory_space<vmem>>, vector<1x6x256xf32>
    %96 = vector.shape_cast %95 : vector<1x6x256xf32> to vector<6x256xf32>
    %c0_94 = arith.constant 0 : index
    %c0_95 = arith.constant 0 : index
    %c0_96 = arith.constant 0 : index
    %97 = vector.load %arg4[%c0_94, %c0_95, %c0_96] : memref<8x256x128xf32, #tpu.memory_space<vmem>>, vector<1x256x128xf32>
    %98 = vector.shape_cast %97 : vector<1x256x128xf32> to vector<256x128xf32>
    %cst_97 = arith.constant dense<0.000000e+00> : vector<6x128xf32>
    %99 = tpu.matmul %96, %98, %cst_97 {dimension_numbers = #tpu.dot_dimension_numbers<[1], [0], [0], [1], [0, 0, 1, 1], [], []>} : vector<6x256xf32>, vector<256x128xf32>, vector<6x128xf32> -> vector<6x128xf32>
    %100 = arith.addf %94, %99 : vector<6x128xf32>
    %c0_98 = arith.constant 0 : index
    %c1_99 = arith.constant 1 : index
    %c64_100 = arith.constant 64 : index
    %101 = vector.load %arg11[%c0_98, %c1_99, %c64_100] : memref<1x13x320xf32, #tpu.memory_space<vmem>>, vector<1x6x256xf32>
    %102 = vector.shape_cast %101 : vector<1x6x256xf32> to vector<6x256xf32>
    %c1_101 = arith.constant 1 : index
    %c0_102 = arith.constant 0 : index
    %c0_103 = arith.constant 0 : index
    %103 = vector.load %arg4[%c1_101, %c0_102, %c0_103] : memref<8x256x128xf32, #tpu.memory_space<vmem>>, vector<1x256x128xf32>
    %104 = vector.shape_cast %103 : vector<1x256x128xf32> to vector<256x128xf32>
    %cst_104 = arith.constant dense<0.000000e+00> : vector<6x128xf32>
    %105 = tpu.matmul %102, %104, %cst_104 {dimension_numbers = #tpu.dot_dimension_numbers<[1], [0], [0], [1], [0, 0, 1, 1], [], []>} : vector<6x256xf32>, vector<256x128xf32>, vector<6x128xf32> -> vector<6x128xf32>
    %106 = arith.addf %100, %105 : vector<6x128xf32>
    %c0_105 = arith.constant 0 : index
    %c2_106 = arith.constant 2 : index
    %c64_107 = arith.constant 64 : index
    %107 = vector.load %arg11[%c0_105, %c2_106, %c64_107] : memref<1x13x320xf32, #tpu.memory_space<vmem>>, vector<1x6x256xf32>
    %108 = vector.shape_cast %107 : vector<1x6x256xf32> to vector<6x256xf32>
    %c2_108 = arith.constant 2 : index
    %c0_109 = arith.constant 0 : index
    %c0_110 = arith.constant 0 : index
    %109 = vector.load %arg4[%c2_108, %c0_109, %c0_110] : memref<8x256x128xf32, #tpu.memory_space<vmem>>, vector<1x256x128xf32>
    %110 = vector.shape_cast %109 : vector<1x256x128xf32> to vector<256x128xf32>
    %cst_111 = arith.constant dense<0.000000e+00> : vector<6x128xf32>
    %111 = tpu.matmul %108, %110, %cst_111 {dimension_numbers = #tpu.dot_dimension_numbers<[1], [0], [0], [1], [0, 0, 1, 1], [], []>} : vector<6x256xf32>, vector<256x128xf32>, vector<6x128xf32> -> vector<6x128xf32>
    %112 = arith.addf %106, %111 : vector<6x128xf32>
    %c0_112 = arith.constant 0 : index
    %c3_113 = arith.constant 3 : index
    %c64_114 = arith.constant 64 : index
    %113 = vector.load %arg11[%c0_112, %c3_113, %c64_114] : memref<1x13x320xf32, #tpu.memory_space<vmem>>, vector<1x6x256xf32>
    %114 = vector.shape_cast %113 : vector<1x6x256xf32> to vector<6x256xf32>
    %c3_115 = arith.constant 3 : index
    %c0_116 = arith.constant 0 : index
    %c0_117 = arith.constant 0 : index
    %115 = vector.load %arg4[%c3_115, %c0_116, %c0_117] : memref<8x256x128xf32, #tpu.memory_space<vmem>>, vector<1x256x128xf32>
    %116 = vector.shape_cast %115 : vector<1x256x128xf32> to vector<256x128xf32>
    %cst_118 = arith.constant dense<0.000000e+00> : vector<6x128xf32>
    %117 = tpu.matmul %114, %116, %cst_118 {dimension_numbers = #tpu.dot_dimension_numbers<[1], [0], [0], [1], [0, 0, 1, 1], [], []>} : vector<6x256xf32>, vector<256x128xf32>, vector<6x128xf32> -> vector<6x128xf32>
    %118 = arith.addf %112, %117 : vector<6x128xf32>
    %c0_119 = arith.constant 0 : index
    %c4_120 = arith.constant 4 : index
    %c64_121 = arith.constant 64 : index
    %119 = vector.load %arg11[%c0_119, %c4_120, %c64_121] : memref<1x13x320xf32, #tpu.memory_space<vmem>>, vector<1x6x256xf32>
    %120 = vector.shape_cast %119 : vector<1x6x256xf32> to vector<6x256xf32>
    %c4_122 = arith.constant 4 : index
    %c0_123 = arith.constant 0 : index
    %c0_124 = arith.constant 0 : index
    %121 = vector.load %arg4[%c4_122, %c0_123, %c0_124] : memref<8x256x128xf32, #tpu.memory_space<vmem>>, vector<1x256x128xf32>
    %122 = vector.shape_cast %121 : vector<1x256x128xf32> to vector<256x128xf32>
    %cst_125 = arith.constant dense<0.000000e+00> : vector<6x128xf32>
    %123 = tpu.matmul %120, %122, %cst_125 {dimension_numbers = #tpu.dot_dimension_numbers<[1], [0], [0], [1], [0, 0, 1, 1], [], []>} : vector<6x256xf32>, vector<256x128xf32>, vector<6x128xf32> -> vector<6x128xf32>
    %124 = arith.addf %118, %123 : vector<6x128xf32>
    %c0_126 = arith.constant 0 : index
    %c5_127 = arith.constant 5 : index
    %c64_128 = arith.constant 64 : index
    %125 = vector.load %arg11[%c0_126, %c5_127, %c64_128] : memref<1x13x320xf32, #tpu.memory_space<vmem>>, vector<1x6x256xf32>
    %126 = vector.shape_cast %125 : vector<1x6x256xf32> to vector<6x256xf32>
    %c5_129 = arith.constant 5 : index
    %c0_130 = arith.constant 0 : index
    %c0_131 = arith.constant 0 : index
    %127 = vector.load %arg4[%c5_129, %c0_130, %c0_131] : memref<8x256x128xf32, #tpu.memory_space<vmem>>, vector<1x256x128xf32>
    %128 = vector.shape_cast %127 : vector<1x256x128xf32> to vector<256x128xf32>
    %cst_132 = arith.constant dense<0.000000e+00> : vector<6x128xf32>
    %129 = tpu.matmul %126, %128, %cst_132 {dimension_numbers = #tpu.dot_dimension_numbers<[1], [0], [0], [1], [0, 0, 1, 1], [], []>} : vector<6x256xf32>, vector<256x128xf32>, vector<6x128xf32> -> vector<6x128xf32>
    %130 = arith.addf %124, %129 : vector<6x128xf32>
    %c0_133 = arith.constant 0 : index
    %c6_134 = arith.constant 6 : index
    %c64_135 = arith.constant 64 : index
    %131 = vector.load %arg11[%c0_133, %c6_134, %c64_135] : memref<1x13x320xf32, #tpu.memory_space<vmem>>, vector<1x6x256xf32>
    %132 = vector.shape_cast %131 : vector<1x6x256xf32> to vector<6x256xf32>
    %c6_136 = arith.constant 6 : index
    %c0_137 = arith.constant 0 : index
    %c0_138 = arith.constant 0 : index
    %133 = vector.load %arg4[%c6_136, %c0_137, %c0_138] : memref<8x256x128xf32, #tpu.memory_space<vmem>>, vector<1x256x128xf32>
    %134 = vector.shape_cast %133 : vector<1x256x128xf32> to vector<256x128xf32>
    %cst_139 = arith.constant dense<0.000000e+00> : vector<6x128xf32>
    %135 = tpu.matmul %132, %134, %cst_139 {dimension_numbers = #tpu.dot_dimension_numbers<[1], [0], [0], [1], [0, 0, 1, 1], [], []>} : vector<6x256xf32>, vector<256x128xf32>, vector<6x128xf32> -> vector<6x128xf32>
    %136 = arith.addf %130, %135 : vector<6x128xf32>
    %c0_140 = arith.constant 0 : index
    %c7_141 = arith.constant 7 : index
    %c64_142 = arith.constant 64 : index
    %137 = vector.load %arg11[%c0_140, %c7_141, %c64_142] : memref<1x13x320xf32, #tpu.memory_space<vmem>>, vector<1x6x256xf32>
    %138 = vector.shape_cast %137 : vector<1x6x256xf32> to vector<6x256xf32>
    %c7_143 = arith.constant 7 : index
    %c0_144 = arith.constant 0 : index
    %c0_145 = arith.constant 0 : index
    %139 = vector.load %arg4[%c7_143, %c0_144, %c0_145] : memref<8x256x128xf32, #tpu.memory_space<vmem>>, vector<1x256x128xf32>
    %140 = vector.shape_cast %139 : vector<1x256x128xf32> to vector<256x128xf32>
    %cst_146 = arith.constant dense<0.000000e+00> : vector<6x128xf32>
    %141 = tpu.matmul %138, %140, %cst_146 {dimension_numbers = #tpu.dot_dimension_numbers<[1], [0], [0], [1], [0, 0, 1, 1], [], []>} : vector<6x256xf32>, vector<256x128xf32>, vector<6x128xf32> -> vector<6x128xf32>
    %142 = arith.addf %136, %141 : vector<6x128xf32>
    %c0_147 = arith.constant 0 : index
    %c0_148 = arith.constant 0 : index
    %143 = vector.load %arg5[%c0_147, %c0_148] : memref<1x128xf32, #tpu.memory_space<vmem>>, vector<1x128xf32>
    %144 = vector.broadcast %143 : vector<1x128xf32> to vector<6x128xf32>
    %145 = arith.addf %142, %144 : vector<6x128xf32>
    %cst_149 = arith.constant 0.000000e+00 : f32
    %146 = vector.broadcast %cst_149 : f32 to vector<6x128xf32>
    %147 = arith.cmpf ogt, %145, %146 : vector<6x128xf32>
    %cst_150 = arith.constant 0.00999999977 : f32
    %148 = vector.broadcast %cst_150 : f32 to vector<6x128xf32>
    %149 = arith.mulf %148, %145 : vector<6x128xf32>
    %150 = arith.select %147, %145, %149 : vector<6x128xi1>, vector<6x128xf32>
    %151 = vector.shape_cast %150 : vector<6x128xf32> to vector<1x6x128xf32>
    %c0_151 = arith.constant 0 : index
    %c0_152 = arith.constant 0 : index
    %c128 = arith.constant 128 : index
    %152 = vector.load %arg12[%c0_151, %c0_152, %c128] : memref<1x6x256xf32, #tpu.memory_space<vmem>>, vector<1x6x128xf32>
    tpu.vector_store %arg12[%c0_151, %c0_152, %c128], %151 {strides = array<i32>} : memref<1x6x256xf32, #tpu.memory_space<vmem>>, vector<1x6x128xf32>,
    %cst_153 = arith.constant 0.000000e+00 : f32
    %153 = vector.broadcast %cst_153 : f32 to vector<1x128xf32>
    %c0_154 = arith.constant 0 : index
    %c0_155 = arith.constant 0 : index
    %c0_156 = arith.constant 0 : index
    %154 = vector.load %arg12[%c0_154, %c0_155, %c0_156] : memref<1x6x256xf32, #tpu.memory_space<vmem>>, vector<1x1x256xf32>
    %155 = vector.shape_cast %154 : vector<1x1x256xf32> to vector<1x256xf32>
    %c0_157 = arith.constant 0 : index
    %c0_158 = arith.constant 0 : index
    %c0_159 = arith.constant 0 : index
    %156 = vector.load %arg6[%c0_157, %c0_158, %c0_159] : memref<6x256x128xf32, #tpu.memory_space<vmem>>, vector<1x256x128xf32>
    %157 = vector.shape_cast %156 : vector<1x256x128xf32> to vector<256x128xf32>
    %cst_160 = arith.constant dense<0.000000e+00> : vector<1x128xf32>
    %158 = tpu.matmul %155, %157, %cst_160 {dimension_numbers = #tpu.dot_dimension_numbers<[1], [0], [0], [1], [0, 0, 1, 1], [], []>} : vector<1x256xf32>, vector<256x128xf32>, vector<1x128xf32> -> vector<1x128xf32>
    %159 = arith.addf %153, %158 : vector<1x128xf32>
    %c0_161 = arith.constant 0 : index
    %c1_162 = arith.constant 1 : index
    %c0_163 = arith.constant 0 : index
    %160 = vector.load %arg12[%c0_161, %c1_162, %c0_163] : memref<1x6x256xf32, #tpu.memory_space<vmem>>, vector<1x1x256xf32>
    %161 = vector.shape_cast %160 : vector<1x1x256xf32> to vector<1x256xf32>
    %c1_164 = arith.constant 1 : index
    %c0_165 = arith.constant 0 : index
    %c0_166 = arith.constant 0 : index
    %162 = vector.load %arg6[%c1_164, %c0_165, %c0_166] : memref<6x256x128xf32, #tpu.memory_space<vmem>>, vector<1x256x128xf32>
    %163 = vector.shape_cast %162 : vector<1x256x128xf32> to vector<256x128xf32>
    %cst_167 = arith.constant dense<0.000000e+00> : vector<1x128xf32>
    %164 = tpu.matmul %161, %163, %cst_167 {dimension_numbers = #tpu.dot_dimension_numbers<[1], [0], [0], [1], [0, 0, 1, 1], [], []>} : vector<1x256xf32>, vector<256x128xf32>, vector<1x128xf32> -> vector<1x128xf32>
    %165 = arith.addf %159, %164 : vector<1x128xf32>
    %c0_168 = arith.constant 0 : index
    %c2_169 = arith.constant 2 : index
    %c0_170 = arith.constant 0 : index
    %166 = vector.load %arg12[%c0_168, %c2_169, %c0_170] : memref<1x6x256xf32, #tpu.memory_space<vmem>>, vector<1x1x256xf32>
    %167 = vector.shape_cast %166 : vector<1x1x256xf32> to vector<1x256xf32>
    %c2_171 = arith.constant 2 : index
    %c0_172 = arith.constant 0 : index
    %c0_173 = arith.constant 0 : index
    %168 = vector.load %arg6[%c2_171, %c0_172, %c0_173] : memref<6x256x128xf32, #tpu.memory_space<vmem>>, vector<1x256x128xf32>
    %169 = vector.shape_cast %168 : vector<1x256x128xf32> to vector<256x128xf32>
    %cst_174 = arith.constant dense<0.000000e+00> : vector<1x128xf32>
    %170 = tpu.matmul %167, %169, %cst_174 {dimension_numbers = #tpu.dot_dimension_numbers<[1], [0], [0], [1], [0, 0, 1, 1], [], []>} : vector<1x256xf32>, vector<256x128xf32>, vector<1x128xf32> -> vector<1x128xf32>
    %171 = arith.addf %165, %170 : vector<1x128xf32>
    %c0_175 = arith.constant 0 : index
    %c3_176 = arith.constant 3 : index
    %c0_177 = arith.constant 0 : index
    %172 = vector.load %arg12[%c0_175, %c3_176, %c0_177] : memref<1x6x256xf32, #tpu.memory_space<vmem>>, vector<1x1x256xf32>
    %173 = vector.shape_cast %172 : vector<1x1x256xf32> to vector<1x256xf32>
    %c3_178 = arith.constant 3 : index
    %c0_179 = arith.constant 0 : index
    %c0_180 = arith.constant 0 : index
    %174 = vector.load %arg6[%c3_178, %c0_179, %c0_180] : memref<6x256x128xf32, #tpu.memory_space<vmem>>, vector<1x256x128xf32>
    %175 = vector.shape_cast %174 : vector<1x256x128xf32> to vector<256x128xf32>
    %cst_181 = arith.constant dense<0.000000e+00> : vector<1x128xf32>
    %176 = tpu.matmul %173, %175, %cst_181 {dimension_numbers = #tpu.dot_dimension_numbers<[1], [0], [0], [1], [0, 0, 1, 1], [], []>} : vector<1x256xf32>, vector<256x128xf32>, vector<1x128xf32> -> vector<1x128xf32>
    %177 = arith.addf %171, %176 : vector<1x128xf32>
    %c0_182 = arith.constant 0 : index
    %c4_183 = arith.constant 4 : index
    %c0_184 = arith.constant 0 : index
    %178 = vector.load %arg12[%c0_182, %c4_183, %c0_184] : memref<1x6x256xf32, #tpu.memory_space<vmem>>, vector<1x1x256xf32>
    %179 = vector.shape_cast %178 : vector<1x1x256xf32> to vector<1x256xf32>
    %c4_185 = arith.constant 4 : index
    %c0_186 = arith.constant 0 : index
    %c0_187 = arith.constant 0 : index
    %180 = vector.load %arg6[%c4_185, %c0_186, %c0_187] : memref<6x256x128xf32, #tpu.memory_space<vmem>>, vector<1x256x128xf32>
    %181 = vector.shape_cast %180 : vector<1x256x128xf32> to vector<256x128xf32>
    %cst_188 = arith.constant dense<0.000000e+00> : vector<1x128xf32>
    %182 = tpu.matmul %179, %181, %cst_188 {dimension_numbers = #tpu.dot_dimension_numbers<[1], [0], [0], [1], [0, 0, 1, 1], [], []>} : vector<1x256xf32>, vector<256x128xf32>, vector<1x128xf32> -> vector<1x128xf32>
    %183 = arith.addf %177, %182 : vector<1x128xf32>
    %c0_189 = arith.constant 0 : index
    %c5_190 = arith.constant 5 : index
    %c0_191 = arith.constant 0 : index
    %184 = vector.load %arg12[%c0_189, %c5_190, %c0_191] : memref<1x6x256xf32, #tpu.memory_space<vmem>>, vector<1x1x256xf32>
    %185 = vector.shape_cast %184 : vector<1x1x256xf32> to vector<1x256xf32>
    %c5_192 = arith.constant 5 : index
    %c0_193 = arith.constant 0 : index
    %c0_194 = arith.constant 0 : index
    %186 = vector.load %arg6[%c5_192, %c0_193, %c0_194] : memref<6x256x128xf32, #tpu.memory_space<vmem>>, vector<1x256x128xf32>
    %187 = vector.shape_cast %186 : vector<1x256x128xf32> to vector<256x128xf32>
    %cst_195 = arith.constant dense<0.000000e+00> : vector<1x128xf32>
    %188 = tpu.matmul %185, %187, %cst_195 {dimension_numbers = #tpu.dot_dimension_numbers<[1], [0], [0], [1], [0, 0, 1, 1], [], []>} : vector<1x256xf32>, vector<256x128xf32>, vector<1x128xf32> -> vector<1x128xf32>
    %189 = arith.addf %183, %188 : vector<1x128xf32>
    %c0_196 = arith.constant 0 : index
    %c0_197 = arith.constant 0 : index
    %190 = vector.load %arg7[%c0_196, %c0_197] : memref<1x128xf32, #tpu.memory_space<vmem>>, vector<1x128xf32>
    %191 = arith.addf %189, %190 : vector<1x128xf32>
    %cst_198 = arith.constant 0.000000e+00 : f32
    %192 = vector.broadcast %cst_198 : f32 to vector<1x128xf32>
    %193 = arith.cmpf ogt, %191, %192 : vector<1x128xf32>
    %cst_199 = arith.constant 0.00999999977 : f32
    %194 = vector.broadcast %cst_199 : f32 to vector<1x128xf32>
    %195 = arith.mulf %194, %191 : vector<1x128xf32>
    %196 = arith.select %193, %191, %195 : vector<1x128xi1>, vector<1x128xf32>
    %c0_200 = arith.constant 0 : index
    %c0_201 = arith.constant 0 : index
    %197 = vector.load %arg8[%c0_200, %c0_201] : memref<1x128xf32, #tpu.memory_space<vmem>>, vector<1x128xf32>
    %198 = arith.mulf %196, %197 : vector<1x128xf32>
    %cst_202 = arith.constant dense<0.000000e+00> : vector<1xf32>
    %199 = vector.multi_reduction <add>, %198, %cst_202 [1] : vector<1x128xf32> to vector<1xf32>
    %200 = vector.shape_cast %199 : vector<1xf32> to vector<1x1xf32>
    %c0_203 = arith.constant 0 : index
    %c0_204 = arith.constant 0 : index
    %201 = vector.load %arg9[%c0_203, %c0_204] : memref<1x1xf32, #tpu.memory_space<vmem>>, vector<1x1xf32>
    %202 = arith.addf %200, %201 : vector<1x1xf32>
    %c0_205 = arith.constant 0 : index
    %c0_206 = arith.constant 0 : index
    %c0_207 = arith.constant 0 : index
    %203 = vector.load %arg10[%c0_205, %c0_206, %c0_207] : memref<1x1x1xf32, #tpu.memory_space<vmem>>, vector<1x1x1xf32>
    %204 = vector.shape_cast %203 : vector<1x1x1xf32> to vector<1x1xf32>
    %205 = vector.shape_cast %202 : vector<1x1xf32> to vector<1x1x1xf32>
    tpu.vector_store %arg10[%c0_205, %c0_206, %c0_207], %205 {strides = array<i32>} : memref<1x1x1xf32, #tpu.memory_space<vmem>>, vector<1x1x1xf32>,
    return
  }
  func.func @transform_0(%arg0: i32) -> (i32, i32, i32) {
    %c0_i32 = arith.constant 0 : i32
    %c0_i32_0 = arith.constant 0 : i32
    %c0_i32_1 = arith.constant 0 : i32
    return %arg0, %c0_i32, %c0_i32_0 : i32, i32, i32
  }
  func.func @transform_1(%arg0: i32) -> (i32, i32, i32) {
    %c0_i32 = arith.constant 0 : i32
    %c0_i32_0 = arith.constant 0 : i32
    %c0_i32_1 = arith.constant 0 : i32
    %c0_i32_2 = arith.constant 0 : i32
    return %c0_i32, %c0_i32_0, %c0_i32_1 : i32, i32, i32
  }
  func.func @transform_2(%arg0: i32) -> (i32, i32) {
    %c0_i32 = arith.constant 0 : i32
    %c0_i32_0 = arith.constant 0 : i32
    %c0_i32_1 = arith.constant 0 : i32
    return %c0_i32, %c0_i32_0 : i32, i32
  }
  func.func @transform_3(%arg0: i32) -> (i32, i32, i32) {
    %c0_i32 = arith.constant 0 : i32
    %c0_i32_0 = arith.constant 0 : i32
    %c0_i32_1 = arith.constant 0 : i32
    %c0_i32_2 = arith.constant 0 : i32
    return %c0_i32, %c0_i32_0, %c0_i32_1 : i32, i32, i32
  }
  func.func @transform_4(%arg0: i32) -> (i32, i32) {
    %c0_i32 = arith.constant 0 : i32
    %c0_i32_0 = arith.constant 0 : i32
    %c0_i32_1 = arith.constant 0 : i32
    return %c0_i32, %c0_i32_0 : i32, i32
  }
  func.func @transform_5(%arg0: i32) -> (i32, i32, i32) {
    %c0_i32 = arith.constant 0 : i32
    %c0_i32_0 = arith.constant 0 : i32
    %c0_i32_1 = arith.constant 0 : i32
    %c0_i32_2 = arith.constant 0 : i32
    return %c0_i32, %c0_i32_0, %c0_i32_1 : i32, i32, i32
  }
  func.func @transform_6(%arg0: i32) -> (i32, i32) {
    %c0_i32 = arith.constant 0 : i32
    %c0_i32_0 = arith.constant 0 : i32
    %c0_i32_1 = arith.constant 0 : i32
    return %c0_i32, %c0_i32_0 : i32, i32
  }
  func.func @transform_7(%arg0: i32) -> (i32, i32) {
    %c0_i32 = arith.constant 0 : i32
    %c0_i32_0 = arith.constant 0 : i32
    %c0_i32_1 = arith.constant 0 : i32
    return %c0_i32, %c0_i32_0 : i32, i32
  }
  func.func @transform_8(%arg0: i32) -> (i32, i32) {
    %c0_i32 = arith.constant 0 : i32
    %c0_i32_0 = arith.constant 0 : i32
    %c0_i32_1 = arith.constant 0 : i32
    return %c0_i32, %c0_i32_0 : i32, i32
  }
  func.func @transform_9(%arg0: i32) -> (i32, i32, i32) {
    %c0_i32 = arith.constant 0 : i32
    %c0_i32_0 = arith.constant 0 : i32
    %c0_i32_1 = arith.constant 0 : i32
    return %arg0, %c0_i32, %c0_i32_0 : i32, i32, i32
  }
}

</mosaic_0001>

<bundles_post_ra>
// kernel: forward.1
= control target key start
LH: loop header
LB: loop body
LE: loop exit
PB: predicated region body
PF: predicated region fallthrough
CT: control target
= control target key end

     0   :  { %s6096_s11 = smov 0   ;;  %s8723_s0 = inlined_call_operand.vmem [shape: f32[2,16,8], index: 0, kind: input, shape index: {}]   ;;  %s8724_s1 = inlined_call_operand.vmem [shape: f32[4,8,320], index: 1, kind: input, shape index: {}]   ;;  %s8725_s2 = inlined_call_operand.vmem [shape: f32[1,320], index: 2, kind: input, shape index: {}]   ;;  %s8726_s3 = inlined_call_operand.vmem [shape: f32[8,256,128], index: 3, kind: input, shape index: {}]   ;;  %s8727_s4 = inlined_call_operand.vmem [shape: f32[1,128], index: 4, kind: input, shape index: {}]   ;;  %s8728_s5 = inlined_call_operand.vmem [shape: f32[6,256,128], index: 5, kind: input, shape index: {}]   ;;  %s8729_s6 = inlined_call_operand.vmem [shape: f32[1,128], index: 6, kind: input, shape index: {}]   ;;  %s8730_s7 = inlined_call_operand.vmem [shape: f32[1,128], index: 7, kind: input, shape index: {}]   ;;  %s8731_s8 = inlined_call_operand.<no memory space> [shape: f32[1,1], index: 8, kind: input, shape index: {}]   ;;  %s8732_s9 = inlined_call_operand.vmem [shape: f32[2,1,1], index: 9, kind: output, shape index: {}]  }
   0x1   :  { %v14_v0 = vstv %s8731_s8 }
   0x2   :  { %15 = vst [vmem:[#allocation4] sm:$0x1] %v14_v0 }
   0x3 LB: > { %s3794_s12 = sadd.s32 4294967295, %s6039_s11   ;;  %p3798_p0 = scmp.ge.s32.totalorder %s6039_s11, 1  ;;  %s6039_s11 = sphi %s6096_s11, %s21_s11  }
   0x4   : > { %p289_p1 = scmp.lt.s32.totalorder %s6039_s11, 3 }
   0x6   : > { %p290_p2 = pnand %p3798_p0, %p289_p1 }
   0x7   : > { %v3802_v1 = vld [vmem:[%s8724_s1 + $0x20] sm:$0xff] (!%p290_p2)  ;;  %v3801_v2 = vld [vmem:[%s8724_s1 + $0x18] sm:$0xff] (!%p290_p2)  ;;  %v334_v3 = vld [vmem:[%s8724_s1 + $0x8] sm:$0xff] (!%p290_p2)  ;;  %p323_p3 = scmp.lt.s32.totalorder (!%p290_p2), %s3794_s12, 1  ;;  %v6041_v7 = vmov (!%p290_p2), 0.0   ;;  %vm342_vm0 = vcmask (!%p290_p2), 64512  }
   0x8   : > { %293 = sbr.rel (%p290_p2) target bundleno = 1172 (0x494), region = 56  ;;  %349 = vmatprep.subr.mxu1 (!%p290_p2), %v3802_v1  ;;  %507 = vmatprep.subr.mxu0 (!%p290_p2), %v334_v3  ;;  %v3803_v4 = vld [vmem:[%s8724_s1 + $0x28] sm:$0xff] (!%p290_p2)  ;;  %v333_v5 = vld [vmem:[%s8724_s1] sm:$0xff] (!%p290_p2)  ;;  %v3813_v6 = vld [vmem:[%s8724_s1 + $0x38] sm:$0xff] (!%p290_p2)  ;;  %vm1046_vm5 = vcmask (!%p290_p2), 520192   ;;  %vm1042_vm6 = vcmask (!%p290_p2), 523264  }
   0x9   : > { %350 = vmatpush1.msra.mxu1 (!%p290_p2), %v3801_v2  ;;  %413 = vmatprep.mubr.f32.mxu1 (!%p290_p2), %v6041_v7  ;;  %v335_v10 = vld [vmem:[%s8724_s1 + $0x10] sm:$0xff] (!%p290_p2)  ;;  %v3814_v16 = vld [vmem:[%s8724_s1 + $0x40] sm:$0xff] (!%p290_p2)  ;;  %v3819_v17 = vld [vmem:[%s8724_s1 + $0x48] sm:$0xff] (!%p290_p2)  ;;  %vm1416_vm7 = vcmask (!%p290_p2), 1044480   ;;  %vm1537_vm10 = vcmask (!%p290_p2), 1043456   ;;  %vm1658_vm11 = vcmask (!%p290_p2), 1042432  }
   0xa   : > { %5221 = vmatprep.subr.mxu1 (!%p290_p2), %v3803_v4  ;;  %508 = vmatpush1.msra.mxu0 (!%p290_p2), %v333_v5  ;;  %v3812_v11 = vld [vmem:[%s8724_s1 + $0x30] sm:$0xff] (!%p290_p2)  ;;  %v3821_v20 = vld [vmem:[%s8724_s1 + $0x58] sm:$0xff] (!%p290_p2)  ;;  %v1066_v22 = vld [vmem:[%s8726_s3 + $0x80] sm:$0xff] (!%p290_p2)  ;;  %vm1779_vm12 = vcmask (!%p290_p2), 1041408   ;;  %vm1900_vm13 = vcmask (!%p290_p2), 1040384  }
   0xb   : > { %571 = vmatprep.mubr.f32.mxu0 (!%p290_p2), %v6041_v7  ;;  %671 = vmatprep.subr.mxu0 (!%p290_p2), %v3813_v6  ;;  %v3820_v14 = vld [vmem:[%s8724_s1 + $0x50] sm:$0xff] (!%p290_p2)  ;;  %v1067_v23 = vld [vmem:[%s8726_s3 + $0x88] sm:$0xff] (!%p290_p2)  ;;  %v1050_v25 = vld [vmem:[%s8726_s3] sm:$0xff] (!%p290_p2) }
   0xc   : > { %v5273_v24 = vpack.c.bf16 (!%p290_p2), %v1067_v23, %v1066_v22  ;;  %v1051_v26 = vld [vmem:[%s8726_s3 + $0x8] sm:$0xff] (!%p290_p2)  ;;  %v3842_v28 = vld [vmem:[%s8726_s3 + $0x180] sm:$0xff] (!%p290_p2)  ;;  %v1068_v34 = vld [vmem:[%s8726_s3 + $0x90] sm:$0xff] (!%p290_p2) }
   0xd   : > { %v5275_v27 = vpack.c.bf16 (!%p290_p2), %v1051_v26, %v1050_v25  ;;  %v3843_v29 = vld [vmem:[%s8726_s3 + $0x188] sm:$0xff] (!%p290_p2)  ;;  %v3826_v31 = vld [vmem:[%s8726_s3 + $0x100] sm:$0xff] (!%p290_p2)  ;;  %v1069_v35 = vld [vmem:[%s8726_s3 + $0x98] sm:$0xff] (!%p290_p2) }
   0xe   : > { %v5241_v30 = vpack.c.bf16 (!%p290_p2), %v3843_v29, %v3842_v28  ;;  %v3827_v32 = vld [vmem:[%s8726_s3 + $0x108] sm:$0xff] (!%p290_p2)  ;;  %v5277_v36 = vpack.c.bf16 (!%p290_p2), %v1069_v35, %v1068_v34  ;;  %v1052_v37 = vld [vmem:[%s8726_s3 + $0x10] sm:$0xff] (!%p290_p2)  ;;  %v1053_v38 = vld [vmem:[%s8726_s3 + $0x18] sm:$0xff] (!%p290_p2) }
   0xf   : > { %s8734_s12 = smov (!%p323_p3, %s3794_s12), 1  ;;  %v5243_v33 = vpack.c.bf16 %v3827_v32, %v3826_v31  ;;  %v5279_v39 = vpack.c.bf16 %v1053_v38, %v1052_v37  ;;  %v3844_v40 = vld [vmem:[%s8726_s3 + $0x190] sm:$0xff]  ;;  %v3845_v41 = vld [vmem:[%s8726_s3 + $0x198] sm:$0xff]  ;;  %v1070_v45 = vld [vmem:[%s8726_s3 + $0xa0] sm:$0xff] }
  0x10   : > { %s4438_s24 = sshll.u32 %s8734_s12, 4  ;;  %v5245_v42 = vpack.c.bf16 %v3845_v41, %v3844_v40  ;;  %v3828_v43 = vld [vmem:[%s8726_s3 + $0x110] sm:$0xff]  ;;  %v3829_v44 = vld [vmem:[%s8726_s3 + $0x118] sm:$0xff]  ;;  %v1071_v47 = vld [vmem:[%s8726_s3 + $0xa8] sm:$0xff]  ;;  %s330_s22 = scalar_lea.vmem %s8732_s9, %s8734_s12 }
  0x11   : > { %s6128_s27 = scalar_lea.vmem %s8723_s0, %s4438_s24  ;;  %v5247_v46 = vpack.c.bf16 %v3829_v44, %v3828_v43  ;;  %v1054_v48 = vld [vmem:[%s8726_s3 + $0x20] sm:$0xff]  ;;  %v1055_v49 = vld [vmem:[%s8726_s3 + $0x28] sm:$0xff]  ;;  %v5281_v50 = vpack.c.bf16 %v1071_v47, %v1070_v45  ;;  %v1072_v57 = vld [vmem:[%s8726_s3 + $0xb0] sm:$0xff]  ;;  %s6042_s24 = smov 64  }
  0x12   : > { %v336_v8 = vld [vmem:[%s6128_s27 + $0x1] sm:$0xff]  ;;  %v337_v12 = vld [vmem:[%s6128_s27 + $0x9] sm:$0x1f]  ;;  %v5283_v51 = vpack.c.bf16 %v1055_v49, %v1054_v48  ;;  %v1073_v58 = vld [vmem:[%s8726_s3 + $0xb8] sm:$0xff] }
  0x13   : > { %v331_v9 = vld [vmem:[%s6128_s27] sm:$0xff]  ;;  %3804 = vmatmul.mubr.msk.f32.vlgmr.msra.gmra.mrb[0].mxu1 %vm342_vm0, %v336_v8  ;;  %v332_v13 = vld [vmem:[%s6128_s27 + $0x8] sm:$0x1f]  ;;  %v5285_v60 = vpack.c.bf16 %v1073_v58, %v1072_v57  ;;  %v1056_v61 = vld [vmem:[%s8726_s3 + $0x30] sm:$0xff] }
  0x14   : > { %3808 = vmatmul.mubr.msk.f32.vlgmr.msra.gmra.mrb[0].mxu0 %vm342_vm0, %v331_v9  ;;  %5222 = vmatpush3.msra.mxu1 %v3803_v4  ;;  %v659_v15 = vld [vmem:[%s6128_s27 + $0x2] sm:$0xff]  ;;  %v660_v18 = vld [vmem:[%s6128_s27 + $0xa] sm:$0x1f]  ;;  %v1057_v62 = vld [vmem:[%s8726_s3 + $0x38] sm:$0xff] }
  0x15   : > { %419 = vmatprep.mubr.f32.mxu1 %v6041_v7  ;;  %577 = vmatprep.mubr.f32.mxu0 %v6041_v7  ;;  %v829_v19 = vld [vmem:[%s6128_s27 + $0x3] sm:$0xff]  ;;  %v830_v21 = vld [vmem:[%s6128_s27 + $0xb] sm:$0x1f]  ;;  %v3848_v63 = vld [vmem:[%s8726_s3 + $0x1b0] sm:$0xff]  ;;  %v5287_v0 = vpack.c.bf16 %v1057_v62, %v1056_v61  ;;  %v1001_v62 = vlaneseq }
  0x16   : > { %5226 = vmatprep.subr.mxu1 %v335_v10  ;;  %672 = vmatpush1.msra.mxu0 %v3812_v11  ;;  %v3846_v52 = vld [vmem:[%s8726_s3 + $0x1a0] sm:$0xff]  ;;  %v3847_v53 = vld [vmem:[%s8726_s3 + $0x1a8] sm:$0xff]  ;;  %v3849_v1 = vld [vmem:[%s8726_s3 + $0x1b8] sm:$0xff] }
  0x17   : > { %3805 = vmatmul.mubr.msk.f32.gmra.mrb[2].mxu1 %vm342_vm0, %v337_v12  ;;  %841 = vmatprep.subr.mxu0 %v3820_v14  ;;  %v3830_v54 = vld [vmem:[%s8726_s3 + $0x120] sm:$0xff]  ;;  %v5249_v55 = vpack.c.bf16 %v3847_v53, %v3846_v52  ;;  %v3831_v56 = vld [vmem:[%s8726_s3 + $0x128] sm:$0xff]  ;;  %v5253_v2 = vpack.c.bf16 %v3849_v1, %v3848_v63  ;;  %v3832_v3 = vld [vmem:[%s8726_s3 + $0x130] sm:$0xff]  ;;  %v1002_v1 = vshrl.u32 %v1001_v62, 7 }
  0x18   : > { %3809 = vmatmul.mubr.msk.f32.gmra.mrb[2].mxu0 %vm342_vm0, %v332_v13  ;;  %5223 = vmatprep.mubr.msk.f32.mxu1 %vm342_vm0, %v336_v8  ;;  %v5251_v59 = vpack.c.bf16 %v3831_v56, %v3830_v54  ;;  %v3833_v4 = vld [vmem:[%s8726_s3 + $0x138] sm:$0xff]  ;;  %v1074_v6 = vld [vmem:[%s8726_s3 + $0xc0] sm:$0xff]  ;;  %v1079_v31 = vld [vmem:[%s8726_s3 + $0xe8] sm:$0xff] }
  0x19   : > { %735 = vmatprep.mubr.f32.mxu0 %v6041_v7  ;;  %v5255_v5 = vpack.c.bf16 %v3833_v4, %v3832_v3  ;;  %v1061_v22 = vld [vmem:[%s8726_s3 + $0x58] sm:$0xff]  ;;  %v1063_v34 = vld [vmem:[%s8726_s3 + $0x68] sm:$0xff]  ;;  %v1064_v45 = vld [vmem:[%s8726_s3 + $0x70] sm:$0xff]  ;;  %v6381_v4 = vsub.s32 1, %v1002_v1 }
  0x1a   : > { %v3853_v25 = vld [vmem:[%s8726_s3 + $0x1d8] sm:$0xff]  ;;  %v3855_v37 = vld [vmem:[%s8726_s3 + $0x1e8] sm:$0xff]  ;;  %v3856_v48 = vld [vmem:[%s8726_s3 + $0x1f0] sm:$0xff] }
  0x1b   : > { %5224 = vmatmul.mubr.msk.f32.vlgmr.msra.gmra.mrb[4].mxu1 %vm342_vm0, %v337_v12  ;;  %v3850_v12 = vld [vmem:[%s8726_s3 + $0x1c0] sm:$0xff]  ;;  %v3837_v28 = vld [vmem:[%s8726_s3 + $0x158] sm:$0xff]  ;;  %v3839_v40 = vld [vmem:[%s8726_s3 + $0x168] sm:$0xff] }
  0x1c   : > { %3815 = vmatmul.mubr.msk.f32.vlgmr.msra.gmra.mrb[0].mxu0 %vm342_vm0, %v659_v15  ;;  %5227 = vmatpush3.msra.mxu1 %v335_v10  ;;  %v1059_v10 = vld [vmem:[%s8726_s3 + $0x48] sm:$0xff]  ;;  %v1081_v43 = vld [vmem:[%s8726_s3 + $0xf8] sm:$0xff]  ;;  %v3906_v54 = vld [vmem:[%s8726_s3 + $0x380] sm:$0xff] }
  0x1d   : > { %741 = vmatprep.mubr.f32.mxu0 %v6041_v7  ;;  %5228 = vmatprep.mubr.msk.f32.mxu1 %vm342_vm0, %v331_v9  ;;  %v1058_v9 = vld [vmem:[%s8726_s3 + $0x40] sm:$0xff]  ;;  %v3857_v49 = vld [vmem:[%s8726_s3 + $0x1f8] sm:$0xff]  ;;  %v3875_v58 = vld [vmem:[%s8726_s3 + $0x288] sm:$0xff] }
  0x1e   : > { %5231 = vmatprep.subr.mxu1 %v3814_v16  ;;  %842 = vmatpush1.msra.mxu0 %v3819_v17  ;;  %v5291_v11 = vpack.c.bf16 %v1059_v10, %v1058_v9  ;;  %v3841_v52 = vld [vmem:[%s8726_s3 + $0x178] sm:$0xff]  ;;  %v3874_v57 = vld [vmem:[%s8726_s3 + $0x280] sm:$0xff] }
  0x1f   : > { %5274 = vmatprep.subr.bf16.mxu0 %v5273_v24  ;;  %v3852_v24 = vld [vmem:[%s8726_s3 + $0x1d0] sm:$0xff]  ;;  %v999_v3 = vld [vmem:[%s8725_s2] sm:$0x7] }
  0x20   : > { %3816 = vmatmul.mubr.msk.f32.gmra.mrb[2].mxu0 %vm342_vm0, %v660_v18  ;;  %v5261_v26 = vpack.c.bf16 %v3853_v25, %v3852_v24  ;;  %v1011_v24 = vsub.s32 2, %v1002_v1 }
  0x21   : > { %905 = vmatprep.mubr.f32.mxu0 %v6041_v7 }
  0x23   : > { %5229 = vmatmul.mubr.msk.f32.vlgmr.msra.gmra.mrb[4].mxu1 %vm342_vm0, %v332_v13  ;;  %v3851_v13 = vld [vmem:[%s8726_s3 + $0x1c8] sm:$0xff] }
  0x24   : > { %3822 = vmatmul.mubr.msk.f32.vlgmr.msra.gmra.mrb[0].mxu0 %vm342_vm0, %v829_v19  ;;  %5232 = vmatpush3.msra.mxu1 %v3814_v16  ;;  %v5257_v14 = vpack.c.bf16 %v3851_v13, %v3850_v12  ;;  %v3835_v16 = vld [vmem:[%s8726_s3 + $0x148] sm:$0xff] }
  0x25   : > { %911 = vmatprep.mubr.f32.mxu0 %v6041_v7  ;;  %5233 = vmatprep.mubr.msk.f32.mxu1 %vm342_vm0, %v659_v15  ;;  %v1075_v7 = vld [vmem:[%s8726_s3 + $0xc8] sm:$0xff]  ;;  %v3834_v15 = vld [vmem:[%s8726_s3 + $0x140] sm:$0xff] }
  0x26   : > { %5236 = vmatprep.subr.mxu1 %v3821_v20  ;;  %5276 = vmatpush3.bf16.msra.mxu0 %v5275_v27  ;;  %v5289_v8 = vpack.c.bf16 %v1075_v7, %v1074_v6  ;;  %v5259_v17 = vpack.c.bf16 %v3835_v16, %v3834_v15  ;;  %v3836_v27 = vld [vmem:[%s8726_s3 + $0x150] sm:$0xff]  ;;  %v1008_v7 = vrot.slane %v999_v3, %v6381_v4 }
  0x27   : > { %5278 = vmatprep.subr.bf16.mxu0 %v5277_v36  ;;  %v5263_v29 = vpack.c.bf16 %v3837_v28, %v3836_v27  ;;  %v3854_v36 = vld [vmem:[%s8726_s3 + $0x1e0] sm:$0xff] }
  0x28   : > { %3823 = vmatmul.mubr.msk.f32.gmra.mrb[2].mxu0 %vm342_vm0, %v830_v21  ;;  %v5265_v38 = vpack.c.bf16 %v3855_v37, %v3854_v36  ;;  %v3890_v28 = vld [vmem:[%s8726_s3 + $0x300] sm:$0xff]  ;;  %v3893_v36 = vld [vmem:[%s8726_s3 + $0x318] sm:$0xff]  ;;  %v3876_v37 = vld [vmem:[%s8726_s3 + $0x290] sm:$0xff] }
  0x2a   : > { %5280 = vmatpush3.bf16.msra.mxu0 %v5279_v39  ;;  %v3838_v39 = vld [vmem:[%s8726_s3 + $0x160] sm:$0xff] }
  0x2b   : > { %5234 = vmatmul.mubr.msk.f32.vlgmr.msra.gmra.mrb[4].mxu1 %vm342_vm0, %v660_v18  ;;  %5282 = vmatprep.subr.bf16.mxu0 %v5281_v50  ;;  %v1076_v18 = vld [vmem:[%s8726_s3 + $0xd0] sm:$0xff]  ;;  %v5267_v41 = vpack.c.bf16 %v3839_v40, %v3838_v39  ;;  %v5269_v50 = vpack.c.bf16 %v3857_v49, %v3856_v48  ;;  %v3877_v40 = vld [vmem:[%s8726_s3 + $0x298] sm:$0xff]  ;;  %v3911_v48 = vld [vmem:[%s8726_s3 + $0x3a8] sm:$0xff] }
  0x2c   : > { %5237 = vmatpush3.msra.mxu1 %v3821_v20  ;;  %5238 = vmatprep.mubr.msk.f32.mxu1 %vm342_vm0, %v829_v19  ;;  %v1077_v19 = vld [vmem:[%s8726_s3 + $0xd8] sm:$0xff] }
  0x2d   : > { %5242 = vmatprep.subr.bf16.mxu1 %v5241_v30  ;;  %v5293_v20 = vpack.c.bf16 %v1077_v19, %v1076_v18  ;;  %v1078_v30 = vld [vmem:[%s8726_s3 + $0xe0] sm:$0xff] }
  0x2e   : > { %5284 = vmatpush3.bf16.msra.mxu0 %v5283_v51  ;;  %v5297_v32 = vpack.c.bf16 %v1079_v31, %v1078_v30  ;;  %v3840_v51 = vld [vmem:[%s8726_s3 + $0x170] sm:$0xff]  ;;  %v3858_v30 = vld [vmem:[%s8726_s3 + $0x200] sm:$0xff]  ;;  %v1012_v31 = vrot.slane %v999_v3, %v1011_v24  ;;  %v6496_v24 = vld [vmem:[%s8726_s3 + $0x3c8] sm:$0xff] }
  0x2f   : > { %5286 = vmatprep.subr.bf16.mxu0 %v5285_v60  ;;  %v5271_v53 = vpack.c.bf16 %v3841_v52, %v3840_v51 }
  0x32   : > { %5288 = vmatpush3.bf16.msra.mxu0 %v5287_v0 }
  0x33   : > { %5239 = vmatmul.mubr.msk.f32.vlgmr.msra.gmra.mrb[4].mxu1 %vm342_vm0, %v830_v21  ;;  %5290 = vmatprep.subr.bf16.mxu0 %v5289_v8  ;;  %v1060_v21 = vld [vmem:[%s8726_s3 + $0x50] sm:$0xff] }
  0x34   : > { %5244 = vmatpush3.bf16.msra.mxu1 %v5243_v33  ;;  %v5295_v23 = vpack.c.bf16 %v1061_v22, %v1060_v21  ;;  %v1062_v33 = vld [vmem:[%s8726_s3 + $0x60] sm:$0xff] }
  0x35   : > { %5246 = vmatprep.subr.bf16.mxu1 %v5245_v42  ;;  %v5299_v35 = vpack.c.bf16 %v1063_v34, %v1062_v33  ;;  %v1080_v42 = vld [vmem:[%s8726_s3 + $0xf0] sm:$0xff]  ;;  %v3909_v34 = vld [vmem:[%s8726_s3 + $0x398] sm:$0xff] }
  0x36   : > { %5292 = vmatpush3.bf16.msra.mxu0 %v5291_v11  ;;  %v5301_v44 = vpack.c.bf16 %v1081_v43, %v1080_v42  ;;  %v3908_v33 = vld [vmem:[%s8726_s3 + $0x390] sm:$0xff] }
  0x37   : > { %5294 = vmatprep.subr.bf16.mxu0 %v5293_v20 }
  0x38   : > { %5248 = vmatpush3.bf16.msra.mxu1 %v5247_v46  ;;  %v1065_v46 = vld [vmem:[%s8726_s3 + $0x78] sm:$0xff] }
  0x39   : > { %5250 = vmatprep.subr.bf16.mxu1 %v5249_v55  ;;  %v5303_v47 = vpack.c.bf16 %v1065_v46, %v1064_v45  ;;  %v3907_v55 = vld [vmem:[%s8726_s3 + $0x388] sm:$0xff]  ;;  %v5341_v45 = vpack.c.bf16 %v3909_v34, %v3908_v33  ;;  %v6423_v46 = vld [vmem:[%s8726_s3 + $0x210] sm:$0xff]  ;;  %v6528_v34 = vld [vmem:[%s8726_s3 + $0x2c0] sm:$0xff] }
  0x3a   : > { %5296 = vmatpush3.bf16.msra.mxu0 %v5295_v23  ;;  %v5337_v56 = vpack.c.bf16 %v3907_v55, %v3906_v54  ;;  %v6523_v33 = vld [vmem:[%s8726_s3 + $0x348] sm:$0xff] }
  0x3b   : > { %5298 = vmatprep.subr.bf16.mxu0 %v5297_v32  ;;  %v3859_v32 = vld [vmem:[%s8726_s3 + $0x208] sm:$0xff] }
  0x3c   : > { %5252 = vmatpush3.bf16.msra.mxu1 %v5251_v59  ;;  %v5305_v59 = vpack.c.bf16 %v3875_v58, %v3874_v57  ;;  %v5309_v57 = vpack.c.bf16 %v3877_v40, %v3876_v37  ;;  %v6543_v37 = vld [vmem:[%s8726_s3 + $0x248] sm:$0xff] }
  0x3d   : > { %5254 = vmatprep.subr.bf16.mxu1 %v5253_v2  ;;  %v6376_v2 = vsub.s32 0, %v1002_v1  ;;  %v3879_v1 = vld [vmem:[%s8726_s3 + $0x2a8] sm:$0xff] }
  0x3e   : > { %5300 = vmatpush3.bf16.msra.mxu0 %v5299_v35  ;;  %v6406_v35 = vld [vmem:[%s8726_s3 + $0x310] sm:$0xff] }
  0x3f   : > { %5302 = vmatprep.subr.bf16.mxu0 %v5301_v44 }
  0x40   : > { %5256 = vmatpush3.bf16.msra.mxu1 %v5255_v5  ;;  %v1004_v5 = vrot.slane %v999_v3, %v6376_v2 }
  0x41   : > { %5258 = vmatprep.subr.bf16.mxu1 %v5257_v14 }
  0x42   : > { %5304 = vmatpush3.bf16.msra.mxu0 %v5303_v47  ;;  %v6428_v47 = vld [vmem:[%s8726_s3 + $0x218] sm:$0xff] }
  0x43   : > { %5338 = vmatprep.subr.bf16.mxu0 %v5337_v56 }
  0x44   : > { %5260 = vmatpush3.bf16.msra.mxu1 %v5259_v17 }
  0x45   : > { %5262 = vmatprep.subr.bf16.mxu1 %v5261_v26 }
  0x48   : > { %5264 = vmatpush3.bf16.msra.mxu1 %v5263_v29  ;;  %v3891_v29 = vld [vmem:[%s8726_s3 + $0x308] sm:$0xff] }
  0x49   : > { %5266 = vmatprep.subr.bf16.mxu1 %v5265_v38  ;;  %v5339_v38 = vpack.c.bf16 %v3891_v29, %v3890_v28 }
  0x4c   : > { %5268 = vmatpush3.bf16.msra.mxu1 %v5267_v41  ;;  %v3910_v41 = vld [vmem:[%s8726_s3 + $0x3a0] sm:$0xff] }
  0x4d   : > { %5270 = vmatprep.subr.bf16.mxu1 %v5269_v50 }
  0x50   : > { %5272 = vmatpush3.bf16.msra.mxu1 %v5271_v53  ;;  %v5307_v53 = vpack.c.bf16 %v3859_v32, %v3858_v30  ;;  %v6518_v32 = vld [vmem:[%s8726_s3 + $0x340] sm:$0xff] }
  0x51   : > { %5306 = vmatprep.subr.bf16.mxu1 %v5305_v59  ;;  %v6436_v59 = vld [vmem:[%s8726_s3 + $0x320] sm:$0xff] }
  0xe6   : > { %v415_v60 = vpop.f32.mrb[0].mxu1 }
  0xe7   : > { %v417_v61 = vpop.f32.mrb[1].mxu1 }
  0xea   : > { %v421_v63 = vpop.f32.mrb[2].mxu1 }
  0xeb   : > { %v423_v0 = vpop.f32.mrb[3].mxu1 }
  0xf7   : > { %v907_v6 = vpop.f32.mrb[0].mxu0 }
  0xf8   : > { %v5945_v8 = vadd.f32 %v907_v6, %v415_v60  ;;  %v909_v9 = vpop.f32.mrb[1].mxu0  ;;  %v6441_v60 = vld [vmem:[%s8726_s3 + $0x328] sm:$0xff]  ;;  %v5345_v6 = vpack.c.bf16 %v3911_v48, %v3910_v41 }
  0xf9   : > { %v5946_v10 = vadd.f32 %v909_v9, %v417_v61  ;;  %v5311_v9 = vpack.c.bf16 %v6428_v47, %v6423_v46 }
  0xfa   : > { %v1016_v11 = vadd.f32 %v5945_v8, %v1004_v5 }
  0xfb   : > { %v1017_v12 = vadd.f32 %v5946_v10, %v1008_v7  ;;  %v913_v13 = vpop.f32.mrb[2].mxu0 }
  0xfc   : > { %vm1022_vm1 = vcmp.gt.f32.partialorder %v1016_v11, 0.0  ;;  %v1028_v14 = vmul.f32 0.01, %v1016_v11  ;;  %v5947_v15 = vadd.f32 %v913_v13, %v421_v63  ;;  %v915_v16 = vpop.f32.mrb[3].mxu0  ;;  %v5343_v63 = vpack.c.bf16 %v3893_v36, %v6406_v35  ;;  %v3912_v13 = vld [vmem:[%s8726_s3 + $0x3b0] sm:$0xff]  ;;  %v6533_v35 = vld [vmem:[%s8726_s3 + $0x2c8] sm:$0xff] }
  0xfd   : > { %vm1023_vm2 = vcmp.gt.f32.partialorder %v1017_v12, 0.0  ;;  %v1029_v17 = vmul.f32 0.01, %v1017_v12  ;;  %v5948_v18 = vadd.f32 %v915_v16, %v423_v0  ;;  %v3878_v0 = vld [vmem:[%s8726_s3 + $0x2a0] sm:$0xff] }
  0xfe   : > { %v1034_v19 = vsel %vm1022_vm1, %v1016_v11, %v1028_v14  ;;  %v1019_v20 = vadd.f32 %v5947_v15, %v1004_v5  ;;  %v3913_v14 = vld [vmem:[%s8726_s3 + $0x3b8] sm:$0xff]  ;;  %v5313_v16 = vpack.c.bf16 %v3879_v1, %v3878_v0  ;;  %v6538_v36 = vld [vmem:[%s8726_s3 + $0x240] sm:$0xff]  ;;  %v6624_v0 = vld [vmem:[%s8726_s3 + $0x368] sm:$0xff]  ;;  %vm3745_vm1 = vcmask 0  }
  0xff   : > { %1040 = vst [vmem:[#allocation2] sm:$0xff] %v1034_v19  ;;  %v1035_v21 = vsel %vm1023_vm2, %v1017_v12, %v1029_v17  ;;  %v1020_v22 = vadd.f32 %v5948_v18, %v1008_v7  ;;  %v6453_v7 = vld [vmem:[%s8726_s3 + $0x220] sm:$0xff]  ;;  %v3863_v12 = vld [vmem:[%s8726_s3 + $0x228] sm:$0xff]  ;;  %v6471_v17 = vld [vmem:[%s8726_s3 + $0x330] sm:$0xff] }
 0x100   : > { %1041 = vst [vmem:[#allocation2 + $0x8] sm:$0xff] %v1035_v21  ;;  %vm1025_vm3 = vcmp.gt.f32.partialorder %v1019_v20, 0.0  ;;  %v1031_v23 = vmul.f32 0.01, %v1019_v20  ;;  %v6476_v18 = vld [vmem:[%s8726_s3 + $0x338] sm:$0xff]  ;;  %v3880_v19 = vld [vmem:[%s8726_s3 + $0x2b0] sm:$0xff]  ;;  %v5347_v21 = vpack.c.bf16 %v6441_v60, %v6436_v59 }
 0x101   : > { %vm1026_vm4 = vcmp.gt.f32.partialorder %v1020_v22, 0.0  ;;  %v1032_v25 = vmul.f32 0.01, %v1020_v22  ;;  %v6607_v60 = vld [vmem:[%s8726_s3 + $0x3e0] sm:$0xff] }
 0x102   : > { %v1037_v26 = vsel %vm1025_vm3, %v1019_v20, %v1031_v23  ;;  %v6491_v23 = vld [vmem:[%s8726_s3 + $0x3c0] sm:$0xff] }
 0x103   : > { %1044 = vst [vmem:[#allocation2 + $0x18] sm:$0x1f] %v1037_v26  ;;  %v1038_v27 = vsel %vm1026_vm4, %v1020_v22, %v1032_v25  ;;  %v3881_v22 = vld [vmem:[%s8726_s3 + $0x2b8] sm:$0xff]  ;;  %v5349_v25 = vpack.c.bf16 %v3913_v14, %v3912_v13  ;;  %v6501_v26 = vld [vmem:[%s8726_s3 + $0x230] sm:$0xff]  ;;  %v6646_v13 = vld [vmem:[%s8726_s3 + $0x2e8] sm:$0xff] }
 0x104   : > { %1045 = vst [vmem:[#allocation2 + $0x20] sm:$0x1f] %v1038_v27  ;;  %v6506_v27 = vld [vmem:[%s8726_s3 + $0x238] sm:$0xff]  ;;  %v5317_v41 = vpack.c.bf16 %v3881_v22, %v3880_v19  ;;  %v6653_v19 = vld [vmem:[%s8726_s3 + $0x260] sm:$0xff] }
 0x105   : > { %v5319_v59 = vpack.c.bf16 %v6506_v27, %v6501_v26 }
 0x106   : > { %v1082_v39 = vld [vmem:[#allocation2] sm:$0x7e]  ;;  %v5240_v42 = vpop.f32.mrb[4].mxu1 }
 0x107   : > { %v1049_v43 = vld [vmem:[#allocation2 + $0x8] sm:$0x3f]  ;;  %v1021_v49 = vadd.f32 %v5240_v42, %v1012_v31  ;;  %v984_v50 = vpop.f32.mrb[5].mxu1  ;;  %v1048_v51 = vld [vmem:[#allocation2] sm:$0x3f]  ;;  %v1119_v56 = vrot.slane %v1082_v39, 1 }
 0x108   : > { %v1083_v44 = vld [vmem:[#allocation2 + $0x8] sm:$0x7e]  ;;  %1257 = vmatprep.mubr.f32.mxu0 %v1049_v43  ;;  %v1018_v55 = vadd.f32 %v1012_v31, %v984_v50  ;;  %v6512_v30 = vld [vmem:[#allocation2] sm:$0x7e]  ;;  %v5315_v31 = vpack.c.bf16 %v3863_v12, %v6453_v7  ;;  %v6557_v42 = vld [vmem:[%s8726_s3 + $0x3d8] sm:$0xff] }
 0x109   : > { %v1120_v52 = vrot.slane %v1083_v44, 1  ;;  %v1264_v54 = vld [vmem:[#allocation2 + $0x8] sm:$0xfc]  ;;  %1258 = vmatmul.mubr.f32.vlgmr.msra.gmra.mrb[4].mxu0 %v1048_v51  ;;  %vm1027_vm8 = vcmp.gt.f32.partialorder %v1021_v49, 0.0  ;;  %v1033_v61 = vmul.f32 0.01, %v1021_v49 }
 0x10a   : > { %v1376_v58 = vld [vmem:[#allocation2 + $0x8] sm:$0xf8]  ;;  %5340 = vmatpush3.bf16.msra.mxu0 %v5339_v38  ;;  %v1301_v62 = vrot.slane %v1264_v54, 2  ;;  %vm1024_vm9 = vcmp.gt.f32.partialorder %v1018_v55, 0.0  ;;  %v1030_v3 = vmul.f32 0.01, %v1018_v55  ;;  %v5353_v54 = vpack.c.bf16 %v6496_v24, %v6491_v23 }
 0x10b   : > { %1187 = vmatprep.mubr.f32.mxu1 %v1120_v52  ;;  %5342 = vmatprep.subr.bf16.mxu0 %v5341_v45  ;;  %v1378_v5 = vld [vmem:[#allocation2 + $0x20] sm:$0x1]  ;;  %v1039_v8 = vsel %vm1027_vm8, %v1021_v49, %v1033_v61  ;;  %v1420_v10 = vrot.slane %v1376_v58, 3  ;;  %v6508_v28 = vld [vmem:[#allocation2 + $0x8] sm:$0x7e]  ;;  %v6548_v38 = vld [vmem:[%s8726_s3 + $0x3d0] sm:$0xff]  ;;  %v5351_v45 = vpack.c.bf16 %v6476_v18, %v6471_v17 }
 0x10c   : > { %1188 = vmatmul.mubr.f32.vlgmr.msra.gmra.mrb[6].mxu1 %v1119_v56  ;;  %v1421_v11 = vrot.slane %v1378_v5, 3  ;;  %1047 = vst.msk [vmem:[#allocation2 + $0x28] sm:$0x1f] %vm1046_vm5, %v1039_v8  ;;  %v1036_v15 = vsel %vm1024_vm9, %v1018_v55, %v1030_v3  ;;  %v6510_v29 = vld [vmem:[#allocation2 + $0x8] sm:$0xfc]  ;;  %v6562_v43 = vld [vmem:[%s8726_s3 + $0x350] sm:$0xff]  ;;  %v5321_v8 = vpack.c.bf16 %v6533_v35, %v6528_v34 }
 0x10d   : > { %5308 = vmatpush3.bf16.msra.mxu1 %v5307_v53  ;;  %1368 = vmatprep.mubr.f32.mxu1 %v1301_v62  ;;  %1043 = vst.msk [vmem:[#allocation2 + $0x10] sm:$0xff] %vm1042_vm6, %v1036_v15  ;;  %v6550_v39 = vld [vmem:[#allocation2] sm:$0xf8]  ;;  %v6552_v40 = vld [vmem:[#allocation2 + $0x18] sm:$0x1]  ;;  %v2066_v46 = vrot.slane %v6508_v28, 1 }
 0x10e   : > { %5310 = vmatprep.subr.bf16.mxu1 %v5309_v57  ;;  %5344 = vmatpush3.bf16.msra.mxu0 %v5343_v63  ;;  %v1422_v20 = vsel %vm1416_vm7, %v1420_v10, %v1421_v11  ;;  %v6567_v44 = vld [vmem:[%s8726_s3 + $0x358] sm:$0xff]  ;;  %v2270_v47 = vrot.slane %v6510_v29, 2  ;;  %v2065_v48 = vrot.slane %v6512_v30, 1  ;;  %v6577_v49 = vld [vmem:[%s8726_s3 + $0x2d0] sm:$0xff]  ;;  %v1992_v53 = vld [vmem:[#allocation2] sm:$0x3f]  ;;  %v5357_v11 = vpack.c.bf16 %v6557_v42, %v6548_v38 }
 0x10f   : > { %1489 = vmatprep.mubr.f32.mxu0 %v1422_v20  ;;  %5346 = vmatprep.subr.bf16.mxu0 %v5345_v6  ;;  %v6582_v50 = vld [vmem:[%s8726_s3 + $0x2d8] sm:$0xff]  ;;  %v6587_v51 = vld [vmem:[%s8726_s3 + $0x250] sm:$0xff]  ;;  %v2397_v55 = vrot.slane %v6550_v39, 3  ;;  %v2398_v56 = vrot.slane %v6552_v40, 3  ;;  %v6598_v57 = vld [vmem:[#allocation2] sm:$0xfc]  ;;  %v5355_v6 = vpack.c.bf16 %v6523_v33, %v6518_v32  ;;  %v5359_v17 = vpack.c.bf16 %v6567_v44, %v6562_v43 }
 0x110   : > { %v6592_v52 = vld [vmem:[%s8726_s3 + $0x258] sm:$0xff]  ;;  %v6600_v58 = vld [vmem:[#allocation2 + $0x8] sm:$0xf8]  ;;  %v6619_v63 = vld [vmem:[%s8726_s3 + $0x360] sm:$0xff]  ;;  %v5325_v23 = vpack.c.bf16 %v6582_v50, %v6577_v49  ;;  %v2269_v33 = vrot.slane %v6598_v57, 2 }
 0x111   : > { %5312 = vmatpush3.bf16.msra.mxu1 %v5311_v9  ;;  %v6612_v61 = vld [vmem:[%s8726_s3 + $0x3e8] sm:$0xff]  ;;  %v6626_v1 = vld [vmem:[#allocation2 + $0x20] sm:$0x1]  ;;  %v6628_v3 = vld [vmem:[#allocation2 + $0x18] sm:$0x3]  ;;  %v5323_v9 = vpack.c.bf16 %v6543_v37, %v6538_v36  ;;  %v5327_v24 = vpack.c.bf16 %v6592_v52, %v6587_v51  ;;  %v2400_v34 = vrot.slane %v6600_v58, 3  ;;  %v5363_v38 = vpack.c.bf16 %v6624_v0, %v6619_v63 }
 0x112   : > { %5314 = vmatprep.subr.bf16.mxu1 %v5313_v16  ;;  %5348 = vmatpush3.bf16.msra.mxu0 %v5347_v21  ;;  %v6641_v12 = vld [vmem:[%s8726_s3 + $0x2e0] sm:$0xff]  ;;  %v6658_v20 = vld [vmem:[%s8726_s3 + $0x268] sm:$0xff]  ;;  %v6663_v21 = vld [vmem:[%s8726_s3 + $0x3f0] sm:$0xff]  ;;  %v2401_v35 = vrot.slane %v6626_v1, 3  ;;  %v5361_v37 = vpack.c.bf16 %v6612_v61, %v6607_v60  ;;  %v2399_v30 = vsel %vm1416_vm7, %v2397_v55, %v2398_v56 }
 0x113   : > { %5350 = vmatprep.subr.bf16.mxu0 %v5349_v25  ;;  %v6614_v62 = vld [vmem:[#allocation2 + $0x28] sm:$0x1]  ;;  %v2625_v22 = vld [vmem:[#allocation2 + $0x20] sm:$0x7]  ;;  %v2487_v27 = vld [vmem:[#allocation2] sm:$0xf0]  ;;  %v5329_v50 = vpack.c.bf16 %v6646_v13, %v6641_v12 }
 0x114   : > { %v1994_v5 = vld [vmem:[#allocation2 + $0x10] sm:$0x3f]  ;;  %v2404_v26 = vrot.slane %v6614_v62, 3  ;;  %v2622_v28 = vld [vmem:[#allocation2 + $0x8] sm:$0xe0]  ;;  %v6677_v36 = vld [vmem:[%s8726_s3 + $0x3f8] sm:$0xff] }
 0x115   : > { %5316 = vmatpush3.bf16.msra.mxu1 %v5315_v31  ;;  %v2029_v7 = vld [vmem:[#allocation2 + $0x10] sm:$0x7e]  ;;  %v5983_v14 = vpack.i.bf16 %v1992_v53, %v1994_v5  ;;  %v1993_v32 = vld [vmem:[#allocation2 + $0x8] sm:$0x3f]  ;;  %v2669_v42 = vrot.slane %v2625_v22, 5  ;;  %v2531_v53 = vrot.slane %v2487_v27, 4 }
 0x116   : > { %5318 = vmatprep.subr.bf16.mxu1 %v5317_v41  ;;  %v2233_v10 = vld [vmem:[#allocation2 + $0x10] sm:$0xfc]  ;;  %5352 = vmatpush3.bf16.msra.mxu0 %v5351_v45  ;;  %v2067_v15 = vrot.slane %v2029_v7, 1  ;;  %v2532_v41 = vrot.slane %v6628_v3, 4  ;;  %v6713_v60 = vld [vmem:[#allocation2 + $0x8] sm:$0xf0]  ;;  %v5978_v3 = vpack.i.bf16 %v1993_v32, %v2065_v48  ;;  %v5365_v7 = vpack.c.bf16 %v6677_v36, %v6663_v21 }
 0x117   : > { %v2271_v16 = vrot.slane %v2233_v10, 2  ;;  %v2355_v18 = vld [vmem:[#allocation2 + $0x10] sm:$0xf8]  ;;  %5354 = vmatprep.subr.bf16.mxu0 %v5353_v54  ;;  %5984 = vrot.lane.b32.xlu1 %v5983_v14, %s6042_s24  ;;  %v2668_v54 = vrot.slane %v2622_v28, 5  ;;  %v6715_v61 = vld [vmem:[#allocation2 + $0x20] sm:$0x3]  ;;  %v2402_v48 = vsel %vm1416_vm7, %v2400_v34, %v2401_v35 }
 0x118   : > { %v2403_v25 = vrot.slane %v2355_v18, 3  ;;  %v5973_v31 = vpack.i.bf16 %v2067_v15, %v2066_v46  ;;  %v6684_v45 = vld [vmem:[#allocation2 + $0x10] sm:$0xf0]  ;;  %v6686_v46 = vld [vmem:[#allocation2 + $0x28] sm:$0x3]  ;;  %v6725_v1 = vld [vmem:[%s8726_s3 + $0x278] sm:$0xff]  ;;  %v2533_v56 = vsel %vm1537_vm10, %v2531_v53, %v2532_v41 }
 0x119   : > { %5320 = vmatpush3.bf16.msra.mxu1 %v5319_v59  ;;  %v5993_v49 = vpack.i.bf16 %v2271_v16, %v2270_v47  ;;  %v6696_v58 = vld [vmem:[%s8726_s3 + $0x370] sm:$0xff]  ;;  %v6701_v59 = vld [vmem:[%s8726_s3 + $0x378] sm:$0xff]  ;;  %v6736_v10 = vld [vmem:[#allocation2 + $0x20] sm:$0xf]  ;;  %v2538_v15 = vrot.slane %v6686_v46, 4  ;;  %v2670_v18 = vsel %vm1658_vm11, %v2668_v54, %v2669_v42  ;;  %v2534_v22 = vrot.slane %v6713_v60, 4 }
 0x11a   : > { %5322 = vmatprep.subr.bf16.mxu1 %v5321_v8  ;;  %5356 = vmatpush3.bf16.msra.mxu0 %v5355_v6  ;;  %v6706_v29 = vld [vmem:[%s8726_s3 + $0x2f0] sm:$0xff]  ;;  %v6711_v47 = vld [vmem:[%s8726_s3 + $0x2f8] sm:$0xff]  ;;  %v2405_v5 = vsel %vm1416_vm7, %v2403_v25, %v2404_v26  ;;  %v5331_v6 = vpack.c.bf16 %v6658_v20, %v6653_v19  ;;  %v2760_v14 = vld [vmem:[#allocation2 + $0x28] sm:$0xf]  ;;  %v2535_v25 = vrot.slane %v6715_v61, 4  ;;  %v5367_v41 = vpack.c.bf16 %v6701_v59, %v6696_v58 }
 0x11b   : > { %5974 = vrot.lane.b32.xlu0 %v5973_v31, %s6042_s24  ;;  %v6720_v62 = vld [vmem:[%s8726_s3 + $0x270] sm:$0xff]  ;;  %5358 = vmatprep.subr.bf16.mxu0 %v5357_v11  ;;  %v2537_v11 = vrot.slane %v6684_v45, 4  ;;  %v6750_v16 = vld [vmem:[%s8726_s3 + $0x580] sm:$0xff]  ;;  %v2756_v40 = vld [vmem:[#allocation2 + $0x8] sm:$0xc0]  ;;  %v5998_v28 = vpack.i.bf16 %v2399_v30, %v2405_v5  ;;  %v2806_v32 = vrot.slane %v2760_v14, 6  ;;  %v5333_v42 = vpack.c.bf16 %v6711_v47, %v6706_v29 }
 0x11c   : > { %v6734_v8 = vld [vmem:[#allocation2 + $0x10] sm:$0xc0]  ;;  %5994 = vrot.lane.b32.xlu1 %v5993_v49, %s6042_s24  ;;  %v6760_v39 = vld [vmem:[%s8726_s3 + $0x500] sm:$0xff]  ;;  %v6765_v55 = vld [vmem:[%s8726_s3 + $0x508] sm:$0xff]  ;;  %v5335_v45 = vpack.c.bf16 %v6725_v1, %v6720_v62  ;;  %v6003_v47 = vpack.i.bf16 %v2670_v18, %v2533_v56  ;;  %v2536_v60 = vsel %vm1537_vm10, %v2534_v22, %v2535_v25 }
 0x11d   : > { %5324 = vmatpush3.bf16.msra.mxu1 %v5323_v9  ;;  %v6755_v9 = vld [vmem:[%s8726_s3 + $0x588] sm:$0xff]  ;;  %v6771_v26 = vld [vmem:[#allocation2] sm:$0xf8]  ;;  %v6773_v27 = vld [vmem:[#allocation2 + $0x18] sm:$0x1]  ;;  %v2805_v31 = vrot.slane %v6734_v8, 6  ;;  %v2539_v57 = vsel %vm1537_vm10, %v2537_v11, %v2538_v15 }
 0x11e   : > { %5326 = vmatprep.subr.bf16.mxu1 %v5325_v23  ;;  %5360 = vmatpush3.bf16.msra.mxu0 %v5359_v17  ;;  %v2803_v23 = vrot.slane %v6736_v10, 6  ;;  %v6784_v34 = vld [vmem:[%s8726_s3 + $0x480] sm:$0xff]  ;;  %v6789_v35 = vld [vmem:[%s8726_s3 + $0x488] sm:$0xff]  ;;  %v5988_v17 = vpack.i.bf16 %v2402_v48, %v2269_v33  ;;  %v2623_v46 = vld [vmem:[#allocation2 + $0x10] sm:$0xe0]  ;;  %v2802_v33 = vrot.slane %v2756_v40, 6  ;;  %v5401_v61 = vpack.c.bf16 %v6755_v9, %v6750_v16 }
 0x11f   : > { %5979 = vrot.lane.b32.xlu0 %v5978_v3, %s6042_s24  ;;  %v6794_v43 = vld [vmem:[%s8726_s3 + $0x400] sm:$0xff]  ;;  %v6799_v44 = vld [vmem:[%s8726_s3 + $0x408] sm:$0xff]  ;;  %5362 = vmatprep.subr.bf16.mxu0 %v5361_v37  ;;  %v6809_v49 = vld [vmem:[#allocation2 + $0x18] sm:$0x7]  ;;  %v1417_v37 = vrot.slane %v6771_v26, 3  ;;  %v1418_v54 = vrot.slane %v6773_v27, 3  ;;  %v5403_v3 = vpack.c.bf16 %v6765_v55, %v6760_v39  ;;  %v2807_v12 = vsel %vm1779_vm12, %v2805_v31, %v2806_v32 }
 0x120   : > { %v2626_v53 = vld [vmem:[#allocation2 + $0x28] sm:$0x7]  ;;  %5999 = vrot.lane.b32.xlu1 %v5998_v28, %s6042_s24  ;;  %v6818_v58 = vld [vmem:[#allocation2 + $0x20] sm:$0x7]  ;;  %v6823_v59 = vld [vmem:[%s8726_s3 + $0x590] sm:$0xff]  ;;  %v2671_v14 = vrot.slane %v2623_v46, 5  ;;  %v6008_v63 = vpack.i.bf16 %v2539_v57, %v2536_v60  ;;  %v2804_v0 = vsel %vm1779_vm12, %v2802_v33, %v2803_v23  ;;  %v5371_v11 = vpack.c.bf16 %v6799_v44, %v6794_v43 }
 0x121   : > { %5328 = vmatpush3.bf16.msra.mxu1 %v5327_v24  ;;  %v6828_v51 = vld [vmem:[%s8726_s3 + $0x598] sm:$0xff]  ;;  %v6833_v52 = vld [vmem:[%s8726_s3 + $0x510] sm:$0xff]  ;;  %v2621_v5 = vld [vmem:[#allocation2] sm:$0xe0]  ;;  %v2672_v30 = vrot.slane %v2626_v53, 5  ;;  %v1663_v21 = vrot.slane %v6818_v58, 5  ;;  %v6023_v22 = vpack.i.bf16 %v2807_v12, %v2804_v0 }
 0x122   : > { %v6838_v24 = vld [vmem:[%s8726_s3 + $0x518] sm:$0xff]  ;;  %v6843_v29 = vld [vmem:[%s8726_s3 + $0x490] sm:$0xff]  ;;  %5330 = vmatprep.subr.bf16.mxu1 %v5329_v50  ;;  %v2894_v10 = vld [vmem:[#allocation2 + $0x28] sm:$0x1f]  ;;  %5364 = vmatpush3.bf16.msra.mxu0 %v5363_v38  ;;  %v2666_v50 = vrot.slane %v6809_v49, 5  ;;  %v5369_v38 = vpack.c.bf16 %v6789_v35, %v6784_v34  ;;  %v5405_v26 = vpack.c.bf16 %v6828_v51, %v6823_v59  ;;  %v1419_v35 = vsel %vm1416_vm7, %v1417_v37, %v1418_v54 }
 0x123   : > { %v2891_v8 = vld [vmem:[#allocation2 + $0x10] sm:$0x80]  ;;  %5989 = vrot.lane.b32.xlu0 %v5988_v17, %s6042_s24  ;;  %v1618_v13 = vld [vmem:[#allocation2 + $0x8] sm:$0xe0]  ;;  %v6862_v48 = vld [vmem:[%s8726_s3 + $0x498] sm:$0xff]  ;;  %5366 = vmatprep.subr.bf16.mxu0 %v5365_v7  ;;  %v2665_v7 = vrot.slane %v2621_v5, 5  ;;  %v5407_v27 = vpack.c.bf16 %v6838_v24, %v6833_v52  ;;  %v2673_v28 = vsel %vm1658_vm11, %v2671_v14, %v2672_v30 }
 0x124   : > { %v2892_v15 = vld [vmem:[#allocation2 + $0x18] sm:$0x1f]  ;;  %v2893_v9 = vld [vmem:[#allocation2 + $0x20] sm:$0x1f]  ;;  %6004 = vrot.lane.b32.xlu1 %v6003_v47, %s6042_s24  ;;  %v2939_v56 = vrot.slane %v2891_v8, 7  ;;  %v2940_v18 = vrot.slane %v2894_v10, 7  ;;  %v5373_v19 = vpack.c.bf16 %v6862_v48, %v6843_v29 }
 0x125   : > { %v2758_v16 = vld [vmem:[#allocation2 + $0x18] sm:$0xf]  ;;  %5332 = vmatpush3.bf16.msra.mxu1 %v5331_v6  ;;  %v1263_v36 = vld [vmem:[#allocation2] sm:$0xfc]  ;;  %v1499_v40 = vld [vmem:[#allocation2 + $0x20] sm:$0x3]  ;;  %v2667_v44 = vsel %vm1658_vm11, %v2665_v7, %v2666_v50 }
 0x126   : > { %5334 = vmatprep.subr.bf16.mxu1 %v5333_v42  ;;  %v2889_v25 = vld [vmem:[#allocation2] sm:$0x80]  ;;  %v2890_v6 = vld [vmem:[#allocation2 + $0x8] sm:$0x80]  ;;  %5368 = vmatpush3.bf16.msra.mxu0 %v5367_v41  ;;  %v2934_v31 = vrot.slane %v2892_v15, 7  ;;  %v2800_v32 = vrot.slane %v2758_v16, 6  ;;  %v2941_v42 = vsel %vm1900_vm13, %v2939_v56, %v2940_v18  ;;  %v6013_v1 = vpack.i.bf16 %v2667_v44, %v2673_v28 }
 0x127   : > { %v2755_v20 = vld [vmem:[#allocation2] sm:$0xc0]  ;;  %6009 = vrot.lane.b32.xlu0 %v6008_v63, %s6042_s24  ;;  %v1497_v23 = vld [vmem:[#allocation2 + $0x8] sm:$0xf0]  ;;  %v2937_v34 = vrot.slane %v2893_v9, 7  ;;  %5402 = vmatprep.subr.bf16.mxu0 %v5401_v61  ;;  %v1662_v43 = vrot.slane %v1618_v13, 5 }
 0x128   : > { %v1542_v17 = vrot.slane %v1499_v40, 4  ;;  %6024 = vrot.lane.b32.xlu1 %v6023_v22, %s6042_s24  ;;  %v2933_v41 = vrot.slane %v2889_v25, 7  ;;  %v2799_v46 = vrot.slane %v2755_v20, 6  ;;  %v2936_v49 = vrot.slane %v2890_v6, 7  ;;  %v3974_v53 = vld [vmem:[%s8726_s3 + $0x5a0] sm:$0xff]  ;;  %v3975_v57 = vld [vmem:[%s8726_s3 + $0x5a8] sm:$0xff] }
 0x129   : > { %5336 = vmatpush3.bf16.msra.mxu1 %v5335_v45  ;;  %1490 = vmatmul.mubr.f32.vlgmr.msra.gmra.mrb[6].mxu0 %v1419_v35  ;;  %v1664_v33 = vsel %vm1658_vm11, %v1662_v43, %v1663_v21  ;;  %v1300_v62 = vrot.slane %v1263_v36, 2  ;;  %v1541_v45 = vrot.slane %v1497_v23, 4  ;;  %v3924_v37 = vld [vmem:[%s8726_s3 + $0x410] sm:$0xff]  ;;  %v3925_v54 = vld [vmem:[%s8726_s3 + $0x418] sm:$0xff]  ;;  %v3942_v52 = vld [vmem:[%s8726_s3 + $0x4a0] sm:$0xff]  ;;  %v5409_v29 = vpack.c.bf16 %v3975_v57, %v3974_v53 }
 0x12a   : > { %5370 = vmatprep.subr.bf16.mxu1 %v5369_v38  ;;  %5404 = vmatpush3.bf16.msra.mxu0 %v5403_v3  ;;  %v2935_v58 = vsel %vm1900_vm13, %v2933_v41, %v2934_v31  ;;  %v2801_v59 = vsel %vm1779_vm12, %v2799_v46, %v2800_v32  ;;  %v2938_v51 = vsel %vm1900_vm13, %v2936_v49, %v2937_v34  ;;  %v3943_v24 = vld [vmem:[%s8726_s3 + $0x4a8] sm:$0xff]  ;;  %v3958_v47 = vld [vmem:[%s8726_s3 + $0x520] sm:$0xff]  ;;  %v3976_v3 = vld [vmem:[%s8726_s3 + $0x5b0] sm:$0xff] }
 0x12b   : > { %1731 = vmatprep.mubr.f32.mxu0 %v1664_v33  ;;  %6014 = vrot.lane.b32.xlu0 %v6013_v1, %s6042_s24  ;;  %v1543_v39 = vsel %vm1537_vm10, %v1541_v45, %v1542_v17  ;;  %v6028_v55 = vpack.i.bf16 %v2935_v58, %v2941_v42  ;;  %v3959_v60 = vld [vmem:[%s8726_s3 + $0x528] sm:$0xff]  ;;  %v5375_v61 = vpack.c.bf16 %v3925_v54, %v3924_v37  ;;  %v3977_v5 = vld [vmem:[%s8726_s3 + $0x5b8] sm:$0xff]  ;;  %v3926_v12 = vld [vmem:[%s8726_s3 + $0x420] sm:$0xff] }
 0x12c   : > { %1369 = vmatmul.mubr.f32.vlgmr.msra.gmra.mrb[8].mxu1 %v1300_v62  ;;  %5406 = vmatprep.subr.bf16.mxu0 %v5405_v26  ;;  %v6018_v8 = vpack.i.bf16 %v2938_v51, %v2801_v59  ;;  %v5377_v10 = vpack.c.bf16 %v3943_v24, %v3942_v52  ;;  %v3927_v13 = vld [vmem:[%s8726_s3 + $0x428] sm:$0xff]  ;;  %v5411_v50 = vpack.c.bf16 %v3959_v60, %v3958_v47  ;;  %v3944_v14 = vld [vmem:[%s8726_s3 + $0x4b0] sm:$0xff]  ;;  %v3945_v30 = vld [vmem:[%s8726_s3 + $0x4b8] sm:$0xff] }
 0x12d   : > { %5372 = vmatpush3.bf16.msra.mxu1 %v5371_v11  ;;  %1610 = vmatprep.mubr.f32.mxu1 %v1543_v39  ;;  %v5413_v48 = vpack.c.bf16 %v3977_v5, %v3976_v3  ;;  %v3960_v63 = vld [vmem:[%s8726_s3 + $0x530] sm:$0xff]  ;;  %v3961_v0 = vld [vmem:[%s8726_s3 + $0x538] sm:$0xff]  ;;  %v5379_v38 = vpack.c.bf16 %v3927_v13, %v3926_v12  ;;  %v3978_v11 = vld [vmem:[%s8726_s3 + $0x5c0] sm:$0xff]  ;;  %v5381_v16 = vpack.c.bf16 %v3945_v30, %v3944_v14 }
 0x12e   : > { %6029 = vrot.lane.b32.xlu1 %v6028_v55, %s6042_s24  ;;  %5408 = vmatpush3.bf16.msra.mxu0 %v5407_v27  ;;  %v3979_v15 = vld [vmem:[%s8726_s3 + $0x5c8] sm:$0xff]  ;;  %v3928_v9 = vld [vmem:[%s8726_s3 + $0x430] sm:$0xff]  ;;  %v3929_v21 = vld [vmem:[%s8726_s3 + $0x438] sm:$0xff]  ;;  %v5415_v36 = vpack.c.bf16 %v3961_v0, %v3960_v63 }
 0x12f   : > { %5374 = vmatprep.subr.bf16.mxu1 %v5373_v19  ;;  %6019 = vrot.lane.b32.xlu0 %v6018_v8, %s6042_s24  ;;  %v3946_v7 = vld [vmem:[%s8726_s3 + $0x4c0] sm:$0xff]  ;;  %v3947_v40 = vld [vmem:[%s8726_s3 + $0x4c8] sm:$0xff]  ;;  %v5417_v56 = vpack.c.bf16 %v3979_v15, %v3978_v11  ;;  %v5383_v25 = vpack.c.bf16 %v3929_v21, %v3928_v9  ;;  %v3980_v26 = vld [vmem:[%s8726_s3 + $0x5d0] sm:$0xff] }
 0x130   : > { %5410 = vmatprep.subr.bf16.mxu0 %v5409_v29  ;;  %v3962_v18 = vld [vmem:[%s8726_s3 + $0x540] sm:$0xff]  ;;  %v3963_v22 = vld [vmem:[%s8726_s3 + $0x548] sm:$0xff]  ;;  %v3981_v27 = vld [vmem:[%s8726_s3 + $0x5d8] sm:$0xff]  ;;  %v5385_v19 = vpack.c.bf16 %v3947_v40, %v3946_v7 }
 0x131   : > { %5376 = vmatpush3.bf16.msra.mxu1 %v5375_v61  ;;  %v3930_v20 = vld [vmem:[%s8726_s3 + $0x440] sm:$0xff]  ;;  %v3931_v6 = vld [vmem:[%s8726_s3 + $0x448] sm:$0xff]  ;;  %v5419_v28 = vpack.c.bf16 %v3963_v22, %v3962_v18  ;;  %v3948_v23 = vld [vmem:[%s8726_s3 + $0x4d0] sm:$0xff]  ;;  %v5421_v32 = vpack.c.bf16 %v3981_v27, %v3980_v26 }
 0x132   : > { %5378 = vmatprep.subr.bf16.mxu1 %v5377_v10  ;;  %5412 = vmatpush3.bf16.msra.mxu0 %v5411_v50  ;;  %v3949_v31 = vld [vmem:[%s8726_s3 + $0x4d8] sm:$0xff]  ;;  %v3964_v34 = vld [vmem:[%s8726_s3 + $0x550] sm:$0xff]  ;;  %v5387_v43 = vpack.c.bf16 %v3931_v6, %v3930_v20  ;;  %v3982_v44 = vld [vmem:[%s8726_s3 + $0x5e0] sm:$0xff] }
 0x133   : > { %5414 = vmatprep.subr.bf16.mxu0 %v5413_v48  ;;  %v3965_v35 = vld [vmem:[%s8726_s3 + $0x558] sm:$0xff]  ;;  %v3983_v17 = vld [vmem:[%s8726_s3 + $0x5e8] sm:$0xff]  ;;  %v5389_v41 = vpack.c.bf16 %v3949_v31, %v3948_v23  ;;  %v3932_v42 = vld [vmem:[%s8726_s3 + $0x450] sm:$0xff] }
 0x134   : > { %v3933_v46 = vld [vmem:[%s8726_s3 + $0x458] sm:$0xff]  ;;  %v5423_v49 = vpack.c.bf16 %v3965_v35, %v3964_v34  ;;  %v3950_v53 = vld [vmem:[%s8726_s3 + $0x4e0] sm:$0xff]  ;;  %v3951_v57 = vld [vmem:[%s8726_s3 + $0x4e8] sm:$0xff]  ;;  %v5425_v33 = vpack.c.bf16 %v3983_v17, %v3982_v44 }
 0x135   : > { %5380 = vmatpush3.bf16.msra.mxu1 %v5379_v38  ;;  %v3966_v62 = vld [vmem:[%s8726_s3 + $0x560] sm:$0xff]  ;;  %v3967_v1 = vld [vmem:[%s8726_s3 + $0x568] sm:$0xff]  ;;  %v5391_v45 = vpack.c.bf16 %v3933_v46, %v3932_v42  ;;  %v3984_v37 = vld [vmem:[%s8726_s3 + $0x5f0] sm:$0xff]  ;;  %v5393_v58 = vpack.c.bf16 %v3951_v57, %v3950_v53 }
 0x136   : > { %5382 = vmatprep.subr.bf16.mxu1 %v5381_v16  ;;  %5416 = vmatpush3.bf16.msra.mxu0 %v5415_v36  ;;  %v3985_v54 = vld [vmem:[%s8726_s3 + $0x5f8] sm:$0xff]  ;;  %v3934_v59 = vld [vmem:[%s8726_s3 + $0x460] sm:$0xff]  ;;  %v3935_v51 = vld [vmem:[%s8726_s3 + $0x468] sm:$0xff]  ;;  %v5427_v52 = vpack.c.bf16 %v3967_v1, %v3966_v62 }
 0x137   : > { %5418 = vmatprep.subr.bf16.mxu0 %v5417_v56  ;;  %v3952_v24 = vld [vmem:[%s8726_s3 + $0x4f0] sm:$0xff]  ;;  %v3953_v39 = vld [vmem:[%s8726_s3 + $0x4f8] sm:$0xff]  ;;  %v5429_v55 = vpack.c.bf16 %v3985_v54, %v3984_v37  ;;  %v5395_v61 = vpack.c.bf16 %v3935_v51, %v3934_v59  ;;  %v4034_v5 = vld [vmem:[%s8726_s3 + $0x780] sm:$0xff] }
 0x138   : > { %v3968_v29 = vld [vmem:[%s8726_s3 + $0x570] sm:$0xff]  ;;  %v3969_v47 = vld [vmem:[%s8726_s3 + $0x578] sm:$0xff]  ;;  %v4035_v8 = vld [vmem:[%s8726_s3 + $0x788] sm:$0xff]  ;;  %v5397_v10 = vpack.c.bf16 %v3953_v39, %v3952_v24 }
 0x139   : > { %5384 = vmatpush3.bf16.msra.mxu1 %v5383_v25  ;;  %v3936_v60 = vld [vmem:[%s8726_s3 + $0x470] sm:$0xff]  ;;  %v3937_v3 = vld [vmem:[%s8726_s3 + $0x478] sm:$0xff]  ;;  %v4018_v13 = vld [vmem:[%s8726_s3 + $0x700] sm:$0xff]  ;;  %v5431_v14 = vpack.c.bf16 %v3969_v47, %v3968_v29  ;;  %v5465_v38 = vpack.c.bf16 %v4035_v8, %v4034_v5 }
 0x13a   : > { %5386 = vmatprep.subr.bf16.mxu1 %v5385_v19  ;;  %5420 = vmatpush3.bf16.msra.mxu0 %v5419_v28  ;;  %v1619_v12 = vld [vmem:[#allocation2 + $0x18] sm:$0x7]  ;;  %v4019_v50 = vld [vmem:[%s8726_s3 + $0x708] sm:$0xff]  ;;  %v1862_v30 = vld [vmem:[#allocation2 + $0x20] sm:$0x1f]  ;;  %v5399_v16 = vpack.c.bf16 %v3937_v3, %v3936_v60 }
 0x13b   : > { %5422 = vmatprep.subr.bf16.mxu0 %v5421_v32  ;;  %v4002_v48 = vld [vmem:[%s8726_s3 + $0x680] sm:$0xff]  ;;  %v4003_v63 = vld [vmem:[%s8726_s3 + $0x688] sm:$0xff]  ;;  %v1498_v11 = vld [vmem:[#allocation2 + $0x18] sm:$0x3]  ;;  %v1660_v9 = vrot.slane %v1619_v12, 5  ;;  %v1905_v40 = vrot.slane %v1862_v30, 7  ;;  %v5467_v27 = vpack.c.bf16 %v4019_v50, %v4018_v13 }
 0x13c   : > { %v1617_v0 = vld [vmem:[#allocation2] sm:$0xe0]  ;;  %v4036_v15 = vld [vmem:[%s8726_s3 + $0x790] sm:$0xff]  ;;  %v1860_v21 = vld [vmem:[#allocation2 + $0x8] sm:$0x80]  ;;  %v5433_v18 = vpack.c.bf16 %v4003_v63, %v4002_v48  ;;  %v1539_v19 = vrot.slane %v1498_v11, 4 }
 0x13d   : > { %5388 = vmatpush3.bf16.msra.mxu1 %v5387_v43  ;;  %v1741_v36 = vld [vmem:[#allocation2 + $0x20] sm:$0xf]  ;;  %v4037_v7 = vld [vmem:[%s8726_s3 + $0x798] sm:$0xff]  ;;  %v1496_v56 = vld [vmem:[#allocation2] sm:$0xf0]  ;;  %v1659_v26 = vrot.slane %v1617_v0, 5 }
 0x13e   : > { %5390 = vmatprep.subr.bf16.mxu1 %v5389_v41  ;;  %5424 = vmatpush3.bf16.msra.mxu0 %v5423_v49  ;;  %v3986_v22 = vld [vmem:[%s8726_s3 + $0x600] sm:$0xff]  ;;  %v3987_v25 = vld [vmem:[%s8726_s3 + $0x608] sm:$0xff]  ;;  %v4004_v6 = vld [vmem:[%s8726_s3 + $0x690] sm:$0xff]  ;;  %v1904_v23 = vrot.slane %v1860_v21, 7  ;;  %v1784_v31 = vrot.slane %v1741_v36, 6  ;;  %v5469_v32 = vpack.c.bf16 %v4037_v7, %v4036_v15  ;;  %v1538_v44 = vrot.slane %v1496_v56, 4 }
 0x13f   : > { %5426 = vmatprep.subr.bf16.mxu0 %v5425_v33  ;;  %v1739_v20 = vld [vmem:[#allocation2 + $0x8] sm:$0xc0]  ;;  %v4005_v28 = vld [vmem:[%s8726_s3 + $0x698] sm:$0xff]  ;;  %v4020_v34 = vld [vmem:[%s8726_s3 + $0x710] sm:$0xff]  ;;  %v1661_v43 = vsel %vm1658_vm11, %v1659_v26, %v1660_v9  ;;  %v5435_v17 = vpack.c.bf16 %v3987_v25, %v3986_v22 }
 0x140   : > { %v4021_v35 = vld [vmem:[%s8726_s3 + $0x718] sm:$0xff]  ;;  %v4038_v41 = vld [vmem:[%s8726_s3 + $0x7a0] sm:$0xff]  ;;  %v4039_v42 = vld [vmem:[%s8726_s3 + $0x7a8] sm:$0xff]  ;;  %v1906_v46 = vsel %vm1900_vm13, %v1904_v23, %v1905_v40  ;;  %v1783_v49 = vrot.slane %v1739_v20, 6  ;;  %v5437_v53 = vpack.c.bf16 %v4005_v28, %v4004_v6  ;;  %v1540_v62 = vsel %vm1537_vm10, %v1538_v44, %v1539_v19 }
 0x141   : > { %5392 = vmatpush3.bf16.msra.mxu1 %v5391_v45  ;;  %v3988_v57 = vld [vmem:[%s8726_s3 + $0x610] sm:$0xff]  ;;  %v3989_v33 = vld [vmem:[%s8726_s3 + $0x618] sm:$0xff]  ;;  %v5471_v1 = vpack.c.bf16 %v4021_v35, %v4020_v34  ;;  %v4006_v45 = vld [vmem:[%s8726_s3 + $0x6a0] sm:$0xff] }
 0x142   : > { %5394 = vmatprep.subr.bf16.mxu1 %v5393_v58  ;;  %5428 = vmatpush3.bf16.msra.mxu0 %v5427_v52  ;;  %v4007_v37 = vld [vmem:[%s8726_s3 + $0x6a8] sm:$0xff]  ;;  %v1785_v54 = vsel %vm1779_vm12, %v1783_v49, %v1784_v31  ;;  %v5473_v58 = vpack.c.bf16 %v4039_v42, %v4038_v41  ;;  %v4022_v59 = vld [vmem:[%s8726_s3 + $0x720] sm:$0xff]  ;;  %v5439_v52 = vpack.c.bf16 %v3989_v33, %v3988_v57  ;;  %v4040_v24 = vld [vmem:[%s8726_s3 + $0x7b0] sm:$0xff] }
 0x143   : > { %5430 = vmatprep.subr.bf16.mxu0 %v5429_v55  ;;  %v4023_v51 = vld [vmem:[%s8726_s3 + $0x728] sm:$0xff]  ;;  %v4041_v39 = vld [vmem:[%s8726_s3 + $0x7b8] sm:$0xff]  ;;  %v5441_v55 = vpack.c.bf16 %v4007_v37, %v4006_v45  ;;  %v3990_v29 = vld [vmem:[%s8726_s3 + $0x620] sm:$0xff] }
 0x144   : > { %v3991_v47 = vld [vmem:[%s8726_s3 + $0x628] sm:$0xff]  ;;  %v5475_v60 = vpack.c.bf16 %v4023_v51, %v4022_v59  ;;  %v4009_v3 = vld [vmem:[%s8726_s3 + $0x6b8] sm:$0xff]  ;;  %v5477_v5 = vpack.c.bf16 %v4041_v39, %v4040_v24  ;;  %v4024_v8 = vld [vmem:[%s8726_s3 + $0x730] sm:$0xff] }
 0x145   : > { %5396 = vmatpush3.bf16.msra.mxu1 %v5395_v61  ;;  %v4008_v61 = vld [vmem:[%s8726_s3 + $0x6b0] sm:$0xff]  ;;  %v5443_v12 = vpack.c.bf16 %v3991_v47, %v3990_v29  ;;  %v4042_v13 = vld [vmem:[%s8726_s3 + $0x7c0] sm:$0xff]  ;;  %v4043_v50 = vld [vmem:[%s8726_s3 + $0x7c8] sm:$0xff] }
 0x146   : > { %5398 = vmatprep.subr.bf16.mxu1 %v5397_v10  ;;  %5432 = vmatpush3.bf16.msra.mxu0 %v5431_v14  ;;  %v4025_v10 = vld [vmem:[%s8726_s3 + $0x738] sm:$0xff]  ;;  %v5445_v14 = vpack.c.bf16 %v4009_v3, %v4008_v61  ;;  %v3992_v30 = vld [vmem:[%s8726_s3 + $0x630] sm:$0xff]  ;;  %v4010_v0 = vld [vmem:[%s8726_s3 + $0x6c0] sm:$0xff]  ;;  %v5481_v11 = vpack.c.bf16 %v4043_v50, %v4042_v13 }
 0x147   : > { %5466 = vmatprep.subr.bf16.mxu0 %v5465_v38  ;;  %v3993_v48 = vld [vmem:[%s8726_s3 + $0x638] sm:$0xff]  ;;  %v5479_v63 = vpack.c.bf16 %v4025_v10, %v4024_v8  ;;  %v4011_v38 = vld [vmem:[%s8726_s3 + $0x6c8] sm:$0xff]  ;;  %v4026_v15 = vld [vmem:[%s8726_s3 + $0x740] sm:$0xff] }
 0x148   : > { %v5447_v9 = vpack.c.bf16 %v3993_v48, %v3992_v30  ;;  %v4044_v21 = vld [vmem:[%s8726_s3 + $0x7d0] sm:$0xff]  ;;  %v4045_v36 = vld [vmem:[%s8726_s3 + $0x7d8] sm:$0xff]  ;;  %v5449_v7 = vpack.c.bf16 %v4011_v38, %v4010_v0  ;;  %v3994_v40 = vld [vmem:[%s8726_s3 + $0x640] sm:$0xff] }
 0x149   : > { %5400 = vmatpush3.bf16.msra.mxu1 %v5399_v16  ;;  %1732 = vmatmul.mubr.f32.vlgmr.msra.gmra.mrb[8].mxu0 %v1661_v43  ;;  %v4027_v16 = vld [vmem:[%s8726_s3 + $0x748] sm:$0xff]  ;;  %v4012_v22 = vld [vmem:[%s8726_s3 + $0x6d0] sm:$0xff]  ;;  %v4013_v25 = vld [vmem:[%s8726_s3 + $0x6d8] sm:$0xff]  ;;  %v5485_v26 = vpack.c.bf16 %v4045_v36, %v4044_v21 }
 0x14a   : > { %5434 = vmatprep.subr.bf16.mxu1 %v5433_v18  ;;  %5468 = vmatpush3.bf16.msra.mxu0 %v5467_v27  ;;  %v3995_v56 = vld [vmem:[%s8726_s3 + $0x648] sm:$0xff]  ;;  %v5483_v18 = vpack.c.bf16 %v4027_v16, %v4026_v15  ;;  %v4028_v27 = vld [vmem:[%s8726_s3 + $0x750] sm:$0xff]  ;;  %v4029_v19 = vld [vmem:[%s8726_s3 + $0x758] sm:$0xff]  ;;  %v5453_v23 = vpack.c.bf16 %v4013_v25, %v4012_v22 }
 0x14b   : > { %1973 = vmatprep.mubr.f32.mxu0 %v1906_v46  ;;  %5470 = vmatprep.subr.bf16.mxu0 %v5469_v32  ;;  %v5451_v20 = vpack.c.bf16 %v3995_v56, %v3994_v40  ;;  %v4046_v6 = vld [vmem:[%s8726_s3 + $0x7e0] sm:$0xff]  ;;  %v4047_v28 = vld [vmem:[%s8726_s3 + $0x7e8] sm:$0xff]  ;;  %v3996_v31 = vld [vmem:[%s8726_s3 + $0x650] sm:$0xff]  ;;  %v5487_v34 = vpack.c.bf16 %v4029_v19, %v4028_v27 }
 0x14c   : > { %1611 = vmatmul.mubr.f32.vlgmr.msra.gmra.mrb[10].mxu1 %v1540_v62  ;;  %v3997_v32 = vld [vmem:[%s8726_s3 + $0x658] sm:$0xff]  ;;  %v4014_v35 = vld [vmem:[%s8726_s3 + $0x6e0] sm:$0xff]  ;;  %v4015_v43 = vld [vmem:[%s8726_s3 + $0x6e8] sm:$0xff]  ;;  %v5489_v44 = vpack.c.bf16 %v4047_v28, %v4046_v6 }
 0x14d   : > { %5436 = vmatpush3.bf16.msra.mxu1 %v5435_v17  ;;  %1852 = vmatprep.mubr.f32.mxu1 %v1785_v54  ;;  %v4030_v17 = vld [vmem:[%s8726_s3 + $0x760] sm:$0xff]  ;;  %v4031_v41 = vld [vmem:[%s8726_s3 + $0x768] sm:$0xff]  ;;  %v5455_v42 = vpack.c.bf16 %v3997_v32, %v3996_v31  ;;  %v4048_v46 = vld [vmem:[%s8726_s3 + $0x7f0] sm:$0xff] }
 0x14e   : > { %5438 = vmatprep.subr.bf16.mxu1 %v5437_v53  ;;  %5472 = vmatpush3.bf16.msra.mxu0 %v5471_v1  ;;  %v4049_v49 = vld [vmem:[%s8726_s3 + $0x7f8] sm:$0xff]  ;;  %v5457_v53 = vpack.c.bf16 %v4015_v43, %v4014_v35  ;;  %v3998_v57 = vld [vmem:[%s8726_s3 + $0x660] sm:$0xff]  ;;  %v3999_v33 = vld [vmem:[%s8726_s3 + $0x668] sm:$0xff]  ;;  %v5491_v62 = vpack.c.bf16 %v4031_v41, %v4030_v17 }
 0x14f   : > { %5474 = vmatprep.subr.bf16.mxu0 %v5473_v58  ;;  %v4016_v1 = vld [vmem:[%s8726_s3 + $0x6f0] sm:$0xff]  ;;  %v4017_v45 = vld [vmem:[%s8726_s3 + $0x6f8] sm:$0xff]  ;;  %v5493_v37 = vpack.c.bf16 %v4049_v49, %v4048_v46  ;;  %v5459_v59 = vpack.c.bf16 %v3999_v33, %v3998_v57  ;;  %v2011_v51 = vld [vmem:[%s8726_s3 + $0x80] sm:$0xff] }
 0x150   : > { %v4032_v54 = vld [vmem:[%s8726_s3 + $0x770] sm:$0xff]  ;;  %v4033_v58 = vld [vmem:[%s8726_s3 + $0x778] sm:$0xff]  ;;  %v5461_v24 = vpack.c.bf16 %v4017_v45, %v4016_v1  ;;  %v4068_v61 = vld [vmem:[%s8726_s3 + $0x188] sm:$0xff] }
 0x151   : > { %5440 = vmatpush3.bf16.msra.mxu1 %v5439_v52  ;;  %v2012_v52 = vld [vmem:[%s8726_s3 + $0x88] sm:$0xff]  ;;  %v4000_v39 = vld [vmem:[%s8726_s3 + $0x670] sm:$0xff]  ;;  %v1861_v29 = vld [vmem:[#allocation2 + $0x18] sm:$0x1f]  ;;  %v5495_v47 = vpack.c.bf16 %v4033_v58, %v4032_v54 }
 0x152   : > { %5442 = vmatprep.subr.bf16.mxu1 %v5441_v55  ;;  %5476 = vmatpush3.bf16.msra.mxu0 %v5475_v60  ;;  %v4001_v55 = vld [vmem:[%s8726_s3 + $0x678] sm:$0xff]  ;;  %v4067_v60 = vld [vmem:[%s8726_s3 + $0x180] sm:$0xff]  ;;  %v5529_v10 = vpack.c.bf16 %v2012_v52, %v2011_v51  ;;  %v1902_v50 = vrot.slane %v1861_v29, 7  ;;  %v4052_v38 = vld [vmem:[%s8726_s3 + $0x108] sm:$0xff] }
 0x153   : > { %5478 = vmatprep.subr.bf16.mxu0 %v5477_v5  ;;  %v1995_v3 = vld [vmem:[%s8726_s3] sm:$0xff]  ;;  %v1740_v8 = vld [vmem:[#allocation2 + $0x18] sm:$0xf]  ;;  %v5463_v13 = vpack.c.bf16 %v4001_v55, %v4000_v39  ;;  %v4053_v19 = vld [vmem:[%s8726_s3 + $0x110] sm:$0xff] }
 0x154   : > { %v1859_v5 = vld [vmem:[#allocation2] sm:$0x80]  ;;  %v2014_v30 = vld [vmem:[%s8726_s3 + $0x98] sm:$0xff]  ;;  %v1781_v15 = vrot.slane %v1740_v8, 6  ;;  %v4072_v31 = vld [vmem:[%s8726_s3 + $0x1a8] sm:$0xff] }
 0x155   : > { %5444 = vmatpush3.bf16.msra.mxu1 %v5443_v12  ;;  %v1996_v12 = vld [vmem:[%s8726_s3 + $0x8] sm:$0xff]  ;;  %v1738_v48 = vld [vmem:[#allocation2] sm:$0xc0]  ;;  %v4070_v21 = vld [vmem:[%s8726_s3 + $0x198] sm:$0xff] }
 0x156   : > { %5446 = vmatprep.subr.bf16.mxu1 %v5445_v14  ;;  %5480 = vmatpush3.bf16.msra.mxu0 %v5479_v63  ;;  %v2013_v14 = vld [vmem:[%s8726_s3 + $0x90] sm:$0xff]  ;;  %v5497_v63 = vpack.c.bf16 %v4068_v61, %v4067_v60  ;;  %v4051_v0 = vld [vmem:[%s8726_s3 + $0x100] sm:$0xff]  ;;  %v5531_v16 = vpack.c.bf16 %v1996_v12, %v1995_v3  ;;  %v1998_v40 = vld [vmem:[%s8726_s3 + $0x18] sm:$0xff] }
 0x157   : > { %5482 = vmatprep.subr.bf16.mxu0 %v5481_v11  ;;  %v1901_v11 = vrot.slane %v1859_v5, 7  ;;  %v5533_v36 = vpack.c.bf16 %v2014_v30, %v2013_v14  ;;  %v5499_v22 = vpack.c.bf16 %v4052_v38, %v4051_v0  ;;  %v2015_v25 = vld [vmem:[%s8726_s3 + $0xa0] sm:$0xff]  ;;  %v2000_v35 = vld [vmem:[%s8726_s3 + $0x28] sm:$0xff]  ;;  %v2018_v17 = vld [vmem:[%s8726_s3 + $0xb8] sm:$0xff] }
 0x158   : > { %v4056_v46 = vld [vmem:[%s8726_s3 + $0x128] sm:$0xff]  ;;  %v4074_v57 = vld [vmem:[%s8726_s3 + $0x1b8] sm:$0xff]  ;;  %v2003_v29 = vld [vmem:[%s8726_s3 + $0x40] sm:$0xff] }
 0x159   : > { %5448 = vmatpush3.bf16.msra.mxu1 %v5447_v9  ;;  %v4069_v9 = vld [vmem:[%s8726_s3 + $0x190] sm:$0xff]  ;;  %v1903_v56 = vsel %vm1900_vm13, %v1901_v11, %v1902_v50  ;;  %v2002_v1 = vld [vmem:[%s8726_s3 + $0x38] sm:$0xff]  ;;  %v2020_v54 = vld [vmem:[%s8726_s3 + $0xc8] sm:$0xff] }
 0x15a   : > { %5450 = vmatprep.subr.bf16.mxu1 %v5449_v7  ;;  %5484 = vmatpush3.bf16.msra.mxu0 %v5483_v18  ;;  %v1997_v7 = vld [vmem:[%s8726_s3 + $0x10] sm:$0xff]  ;;  %v1780_v18 = vrot.slane %v1738_v48, 6  ;;  %v5501_v27 = vpack.c.bf16 %v4070_v21, %v4069_v9  ;;  %v4058_v51 = vld [vmem:[%s8726_s3 + $0x138] sm:$0xff]  ;;  %v4076_v39 = vld [vmem:[%s8726_s3 + $0x1c8] sm:$0xff] }
 0x15b   : > { %5486 = vmatprep.subr.bf16.mxu0 %v5485_v26  ;;  %v2016_v26 = vld [vmem:[%s8726_s3 + $0xa8] sm:$0xff]  ;;  %v5535_v28 = vpack.c.bf16 %v1998_v40, %v1997_v7  ;;  %v2021_v61 = vld [vmem:[%s8726_s3 + $0xd0] sm:$0xff]  ;;  %v2022_v3 = vld [vmem:[%s8726_s3 + $0xd8] sm:$0xff] }
 0x15c   : > { %v1782_v6 = vsel %vm1779_vm12, %v1780_v18, %v1781_v15  ;;  %v5537_v32 = vpack.c.bf16 %v2016_v26, %v2015_v25  ;;  %v4059_v8 = vld [vmem:[%s8726_s3 + $0x140] sm:$0xff]  ;;  %v4078_v50 = vld [vmem:[%s8726_s3 + $0x1d8] sm:$0xff]  ;;  %v5549_v14 = vpack.c.bf16 %v2022_v3, %v2021_v61  ;;  %v2005_v30 = vld [vmem:[%s8726_s3 + $0x50] sm:$0xff] }
 0x15d   : > { %5452 = vmatpush3.bf16.msra.mxu1 %v5451_v20  ;;  %v4054_v20 = vld [vmem:[%s8726_s3 + $0x118] sm:$0xff]  ;;  %v2023_v0 = vld [vmem:[%s8726_s3 + $0xe0] sm:$0xff]  ;;  %v2024_v38 = vld [vmem:[%s8726_s3 + $0xe8] sm:$0xff] }
 0x15e   : > { %5454 = vmatprep.subr.bf16.mxu1 %v5453_v23  ;;  %5488 = vmatpush3.bf16.msra.mxu0 %v5487_v34  ;;  %v4071_v23 = vld [vmem:[%s8726_s3 + $0x1a0] sm:$0xff]  ;;  %v5503_v43 = vpack.c.bf16 %v4054_v20, %v4053_v19  ;;  %v2006_v48 = vld [vmem:[%s8726_s3 + $0x58] sm:$0xff]  ;;  %v4061_v15 = vld [vmem:[%s8726_s3 + $0x150] sm:$0xff]  ;;  %v5553_v7 = vpack.c.bf16 %v2024_v38, %v2023_v0 }
 0x15f   : > { %5490 = vmatprep.subr.bf16.mxu0 %v5489_v44  ;;  %v1999_v34 = vld [vmem:[%s8726_s3 + $0x20] sm:$0xff]  ;;  %v2017_v44 = vld [vmem:[%s8726_s3 + $0xb0] sm:$0xff]  ;;  %v5505_v41 = vpack.c.bf16 %v4072_v31, %v4071_v23  ;;  %v5551_v9 = vpack.c.bf16 %v2006_v48, %v2005_v30  ;;  %v2026_v25 = vld [vmem:[%s8726_s3 + $0xf8] sm:$0xff] }
 0x160   : > { %v5539_v49 = vpack.c.bf16 %v2000_v35, %v1999_v34  ;;  %v5541_v33 = vpack.c.bf16 %v2018_v17, %v2017_v44  ;;  %v4079_v21 = vld [vmem:[%s8726_s3 + $0x1e0] sm:$0xff]  ;;  %v4064_v19 = vld [vmem:[%s8726_s3 + $0x168] sm:$0xff]  ;;  %v2009_v31 = vld [vmem:[%s8726_s3 + $0x70] sm:$0xff] }
 0x161   : > { %5456 = vmatpush3.bf16.msra.mxu1 %v5455_v42  ;;  %v4055_v42 = vld [vmem:[%s8726_s3 + $0x120] sm:$0xff]  ;;  %v4065_v17 = vld [vmem:[%s8726_s3 + $0x170] sm:$0xff]  ;;  %v4134_v3 = vld [vmem:[%s8726_s3 + $0x398] sm:$0xff] }
 0x162   : > { %5458 = vmatprep.subr.bf16.mxu1 %v5457_v53  ;;  %5492 = vmatpush3.bf16.msra.mxu0 %v5491_v62  ;;  %v4073_v53 = vld [vmem:[%s8726_s3 + $0x1b0] sm:$0xff]  ;;  %v5507_v45 = vpack.c.bf16 %v4056_v46, %v4055_v42  ;;  %v2007_v40 = vld [vmem:[%s8726_s3 + $0x60] sm:$0xff]  ;;  %v4086_v48 = vld [vmem:[%s8726_s3 + $0x218] sm:$0xff] }
 0x163   : > { %5494 = vmatprep.subr.bf16.mxu0 %v5493_v37  ;;  %v2001_v62 = vld [vmem:[%s8726_s3 + $0x30] sm:$0xff]  ;;  %v2019_v37 = vld [vmem:[%s8726_s3 + $0xc0] sm:$0xff]  ;;  %v5509_v58 = vpack.c.bf16 %v4074_v57, %v4073_v53 }
 0x164   : > { %v5543_v52 = vpack.c.bf16 %v2002_v1, %v2001_v62  ;;  %v5545_v55 = vpack.c.bf16 %v2020_v54, %v2019_v37  ;;  %v4131_v35 = vld [vmem:[%s8726_s3 + $0x380] sm:$0xff]  ;;  %v4133_v61 = vld [vmem:[%s8726_s3 + $0x390] sm:$0xff] }
 0x165   : > { %5460 = vmatpush3.bf16.msra.mxu1 %v5459_v59  ;;  %v4057_v59 = vld [vmem:[%s8726_s3 + $0x130] sm:$0xff]  ;;  %v4099_v46 = vld [vmem:[%s8726_s3 + $0x280] sm:$0xff] }
 0x166   : > { %5462 = vmatprep.subr.bf16.mxu1 %v5461_v24  ;;  %5496 = vmatpush3.bf16.msra.mxu0 %v5495_v47  ;;  %v4075_v24 = vld [vmem:[%s8726_s3 + $0x1c0] sm:$0xff]  ;;  %v2004_v47 = vld [vmem:[%s8726_s3 + $0x48] sm:$0xff]  ;;  %v5511_v60 = vpack.c.bf16 %v4058_v51, %v4057_v59  ;;  %v4085_v30 = vld [vmem:[%s8726_s3 + $0x210] sm:$0xff] }
 0x167   : > { %5530 = vmatprep.subr.bf16.mxu0 %v5529_v10  ;;  %v5513_v5 = vpack.c.bf16 %v4076_v39, %v4075_v24  ;;  %v4060_v10 = vld [vmem:[%s8726_s3 + $0x148] sm:$0xff]  ;;  %v5547_v12 = vpack.c.bf16 %v2004_v47, %v2003_v29  ;;  %v4083_v54 = vld [vmem:[%s8726_s3 + $0x200] sm:$0xff]  ;;  %v4101_v39 = vld [vmem:[%s8726_s3 + $0x290] sm:$0xff] }
 0x168   : > { %v4116_v24 = vld [vmem:[%s8726_s3 + $0x308] sm:$0xff] }
 0x169   : > { %5464 = vmatpush3.bf16.msra.mxu1 %v5463_v13  ;;  %1974 = vmatmul.mubr.f32.vlgmr.msra.gmra.mrb[10].mxu0 %v1903_v56  ;;  %v4077_v13 = vld [vmem:[%s8726_s3 + $0x1d0] sm:$0xff]  ;;  %v2008_v56 = vld [vmem:[%s8726_s3 + $0x68] sm:$0xff] }
 0x16a   : > { %5498 = vmatprep.subr.bf16.mxu1 %v5497_v63  ;;  %5532 = vmatpush3.bf16.msra.mxu0 %v5531_v16  ;;  %v5515_v63 = vpack.c.bf16 %v4060_v10, %v4059_v8  ;;  %v5517_v11 = vpack.c.bf16 %v4078_v50, %v4077_v13  ;;  %v4062_v16 = vld [vmem:[%s8726_s3 + $0x158] sm:$0xff]  ;;  %v5555_v20 = vpack.c.bf16 %v2008_v56, %v2007_v40  ;;  %v4135_v40 = vld [vmem:[%s8726_s3 + $0x3a0] sm:$0xff]  ;;  %v4136_v56 = vld [vmem:[%s8726_s3 + $0x3a8] sm:$0xff] }
 0x16b   : > { %5534 = vmatprep.subr.bf16.mxu0 %v5533_v36  ;;  %v4080_v36 = vld [vmem:[%s8726_s3 + $0x1e8] sm:$0xff]  ;;  %v5519_v18 = vpack.c.bf16 %v4062_v16, %v4061_v15  ;;  %v5597_v15 = vpack.c.bf16 %v4134_v3, %v4133_v61  ;;  %v4118_v16 = vld [vmem:[%s8726_s3 + $0x318] sm:$0xff]  ;;  %v4141_v61 = vld [vmem:[%s8726_s3 + $0x3d0] sm:$0xff] }
 0x16c   : > { %1853 = vmatmul.mubr.f32.vlgmr.msra.gmra.mrb[12].mxu1 %v1782_v6  ;;  %v5521_v26 = vpack.c.bf16 %v4080_v36, %v4079_v21  ;;  %v4081_v6 = vld [vmem:[%s8726_s3 + $0x1f0] sm:$0xff]  ;;  %v4104_v21 = vld [vmem:[%s8726_s3 + $0x2a8] sm:$0xff]  ;;  %v4142_v3 = vld [vmem:[%s8726_s3 + $0x3d8] sm:$0xff] }
 0x16d   : > { %5500 = vmatpush3.bf16.msra.mxu1 %v5499_v22  ;;  %v2025_v22 = vld [vmem:[%s8726_s3 + $0xf0] sm:$0xff] }
 0x16e   : > { %5502 = vmatprep.subr.bf16.mxu1 %v5501_v27  ;;  %5536 = vmatpush3.bf16.msra.mxu0 %v5535_v28  ;;  %v4063_v27 = vld [vmem:[%s8726_s3 + $0x160] sm:$0xff]  ;;  %v4082_v28 = vld [vmem:[%s8726_s3 + $0x1f8] sm:$0xff]  ;;  %v5557_v23 = vpack.c.bf16 %v2026_v25, %v2025_v22 }
 0x16f   : > { %5538 = vmatprep.subr.bf16.mxu0 %v5537_v32  ;;  %v2010_v32 = vld [vmem:[%s8726_s3 + $0x78] sm:$0xff]  ;;  %v5523_v34 = vpack.c.bf16 %v4064_v19, %v4063_v27  ;;  %v5525_v44 = vpack.c.bf16 %v4082_v28, %v4081_v6  ;;  %v4088_v6 = vld [vmem:[%s8726_s3 + $0x228] sm:$0xff]  ;;  %v4119_v28 = vld [vmem:[%s8726_s3 + $0x320] sm:$0xff] }
 0x170   : > { %v5559_v42 = vpack.c.bf16 %v2010_v32, %v2009_v31  ;;  %v5601_v31 = vpack.c.bf16 %v4136_v56, %v4135_v40  ;;  %v4120_v32 = vld [vmem:[%s8726_s3 + $0x328] sm:$0xff]  ;;  %v4127_v56 = vld [vmem:[%s8726_s3 + $0x360] sm:$0xff] }
 0x171   : > { %5504 = vmatpush3.bf16.msra.mxu1 %v5503_v43  ;;  %v4132_v43 = vld [vmem:[%s8726_s3 + $0x388] sm:$0xff] }
 0x172   : > { %5506 = vmatprep.subr.bf16.mxu1 %v5505_v41  ;;  %5540 = vmatpush3.bf16.msra.mxu0 %v5539_v49  ;;  %v4066_v41 = vld [vmem:[%s8726_s3 + $0x178] sm:$0xff]  ;;  %v4100_v49 = vld [vmem:[%s8726_s3 + $0x288] sm:$0xff]  ;;  %v5593_v53 = vpack.c.bf16 %v4132_v43, %v4131_v35  ;;  %v4137_v43 = vld [vmem:[%s8726_s3 + $0x3b0] sm:$0xff] }
 0x173   : > { %5542 = vmatprep.subr.bf16.mxu0 %v5541_v33  ;;  %v5527_v57 = vpack.c.bf16 %v4066_v41, %v4065_v17  ;;  %v5561_v33 = vpack.c.bf16 %v4100_v49, %v4099_v46  ;;  %v4106_v35 = vld [vmem:[%s8726_s3 + $0x2b8] sm:$0xff]  ;;  %v5603_v41 = vpack.c.bf16 %v4120_v32, %v4119_v28  ;;  %v4089_v46 = vld [vmem:[%s8726_s3 + $0x230] sm:$0xff]  ;;  %v4096_v40 = vld [vmem:[%s8726_s3 + $0x268] sm:$0xff] }
 0x174   : > { %v4090_v49 = vld [vmem:[%s8726_s3 + $0x238] sm:$0xff]  ;;  %v4097_v32 = vld [vmem:[%s8726_s3 + $0x270] sm:$0xff] }
 0x175   : > { %5508 = vmatpush3.bf16.msra.mxu1 %v5507_v45 }
 0x176   : > { %5510 = vmatprep.subr.bf16.mxu1 %v5509_v58  ;;  %5544 = vmatpush3.bf16.msra.mxu0 %v5543_v52  ;;  %v4084_v58 = vld [vmem:[%s8726_s3 + $0x208] sm:$0xff]  ;;  %v4115_v52 = vld [vmem:[%s8726_s3 + $0x300] sm:$0xff] }
 0x177   : > { %5546 = vmatprep.subr.bf16.mxu0 %v5545_v55  ;;  %v5563_v47 = vpack.c.bf16 %v4084_v58, %v4083_v54  ;;  %v5575_v54 = vpack.c.bf16 %v4090_v49, %v4089_v46  ;;  %v4196_v46 = vld [vmem:[%s8726_s3 + $0x588] sm:$0xff] }
 0x179   : > { %5512 = vmatpush3.bf16.msra.mxu1 %v5511_v60  ;;  %v4102_v60 = vld [vmem:[%s8726_s3 + $0x298] sm:$0xff] }
 0x17a   : > { %5514 = vmatprep.subr.bf16.mxu1 %v5513_v5  ;;  %5548 = vmatpush3.bf16.msra.mxu0 %v5547_v12 }
 0x17b   : > { %5550 = vmatprep.subr.bf16.mxu0 %v5549_v14  ;;  %v5595_v14 = vpack.c.bf16 %v4116_v24, %v4115_v52  ;;  %v4091_v52 = vld [vmem:[%s8726_s3 + $0x240] sm:$0xff]  ;;  %v4092_v24 = vld [vmem:[%s8726_s3 + $0x248] sm:$0xff] }
 0x17d   : > { %5516 = vmatpush3.bf16.msra.mxu1 %v5515_v63  ;;  %v4117_v63 = vld [vmem:[%s8726_s3 + $0x310] sm:$0xff] }
 0x17e   : > { %5518 = vmatprep.subr.bf16.mxu1 %v5517_v11  ;;  %5552 = vmatpush3.bf16.msra.mxu0 %v5551_v9  ;;  %v5565_v11 = vpack.c.bf16 %v4102_v60, %v4101_v39  ;;  %v4103_v9 = vld [vmem:[%s8726_s3 + $0x2a0] sm:$0xff]  ;;  %v5599_v27 = vpack.c.bf16 %v4118_v16, %v4117_v63  ;;  %v4110_v60 = vld [vmem:[%s8726_s3 + $0x2d8] sm:$0xff] }
 0x17f   : > { %5554 = vmatprep.subr.bf16.mxu0 %v5553_v7  ;;  %v5569_v19 = vpack.c.bf16 %v4104_v21, %v4103_v9  ;;  %v4123_v39 = vld [vmem:[%s8726_s3 + $0x340] sm:$0xff]  ;;  %v4126_v63 = vld [vmem:[%s8726_s3 + $0x358] sm:$0xff] }
 0x181   : > { %5520 = vmatpush3.bf16.msra.mxu1 %v5519_v18 }
 0x182   : > { %5522 = vmatprep.subr.bf16.mxu1 %v5521_v26  ;;  %5556 = vmatpush3.bf16.msra.mxu0 %v5555_v20  ;;  %v5567_v26 = vpack.c.bf16 %v4086_v48, %v4085_v30  ;;  %v4087_v20 = vld [vmem:[%s8726_s3 + $0x220] sm:$0xff]  ;;  %v4125_v30 = vld [vmem:[%s8726_s3 + $0x350] sm:$0xff]  ;;  %v5613_v48 = vpack.c.bf16 %v4142_v3, %v4141_v61 }
 0x183   : > { %5558 = vmatprep.subr.bf16.mxu0 %v5557_v23  ;;  %v5571_v17 = vpack.c.bf16 %v4088_v6, %v4087_v20  ;;  %v5615_v9 = vpack.c.bf16 %v4126_v63, %v4125_v30  ;;  %v4146_v20 = vld [vmem:[%s8726_s3 + $0x3f8] sm:$0xff]  ;;  %v4168_v63 = vld [vmem:[%s8726_s3 + $0x4a8] sm:$0xff] }
 0x184   : > { %v4182_v30 = vld [vmem:[%s8726_s3 + $0x518] sm:$0xff] }
 0x185   : > { %5524 = vmatpush3.bf16.msra.mxu1 %v5523_v34  ;;  %v4105_v34 = vld [vmem:[%s8726_s3 + $0x2b0] sm:$0xff] }
 0x186   : > { %5526 = vmatprep.subr.bf16.mxu1 %v5525_v44  ;;  %5560 = vmatpush3.bf16.msra.mxu0 %v5559_v42  ;;  %v4138_v44 = vld [vmem:[%s8726_s3 + $0x3b8] sm:$0xff]  ;;  %v5573_v42 = vpack.c.bf16 %v4106_v35, %v4105_v34  ;;  %v4129_v35 = vld [vmem:[%s8726_s3 + $0x370] sm:$0xff] }
 0x187   : > { %5594 = vmatprep.subr.bf16.mxu0 %v5593_v53  ;;  %v4121_v53 = vld [vmem:[%s8726_s3 + $0x330] sm:$0xff]  ;;  %v4098_v34 = vld [vmem:[%s8726_s3 + $0x278] sm:$0xff] }
 0x188   : > { %v5591_v49 = vpack.c.bf16 %v4098_v34, %v4097_v32  ;;  %v4154_v32 = vld [vmem:[%s8726_s3 + $0x438] sm:$0xff]  ;;  %v4185_v34 = vld [vmem:[%s8726_s3 + $0x530] sm:$0xff] }
 0x189   : > { %5528 = vmatpush3.bf16.msra.mxu1 %v5527_v57  ;;  %v5985_v62 = vpop.permute.xlu1 %5984  ;;  %v5605_v57 = vpack.c.bf16 %v4138_v44, %v4137_v43  ;;  %v4130_v44 = vld [vmem:[%s8726_s3 + $0x378] sm:$0xff] }
 0x18a   : > { %5562 = vmatprep.subr.bf16.mxu1 %v5561_v33  ;;  %v5986_v55 = vunpack.i.l.bf16 %v5985_v62  ;;  %v5987_v13 = vunpack.i.h.bf16 %v5985_v62  ;;  %v4122_v33 = vld [vmem:[%s8726_s3 + $0x338] sm:$0xff]  ;;  %v4107_v62 = vld [vmem:[%s8726_s3 + $0x2c0] sm:$0xff] }
 0x18b   : > { %v5607_v58 = vpack.c.bf16 %v4122_v33, %v4121_v53  ;;  %v5623_v53 = vpack.c.bf16 %v4130_v44, %v4129_v35  ;;  %v4147_v33 = vld [vmem:[%s8726_s3 + $0x400] sm:$0xff] }
 0x18c   : > { %v4171_v44 = vld [vmem:[%s8726_s3 + $0x4c0] sm:$0xff] }
 0x18d   : > { %v5975_v1 = vpop.permute.xlu0 %5974 }
 0x18e   : > { %v5977_v45 = vunpack.i.h.bf16 %v5975_v1  ;;  %v5976_v37 = vunpack.i.l.bf16 %v5975_v1  ;;  %v7461_v59 = vpop.permute.xlu1 %5994  ;;  %v4108_v1 = vld [vmem:[%s8726_s3 + $0x2c8] sm:$0xff] }
 0x18f   : > { %v5997_v5 = vunpack.i.h.bf16 %v7461_v59  ;;  %v5996_v8 = vunpack.i.l.bf16 %v7461_v59 }
 0x190   : > { %v2075_v51 = vsel %vm1042_vm6, %v5976_v37, %v5977_v45  ;;  %v4139_v45 = vld [vmem:[%s8726_s3 + $0x3c0] sm:$0xff] }
 0x191   : > { %v5980_v29 = vpop.permute.xlu0 %5979  ;;  %2142 = vmatprep.mubr.f32.mxu1 %v2075_v51  ;;  %v2279_v25 = vsel %vm1042_vm6, %v5996_v8, %v5997_v5  ;;  %v5577_v51 = vpack.c.bf16 %v4108_v1, %v4107_v62  ;;  %v5579_v5 = vpack.c.bf16 %v4092_v24, %v4091_v52  ;;  %v4148_v62 = vld [vmem:[%s8726_s3 + $0x408] sm:$0xff]  ;;  %v4166_v52 = vld [vmem:[%s8726_s3 + $0x498] sm:$0xff] }
 0x192   : > { %v5982_v10 = vunpack.i.h.bf16 %v5980_v29  ;;  %v5981_v12 = vunpack.i.l.bf16 %v5980_v29  ;;  %v7484_v50 = vpop.permute.xlu1 %5999  ;;  %v4124_v29 = vld [vmem:[%s8726_s3 + $0x348] sm:$0xff] }
 0x193   : > { %v6001_v18 = vunpack.i.l.bf16 %v7484_v50  ;;  %v6002_v61 = vunpack.i.h.bf16 %v7484_v50 }
 0x194   : > { %v2074_v0 = vsel %vm1042_vm6, %v5981_v12, %v5976_v37  ;;  %v2158_v38 = vsel %vm1042_vm6, %v5982_v10, %v5986_v55  ;;  %v2157_v7 = vsel %vm1042_vm6, %v5987_v13, %v5982_v10  ;;  %v4140_v37 = vld [vmem:[%s8726_s3 + $0x3c8] sm:$0xff]  ;;  %v5611_v10 = vpack.c.bf16 %v4124_v29, %v4123_v39  ;;  %v4093_v13 = vld [vmem:[%s8726_s3 + $0x250] sm:$0xff] }
 0x195   : > { %v7506_v36 = vpop.permute.xlu0 %5989  ;;  %2143 = vmatmul.mubr.f32.vlgmr.msra.gmra.mrb[14].mxu1 %v2074_v0  ;;  %2225 = vmatprep.mubr.f32.mxu0 %v2158_v38  ;;  %v5609_v55 = vpack.c.bf16 %v4140_v37, %v4139_v45  ;;  %v4111_v0 = vld [vmem:[%s8726_s3 + $0x2e0] sm:$0xff]  ;;  %v4112_v38 = vld [vmem:[%s8726_s3 + $0x2e8] sm:$0xff]  ;;  %v5627_v29 = vpack.c.bf16 %v4148_v62, %v4147_v33 }
 0x196   : > { %v5992_v22 = vunpack.i.h.bf16 %v7506_v36  ;;  %5564 = vmatpush3.bf16.msra.mxu1 %v5563_v47  ;;  %2226 = vmatmul.mubr.f32.vlgmr.msra.gmra.mrb[12].mxu0 %v2157_v7  ;;  %v4109_v47 = vld [vmem:[%s8726_s3 + $0x2d0] sm:$0xff]  ;;  %v5585_v21 = vpack.c.bf16 %v4112_v38, %v4111_v0  ;;  %v4095_v7 = vld [vmem:[%s8726_s3 + $0x260] sm:$0xff]  ;;  %v5991_v1 = vunpack.i.l.bf16 %v7506_v36  ;;  %v7690_v24 = vpop.permute.xlu1 %6004  ;;  %v4156_v33 = vld [vmem:[%s8726_s3 + $0x448] sm:$0xff] }
 0x197   : > { %2346 = vmatprep.mubr.f32.mxu1 %v2279_v25  ;;  %5596 = vmatpush3.bf16.msra.mxu0 %v5595_v14  ;;  %v5581_v12 = vpack.c.bf16 %v4110_v60, %v4109_v47  ;;  %v4094_v14 = vld [vmem:[%s8726_s3 + $0x258] sm:$0xff]  ;;  %v4128_v25 = vld [vmem:[%s8726_s3 + $0x368] sm:$0xff]  ;;  %v5587_v28 = vpack.c.bf16 %v4096_v40, %v4095_v7  ;;  %v4197_v47 = vld [vmem:[%s8726_s3 + $0x590] sm:$0xff]  ;;  %v6007_v0 = vunpack.i.h.bf16 %v7690_v24 }
 0x198   : > { %5566 = vmatprep.subr.bf16.mxu1 %v5565_v11  ;;  %5598 = vmatprep.subr.bf16.mxu0 %v5597_v15  ;;  %v2413_v23 = vsel %vm1042_vm6, %v5992_v22, %v6001_v18  ;;  %v4143_v11 = vld [vmem:[%s8726_s3 + $0x3e0] sm:$0xff]  ;;  %v4144_v15 = vld [vmem:[%s8726_s3 + $0x3e8] sm:$0xff]  ;;  %v5583_v16 = vpack.c.bf16 %v4094_v14, %v4093_v13  ;;  %v4198_v60 = vld [vmem:[%s8726_s3 + $0x598] sm:$0xff]  ;;  %v2278_v50 = vsel %vm1042_vm6, %v5991_v1, %v5996_v8 }
 0x199   : > { %2480 = vmatprep.mubr.f32.mxu0 %v2413_v23  ;;  %v5617_v18 = vpack.c.bf16 %v4144_v15, %v4143_v11  ;;  %v7643_v6 = vpop.permute.xlu0 %6009  ;;  %v5619_v23 = vpack.c.bf16 %v4128_v25, %v4127_v56  ;;  %v4181_v13 = vld [vmem:[%s8726_s3 + $0x510] sm:$0xff]  ;;  %v2412_v59 = vsel %vm1042_vm6, %v6002_v61, %v5992_v22  ;;  %v5661_v8 = vpack.c.bf16 %v4198_v60, %v4197_v47  ;;  %v4199_v38 = vld [vmem:[%s8726_s3 + $0x5a0] sm:$0xff]  ;;  %v4200_v11 = vld [vmem:[%s8726_s3 + $0x5a8] sm:$0xff] }
 0x19a   : > { %5568 = vmatpush3.bf16.msra.mxu1 %v5567_v26  ;;  %v4113_v26 = vld [vmem:[%s8726_s3 + $0x2f0] sm:$0xff]  ;;  %v6012_v39 = vunpack.i.h.bf16 %v7643_v6  ;;  %v5663_v22 = vpack.c.bf16 %v4182_v30, %v4181_v13  ;;  %v4152_v7 = vld [vmem:[%s8726_s3 + $0x428] sm:$0xff]  ;;  %v4183_v40 = vld [vmem:[%s8726_s3 + $0x520] sm:$0xff]  ;;  %v5665_v56 = vpack.c.bf16 %v4200_v11, %v4199_v38 }
 0x19b   : > { %5600 = vmatpush3.bf16.msra.mxu0 %v5599_v27  ;;  %5570 = vmatprep.subr.bf16.mxu1 %v5569_v19  ;;  %v4114_v27 = vld [vmem:[%s8726_s3 + $0x2f8] sm:$0xff]  ;;  %v4145_v19 = vld [vmem:[%s8726_s3 + $0x3f0] sm:$0xff]  ;;  %v4187_v62 = vld [vmem:[%s8726_s3 + $0x540] sm:$0xff] }
 0x19c   : > { %5602 = vmatprep.subr.bf16.mxu0 %v5601_v31  ;;  %v5589_v31 = vpack.c.bf16 %v4114_v27, %v4113_v26  ;;  %v5621_v43 = vpack.c.bf16 %v4146_v20, %v4145_v19  ;;  %v4169_v25 = vld [vmem:[%s8726_s3 + $0x4b0] sm:$0xff]  ;;  %v4170_v26 = vld [vmem:[%s8726_s3 + $0x4b8] sm:$0xff]  ;;  %v4176_v13 = vld [vmem:[%s8726_s3 + $0x4e8] sm:$0xff] }
 0x19d   : > { %v7676_v45 = vpop.permute.xlu0 %6014  ;;  %v4201_v27 = vld [vmem:[%s8726_s3 + $0x5b0] sm:$0xff]  ;;  %v4202_v19 = vld [vmem:[%s8726_s3 + $0x5b8] sm:$0xff]  ;;  %v4191_v38 = vld [vmem:[%s8726_s3 + $0x560] sm:$0xff] }
 0x19e   : > { %5572 = vmatpush3.bf16.msra.mxu1 %v5571_v17  ;;  %v4163_v17 = vld [vmem:[%s8726_s3 + $0x480] sm:$0xff]  ;;  %v6016_v3 = vunpack.i.l.bf16 %v7676_v45  ;;  %v5669_v35 = vpack.c.bf16 %v4202_v19, %v4201_v27  ;;  %v4157_v60 = vld [vmem:[%s8726_s3 + $0x450] sm:$0xff]  ;;  %v4158_v61 = vld [vmem:[%s8726_s3 + $0x458] sm:$0xff] }
 0x19f   : > { %5604 = vmatpush3.bf16.msra.mxu0 %v5603_v41  ;;  %5574 = vmatprep.subr.bf16.mxu1 %v5573_v42  ;;  %v4164_v41 = vld [vmem:[%s8726_s3 + $0x488] sm:$0xff]  ;;  %v4195_v42 = vld [vmem:[%s8726_s3 + $0x580] sm:$0xff]  ;;  %v5647_v30 = vpack.c.bf16 %v4158_v61, %v4157_v60  ;;  %v4194_v19 = vld [vmem:[%s8726_s3 + $0x578] sm:$0xff] }
 0x1a0   : > { %5606 = vmatprep.subr.bf16.mxu0 %v5605_v57  ;;  %v5625_v57 = vpack.c.bf16 %v4164_v41, %v4163_v17  ;;  %v5657_v37 = vpack.c.bf16 %v4196_v46, %v4195_v42  ;;  %v2681_v36 = vsel %vm1042_vm6, %v6007_v0, %v6016_v3  ;;  %v4172_v17 = vld [vmem:[%s8726_s3 + $0x4c8] sm:$0xff]  ;;  %v4203_v41 = vld [vmem:[%s8726_s3 + $0x5c0] sm:$0xff]  ;;  %v4189_v3 = vld [vmem:[%s8726_s3 + $0x550] sm:$0xff] }
 0x1a1   : > { %v4204_v42 = vld [vmem:[%s8726_s3 + $0x5c8] sm:$0xff] }
 0x1a2   : > { %5576 = vmatpush3.bf16.msra.mxu1 %v5575_v54  ;;  %v4179_v54 = vld [vmem:[%s8726_s3 + $0x500] sm:$0xff]  ;;  %v5673_v1 = vpack.c.bf16 %v4204_v42, %v4203_v41 }
 0x1a3   : > { %5608 = vmatpush3.bf16.msra.mxu0 %v5607_v58  ;;  %5578 = vmatprep.subr.bf16.mxu1 %v5577_v51  ;;  %v4180_v58 = vld [vmem:[%s8726_s3 + $0x508] sm:$0xff]  ;;  %v4165_v51 = vld [vmem:[%s8726_s3 + $0x490] sm:$0xff]  ;;  %v4243_v42 = vld [vmem:[%s8726_s3 + $0x700] sm:$0xff] }
 0x1a4   : > { %5610 = vmatprep.subr.bf16.mxu0 %v5609_v55  ;;  %v6011_v55 = vunpack.i.l.bf16 %v7643_v6  ;;  %v5629_v14 = vpack.c.bf16 %v4166_v52, %v4165_v51  ;;  %v4205_v51 = vld [vmem:[%s8726_s3 + $0x5d0] sm:$0xff]  ;;  %v4206_v52 = vld [vmem:[%s8726_s3 + $0x5d8] sm:$0xff] }
 0x1a6   : > { %5580 = vmatpush3.bf16.msra.mxu1 %v5579_v5  ;;  %v5659_v5 = vpack.c.bf16 %v4180_v58, %v4179_v54  ;;  %v2547_v15 = vsel %vm1042_vm6, %v6011_v55, %v6012_v39  ;;  %v4173_v54 = vld [vmem:[%s8726_s3 + $0x4d0] sm:$0xff]  ;;  %v4174_v58 = vld [vmem:[%s8726_s3 + $0x4d8] sm:$0xff] }
 0x1a7   : > { %5612 = vmatpush3.bf16.msra.mxu0 %v5611_v10  ;;  %5582 = vmatprep.subr.bf16.mxu1 %v5581_v12  ;;  %v4149_v10 = vld [vmem:[%s8726_s3 + $0x410] sm:$0xff]  ;;  %v4150_v12 = vld [vmem:[%s8726_s3 + $0x418] sm:$0xff]  ;;  %v5645_v47 = vpack.c.bf16 %v4174_v58, %v4173_v54 }
 0x1a8   : > { %5614 = vmatprep.subr.bf16.mxu0 %v5613_v48  ;;  %v4167_v48 = vld [vmem:[%s8726_s3 + $0x4a0] sm:$0xff]  ;;  %v4262_v58 = vld [vmem:[%s8726_s3 + $0x798] sm:$0xff] }
 0x1aa   : > { %5584 = vmatpush3.bf16.msra.mxu1 %v5583_v16  ;;  %v5631_v16 = vpack.c.bf16 %v4150_v12, %v4149_v10  ;;  %v4190_v10 = vld [vmem:[%s8726_s3 + $0x558] sm:$0xff]  ;;  %v4175_v12 = vld [vmem:[%s8726_s3 + $0x4e0] sm:$0xff] }
 0x1ab   : > { %5616 = vmatpush3.bf16.msra.mxu0 %v5615_v9  ;;  %5586 = vmatprep.subr.bf16.mxu1 %v5585_v21  ;;  %v5633_v9 = vpack.c.bf16 %v4168_v63, %v4167_v48  ;;  %v4151_v21 = vld [vmem:[%s8726_s3 + $0x420] sm:$0xff]  ;;  %v5679_v48 = vpack.c.bf16 %v4190_v10, %v4189_v3  ;;  %v5649_v63 = vpack.c.bf16 %v4176_v13, %v4175_v12  ;;  %v4246_v3 = vld [vmem:[%s8726_s3 + $0x718] sm:$0xff]  ;;  %v4232_v10 = vld [vmem:[%s8726_s3 + $0x6a8] sm:$0xff] }
 0x1ac   : > { %5618 = vmatprep.subr.bf16.mxu0 %v5617_v18  ;;  %v4184_v18 = vld [vmem:[%s8726_s3 + $0x528] sm:$0xff]  ;;  %v5635_v20 = vpack.c.bf16 %v4152_v7, %v4151_v21  ;;  %v4263_v13 = vld [vmem:[%s8726_s3 + $0x7a0] sm:$0xff] }
 0x1ae   : > { %5588 = vmatpush3.bf16.msra.mxu1 %v5587_v28  ;;  %v5667_v28 = vpack.c.bf16 %v4184_v18, %v4183_v40  ;;  %v4162_v18 = vld [vmem:[%s8726_s3 + $0x478] sm:$0xff] }
 0x1af   : > { %5620 = vmatpush3.bf16.msra.mxu0 %v5619_v23  ;;  %5590 = vmatprep.subr.bf16.mxu1 %v5589_v31  ;;  %v5637_v23 = vpack.c.bf16 %v4170_v26, %v4169_v25  ;;  %v4153_v31 = vld [vmem:[%s8726_s3 + $0x430] sm:$0xff]  ;;  %v7868_v26 = vpop.permute.xlu1 %6024 }
 0x1b0   : > { %5622 = vmatprep.subr.bf16.mxu0 %v5621_v43  ;;  %v4186_v43 = vld [vmem:[%s8726_s3 + $0x538] sm:$0xff]  ;;  %v5639_v46 = vpack.c.bf16 %v4154_v32, %v4153_v31  ;;  %v4193_v25 = vld [vmem:[%s8726_s3 + $0x570] sm:$0xff]  ;;  %v4260_v31 = vld [vmem:[%s8726_s3 + $0x788] sm:$0xff] }
 0x1b2   : > { %5592 = vmatpush3.bf16.msra.mxu1 %v5591_v49  ;;  %v5671_v49 = vpack.c.bf16 %v4186_v43, %v4185_v34  ;;  %v5687_v34 = vpack.c.bf16 %v4194_v19, %v4193_v25  ;;  %v4211_v43 = vld [vmem:[%s8726_s3 + $0x600] sm:$0xff] }
 0x1b3   : > { %5624 = vmatpush3.bf16.msra.mxu0 %v5623_v53  ;;  %5626 = vmatprep.subr.bf16.mxu1 %v5625_v57  ;;  %v5641_v53 = vpack.c.bf16 %v4172_v17, %v4171_v44  ;;  %v4155_v57 = vld [vmem:[%s8726_s3 + $0x440] sm:$0xff]  ;;  %v4212_v44 = vld [vmem:[%s8726_s3 + $0x608] sm:$0xff]  ;;  %v7891_v17 = vpop.permute.xlu0 %6019 }
 0x1b4   : > { %5658 = vmatprep.subr.bf16.mxu0 %v5657_v37  ;;  %v4188_v37 = vld [vmem:[%s8726_s3 + $0x548] sm:$0xff]  ;;  %v5643_v39 = vpack.c.bf16 %v4156_v33, %v4155_v57  ;;  %v4230_v57 = vld [vmem:[%s8726_s3 + $0x698] sm:$0xff]  ;;  %v6006_v33 = vunpack.i.l.bf16 %v7690_v24  ;;  %v5691_v54 = vpack.c.bf16 %v4212_v44, %v4211_v43  ;;  %v4235_v19 = vld [vmem:[%s8726_s3 + $0x6c0] sm:$0xff] }
 0x1b5   : > { %2347 = vmatmul.mubr.f32.vlgmr.msra.gmra.mrb[16].mxu1 %v2278_v50  ;;  %v4207_v50 = vld [vmem:[%s8726_s3 + $0x5e0] sm:$0xff] }
 0x1b6   : > { %2481 = vmatmul.mubr.f32.vlgmr.msra.gmra.mrb[14].mxu0 %v2412_v59  ;;  %5628 = vmatpush3.bf16.msra.mxu1 %v5627_v29  ;;  %v5675_v29 = vpack.c.bf16 %v4188_v37, %v4187_v62  ;;  %v4159_v59 = vld [vmem:[%s8726_s3 + $0x460] sm:$0xff]  ;;  %v6027_v62 = vunpack.i.h.bf16 %v7868_v26  ;;  %v7909_v37 = vpop.permute.xlu1 %6029  ;;  %v2546_v60 = vsel %vm1042_vm6, %v6006_v33, %v6011_v55  ;;  %v4252_v33 = vld [vmem:[%s8726_s3 + $0x748] sm:$0xff] }
 0x1b7   : > { %2614 = vmatprep.mubr.f32.mxu1 %v2547_v15  ;;  %5660 = vmatpush3.bf16.msra.mxu0 %v5659_v5  ;;  %v5677_v5 = vpack.c.bf16 %v4206_v52, %v4205_v51  ;;  %v4192_v15 = vld [vmem:[%s8726_s3 + $0x568] sm:$0xff]  ;;  %v6022_v51 = vunpack.i.h.bf16 %v7891_v17  ;;  %v6031_v12 = vunpack.i.l.bf16 %v7909_v37 }
 0x1b8   : > { %2748 = vmatprep.mubr.f32.mxu0 %v2681_v36  ;;  %5630 = vmatprep.subr.bf16.mxu1 %v5629_v14  ;;  %v4208_v14 = vld [vmem:[%s8726_s3 + $0x5e8] sm:$0xff]  ;;  %v4178_v36 = vld [vmem:[%s8726_s3 + $0x4f8] sm:$0xff]  ;;  %v5683_v7 = vpack.c.bf16 %v4192_v15, %v4191_v38  ;;  %v4233_v15 = vld [vmem:[%s8726_s3 + $0x6b0] sm:$0xff] }
 0x1b9   : > { %5662 = vmatprep.subr.bf16.mxu0 %v5661_v8  ;;  %v4160_v8 = vld [vmem:[%s8726_s3 + $0x468] sm:$0xff]  ;;  %v5681_v11 = vpack.c.bf16 %v4208_v14, %v4207_v50  ;;  %v2949_v24 = vsel %vm1042_vm6, %v6022_v51, %v6031_v12  ;;  %v4254_v12 = vld [vmem:[%s8726_s3 + $0x758] sm:$0xff] }
 0x1ba   : > { %5632 = vmatpush3.bf16.msra.mxu1 %v5631_v16  ;;  %v4177_v16 = vld [vmem:[%s8726_s3 + $0x4f0] sm:$0xff]  ;;  %v5651_v21 = vpack.c.bf16 %v4160_v8, %v4159_v59  ;;  %v4264_v50 = vld [vmem:[%s8726_s3 + $0x7a8] sm:$0xff]  ;;  %v4247_v8 = vld [vmem:[%s8726_s3 + $0x720] sm:$0xff] }
 0x1bb   : > { %5664 = vmatpush3.bf16.msra.mxu0 %v5663_v22  ;;  %5634 = vmatprep.subr.bf16.mxu1 %v5633_v9  ;;  %v4209_v22 = vld [vmem:[%s8726_s3 + $0x5f0] sm:$0xff]  ;;  %v4210_v9 = vld [vmem:[%s8726_s3 + $0x5f8] sm:$0xff]  ;;  %v5653_v40 = vpack.c.bf16 %v4178_v36, %v4177_v16  ;;  %v4216_v59 = vld [vmem:[%s8726_s3 + $0x628] sm:$0xff]  ;;  %v5729_v38 = vpack.c.bf16 %v4264_v50, %v4263_v13 }
 0x1bc   : > { %5666 = vmatprep.subr.bf16.mxu0 %v5665_v56  ;;  %v4161_v56 = vld [vmem:[%s8726_s3 + $0x470] sm:$0xff]  ;;  %v5685_v27 = vpack.c.bf16 %v4210_v9, %v4209_v22  ;;  %v4234_v16 = vld [vmem:[%s8726_s3 + $0x6b8] sm:$0xff]  ;;  %v4271_v13 = vld [vmem:[%s8726_s3 + $0x7e0] sm:$0xff] }
 0x1bd   : > { %v5655_v32 = vpack.c.bf16 %v4162_v18, %v4161_v56  ;;  %v4265_v36 = vld [vmem:[%s8726_s3 + $0x7b0] sm:$0xff]  ;;  %v4266_v22 = vld [vmem:[%s8726_s3 + $0x7b8] sm:$0xff]  ;;  %v4272_v50 = vld [vmem:[%s8726_s3 + $0x7e8] sm:$0xff] }
 0x1be   : > { %5636 = vmatpush3.bf16.msra.mxu1 %v5635_v20  ;;  %v4227_v20 = vld [vmem:[%s8726_s3 + $0x680] sm:$0xff]  ;;  %v4218_v56 = vld [vmem:[%s8726_s3 + $0x638] sm:$0xff]  ;;  %v4249_v18 = vld [vmem:[%s8726_s3 + $0x730] sm:$0xff]  ;;  %v5733_v25 = vpack.c.bf16 %v4266_v22, %v4265_v36 }
 0x1bf   : > { %5668 = vmatpush3.bf16.msra.mxu0 %v5667_v28  ;;  %5638 = vmatprep.subr.bf16.mxu1 %v5637_v23  ;;  %v4228_v28 = vld [vmem:[%s8726_s3 + $0x688] sm:$0xff]  ;;  %v4259_v23 = vld [vmem:[%s8726_s3 + $0x780] sm:$0xff] }
 0x1c0   : > { %5670 = vmatprep.subr.bf16.mxu0 %v5669_v35  ;;  %v5689_v35 = vpack.c.bf16 %v4228_v28, %v4227_v20  ;;  %v5721_v41 = vpack.c.bf16 %v4260_v31, %v4259_v23  ;;  %v4236_v20 = vld [vmem:[%s8726_s3 + $0x6c8] sm:$0xff]  ;;  %v4267_v23 = vld [vmem:[%s8726_s3 + $0x7c0] sm:$0xff] }
 0x1c1   : > { %v4268_v31 = vld [vmem:[%s8726_s3 + $0x7c8] sm:$0xff] }
 0x1c2   : > { %5640 = vmatpush3.bf16.msra.mxu1 %v5639_v46  ;;  %v4244_v46 = vld [vmem:[%s8726_s3 + $0x708] sm:$0xff] }
 0x1c3   : > { %5672 = vmatpush3.bf16.msra.mxu0 %v5671_v49  ;;  %5642 = vmatprep.subr.bf16.mxu1 %v5641_v53  ;;  %v6017_v49 = vunpack.i.h.bf16 %v7676_v45  ;;  %v4229_v53 = vld [vmem:[%s8726_s3 + $0x690] sm:$0xff]  ;;  %v5723_v52 = vpack.c.bf16 %v4244_v46, %v4243_v42  ;;  %v4219_v42 = vld [vmem:[%s8726_s3 + $0x640] sm:$0xff]  ;;  %v4220_v46 = vld [vmem:[%s8726_s3 + $0x648] sm:$0xff] }
 0x1c4   : > { %5674 = vmatprep.subr.bf16.mxu0 %v5673_v1  ;;  %v6026_v1 = vunpack.i.l.bf16 %v7868_v26  ;;  %v4261_v45 = vld [vmem:[%s8726_s3 + $0x790] sm:$0xff]  ;;  %v5693_v61 = vpack.c.bf16 %v4230_v57, %v4229_v53  ;;  %v5737_v57 = vpack.c.bf16 %v4268_v31, %v4267_v23 }
 0x1c5   : > { %v2680_v6 = vsel %vm1042_vm6, %v6017_v49, %v6007_v0  ;;  %v5725_v55 = vpack.c.bf16 %v4262_v58, %v4261_v45  ;;  %v4251_v49 = vld [vmem:[%s8726_s3 + $0x740] sm:$0xff]  ;;  %v4269_v58 = vld [vmem:[%s8726_s3 + $0x7d0] sm:$0xff] }
 0x1c6   : > { %5644 = vmatpush3.bf16.msra.mxu1 %v5643_v39  ;;  %v4213_v39 = vld [vmem:[%s8726_s3 + $0x610] sm:$0xff]  ;;  %v2815_v14 = vsel %vm1042_vm6, %v6026_v1, %v6027_v62 }
 0x1c7   : > { %5676 = vmatpush3.bf16.msra.mxu0 %v5675_v29  ;;  %5646 = vmatprep.subr.bf16.mxu1 %v5645_v47  ;;  %v4214_v29 = vld [vmem:[%s8726_s3 + $0x618] sm:$0xff]  ;;  %v4245_v47 = vld [vmem:[%s8726_s3 + $0x710] sm:$0xff] }
 0x1c8   : > { %5678 = vmatprep.subr.bf16.mxu0 %v5677_v5  ;;  %v4231_v5 = vld [vmem:[%s8726_s3 + $0x6a0] sm:$0xff]  ;;  %v5727_v0 = vpack.c.bf16 %v4246_v3, %v4245_v47  ;;  %v4237_v62 = vld [vmem:[%s8726_s3 + $0x6d0] sm:$0xff]  ;;  %v5739_v47 = vpack.c.bf16 %v4252_v33, %v4251_v49  ;;  %v4222_v3 = vld [vmem:[%s8726_s3 + $0x658] sm:$0xff] }
 0x1c9   : > { %v4293_v33 = vld [vmem:[%s8728_s5 + $0x188] sm:$0xff] }
 0x1ca   : > { %5648 = vmatpush3.bf16.msra.mxu1 %v5647_v30  ;;  %v5695_v30 = vpack.c.bf16 %v4214_v29, %v4213_v39  ;;  %v5707_v39 = vpack.c.bf16 %v4220_v46, %v4219_v42 }
 0x1cb   : > { %5680 = vmatpush3.bf16.msra.mxu0 %v5679_v48  ;;  %5650 = vmatprep.subr.bf16.mxu1 %v5649_v63  ;;  %v5697_v48 = vpack.c.bf16 %v4232_v10, %v4231_v5  ;;  %v4215_v63 = vld [vmem:[%s8726_s3 + $0x620] sm:$0xff]  ;;  %v4253_v5 = vld [vmem:[%s8726_s3 + $0x750] sm:$0xff] }
 0x1cc   : > { %5682 = vmatprep.subr.bf16.mxu0 %v5681_v11  ;;  %v4248_v11 = vld [vmem:[%s8726_s3 + $0x728] sm:$0xff]  ;;  %v5699_v9 = vpack.c.bf16 %v4216_v59, %v4215_v63  ;;  %v4255_v63 = vld [vmem:[%s8726_s3 + $0x760] sm:$0xff]  ;;  %v5745_v59 = vpack.c.bf16 %v4272_v50, %v4271_v13  ;;  %v4278_v13 = vld [vmem:[%s8728_s5 + $0x110] sm:$0xff] }
 0x1cd   : > { %v4279_v50 = vld [vmem:[%s8728_s5 + $0x118] sm:$0xff] }
 0x1ce   : > { %5652 = vmatpush3.bf16.msra.mxu1 %v5651_v21  ;;  %v5731_v21 = vpack.c.bf16 %v4248_v11, %v4247_v8  ;;  %v4256_v8 = vld [vmem:[%s8726_s3 + $0x768] sm:$0xff]  ;;  %v4242_v11 = vld [vmem:[%s8726_s3 + $0x6f8] sm:$0xff] }
 0x1cf   : > { %5684 = vmatpush3.bf16.msra.mxu0 %v5683_v7  ;;  %5654 = vmatprep.subr.bf16.mxu1 %v5653_v40  ;;  %v5701_v7 = vpack.c.bf16 %v4234_v16, %v4233_v15  ;;  %v4217_v40 = vld [vmem:[%s8726_s3 + $0x630] sm:$0xff]  ;;  %v4274_v16 = vld [vmem:[%s8726_s3 + $0x7f8] sm:$0xff]  ;;  %v5747_v22 = vpack.c.bf16 %v4256_v8, %v4255_v63  ;;  %v3056_v8 = vld [vmem:[%s8728_s5 + $0xa0] sm:$0xff] }
 0x1d0   : > { %5686 = vmatprep.subr.bf16.mxu0 %v5685_v27  ;;  %v4250_v27 = vld [vmem:[%s8726_s3 + $0x738] sm:$0xff]  ;;  %v4273_v15 = vld [vmem:[%s8726_s3 + $0x7f0] sm:$0xff] }
 0x1d1   : > { %v5735_v44 = vpack.c.bf16 %v4250_v27, %v4249_v18  ;;  %v4258_v18 = vld [vmem:[%s8726_s3 + $0x778] sm:$0xff] }
 0x1d2   : > { %5656 = vmatpush3.bf16.msra.mxu1 %v5655_v32 }
 0x1d3   : > { %5688 = vmatpush3.bf16.msra.mxu0 %v5687_v34  ;;  %5690 = vmatprep.subr.bf16.mxu1 %v5689_v35  ;;  %v5703_v34 = vpack.c.bf16 %v4218_v56, %v4217_v40  ;;  %v5749_v40 = vpack.c.bf16 %v4274_v16, %v4273_v15  ;;  %v4257_v56 = vld [vmem:[%s8726_s3 + $0x770] sm:$0xff] }
 0x1d4   : > { %5722 = vmatprep.subr.bf16.mxu0 %v5721_v41  ;;  %v5705_v41 = vpack.c.bf16 %v4236_v20, %v4235_v19  ;;  %v5751_v27 = vpack.c.bf16 %v4258_v18, %v4257_v56  ;;  %v6021_v19 = vunpack.i.l.bf16 %v7891_v17  ;;  %v6032_v20 = vunpack.i.h.bf16 %v7909_v37 }
 0x1d5   : > { %2615 = vmatmul.mubr.f32.vlgmr.msra.gmra.mrb[18].mxu1 %v2546_v60 }
 0x1d6   : > { %2749 = vmatmul.mubr.f32.vlgmr.msra.gmra.mrb[16].mxu0 %v2680_v6  ;;  %5692 = vmatpush3.bf16.msra.mxu1 %v5691_v54  ;;  %v4238_v54 = vld [vmem:[%s8726_s3 + $0x6d8] sm:$0xff]  ;;  %v4239_v6 = vld [vmem:[%s8726_s3 + $0x6e0] sm:$0xff]  ;;  %v2948_v23 = vsel %vm1042_vm6, %v6032_v20, %v6022_v51 }
 0x1d7   : > { %2882 = vmatprep.mubr.f32.mxu1 %v2815_v14  ;;  %5724 = vmatpush3.bf16.msra.mxu0 %v5723_v52  ;;  %v4270_v52 = vld [vmem:[%s8726_s3 + $0x7d8] sm:$0xff]  ;;  %v5709_v60 = vpack.c.bf16 %v4238_v54, %v4237_v62  ;;  %v4292_v51 = vld [vmem:[%s8728_s5 + $0x180] sm:$0xff] }
 0x1d8   : > { %3016 = vmatprep.mubr.f32.mxu0 %v2949_v24  ;;  %5694 = vmatprep.subr.bf16.mxu1 %v5693_v61  ;;  %v4221_v61 = vld [vmem:[%s8726_s3 + $0x650] sm:$0xff]  ;;  %v5741_v10 = vpack.c.bf16 %v4270_v52, %v4269_v58  ;;  %v3052_v62 = vld [vmem:[%s8728_s5 + $0x80] sm:$0xff]  ;;  %v5753_v54 = vpack.c.bf16 %v4293_v33, %v4292_v51  ;;  %v4277_v52 = vld [vmem:[%s8728_s5 + $0x108] sm:$0xff] }
 0x1d9   : > { %5726 = vmatprep.subr.bf16.mxu0 %v5725_v55  ;;  %v4240_v55 = vld [vmem:[%s8726_s3 + $0x6e8] sm:$0xff]  ;;  %v5711_v14 = vpack.c.bf16 %v4222_v3, %v4221_v61  ;;  %v4276_v58 = vld [vmem:[%s8728_s5 + $0x100] sm:$0xff]  ;;  %v4294_v61 = vld [vmem:[%s8728_s5 + $0x190] sm:$0xff] }
 0x1da   : > { %5696 = vmatpush3.bf16.msra.mxu1 %v5695_v30  ;;  %v5743_v30 = vpack.c.bf16 %v4254_v12, %v4253_v5  ;;  %v5713_v24 = vpack.c.bf16 %v4240_v55, %v4239_v6  ;;  %v4295_v5 = vld [vmem:[%s8728_s5 + $0x198] sm:$0xff]  ;;  %v3060_v51 = vld [vmem:[%s8728_s5 + $0xc0] sm:$0xff]  ;;  %v3061_v33 = vld [vmem:[%s8728_s5 + $0xc8] sm:$0xff] }
 0x1db   : > { %5728 = vmatpush3.bf16.msra.mxu0 %v5727_v0  ;;  %5698 = vmatprep.subr.bf16.mxu1 %v5697_v48  ;;  %v4223_v0 = vld [vmem:[%s8726_s3 + $0x660] sm:$0xff]  ;;  %v4224_v48 = vld [vmem:[%s8726_s3 + $0x668] sm:$0xff]  ;;  %v3055_v12 = vld [vmem:[%s8728_s5 + $0x98] sm:$0xff]  ;;  %v5757_v6 = vpack.c.bf16 %v4295_v5, %v4294_v61 }
 0x1dc   : > { %5730 = vmatprep.subr.bf16.mxu0 %v5729_v38  ;;  %v4518_v28 = vpop.f32.mrb[4].mxu0  ;;  %v4241_v38 = vld [vmem:[%s8726_s3 + $0x6f0] sm:$0xff]  ;;  %v5715_v36 = vpack.c.bf16 %v4224_v48, %v4223_v0  ;;  %v4296_v0 = vld [vmem:[%s8728_s5 + $0x1a0] sm:$0xff]  ;;  %v4297_v48 = vld [vmem:[%s8728_s5 + $0x1a8] sm:$0xff] }
 0x1dd   : > { %v4519_v32 = vpop.f32.mrb[5].mxu0  ;;  %v3062_v5 = vld [vmem:[%s8728_s5 + $0xd0] sm:$0xff] }
 0x1de   : > { %5700 = vmatpush3.bf16.msra.mxu1 %v5699_v9  ;;  %v4520_v35 = vadd.f32 %v4519_v32, %v4518_v28  ;;  %v5717_v9 = vpack.c.bf16 %v4242_v11, %v4241_v38  ;;  %v2814_v28 = vsel %vm1042_vm6, %v6021_v19, %v6026_v1  ;;  %v3057_v38 = vld [vmem:[%s8728_s5 + $0xa8] sm:$0xff]  ;;  %v3040_v19 = vld [vmem:[%s8728_s5 + $0x20] sm:$0xff] }
 0x1df   : > { %5732 = vmatpush3.bf16.msra.mxu0 %v5731_v21  ;;  %v4483_v43 = vpop.f32.mrb[6].mxu1  ;;  %5702 = vmatprep.subr.bf16.mxu1 %v5701_v7  ;;  %v4225_v21 = vld [vmem:[%s8726_s3 + $0x670] sm:$0xff]  ;;  %v4226_v7 = vld [vmem:[%s8726_s3 + $0x678] sm:$0xff]  ;;  %v5793_v11 = vpack.c.bf16 %v3057_v38, %v3056_v8  ;;  %v4288_v8 = vld [vmem:[%s8728_s5 + $0x160] sm:$0xff] }
 0x1e0   : > { %v4484_v53 = vpop.f32.mrb[7].mxu1  ;;  %5734 = vmatprep.subr.bf16.mxu0 %v5733_v25  ;;  %v5719_v25 = vpack.c.bf16 %v4226_v7, %v4225_v21  ;;  %v4289_v38 = vld [vmem:[%s8728_s5 + $0x168] sm:$0xff] }
 0x1e1   : > { %v4485_v45 = vadd.f32 %v4484_v53, %v4483_v43 }
 0x1e2   : > { %5704 = vmatpush3.bf16.msra.mxu1 %v5703_v34 }
 0x1e3   : > { %v8027_v29 = vadd.f32 %v4520_v35, %v4485_v45  ;;  %5736 = vmatpush3.bf16.msra.mxu0 %v5735_v44  ;;  %5706 = vmatprep.subr.bf16.mxu1 %v5705_v41  ;;  %v3053_v45 = vld [vmem:[%s8728_s5 + $0x88] sm:$0xff] }
 0x1e4   : > { %5738 = vmatprep.subr.bf16.mxu0 %v5737_v57 }
 0x1e6   : > { %5708 = vmatpush3.bf16.msra.mxu1 %v5707_v39  ;;  %v5785_v39 = vpack.c.bf16 %v3053_v45, %v3052_v62  ;;  %v4284_v45 = vld [vmem:[%s8728_s5 + $0x140] sm:$0xff] }
 0x1e7   : > { %5740 = vmatpush3.bf16.msra.mxu0 %v5739_v47  ;;  %5710 = vmatprep.subr.bf16.mxu1 %v5709_v60  ;;  %v3036_v47 = vld [vmem:[%s8728_s5] sm:$0xff]  ;;  %v3037_v60 = vld [vmem:[%s8728_s5 + $0x8] sm:$0xff] }
 0x1e8   : > { %5742 = vmatprep.subr.bf16.mxu0 %v5741_v10  ;;  %v5787_v3 = vpack.c.bf16 %v3037_v60, %v3036_v47  ;;  %v3054_v10 = vld [vmem:[%s8728_s5 + $0x90] sm:$0xff]  ;;  %v4303_v60 = vld [vmem:[%s8728_s5 + $0x1d8] sm:$0xff] }
 0x1e9   : > { %v5789_v55 = vpack.c.bf16 %v3055_v12, %v3054_v10  ;;  %v4302_v47 = vld [vmem:[%s8728_s5 + $0x1d0] sm:$0xff]  ;;  %v3063_v10 = vld [vmem:[%s8728_s5 + $0xd8] sm:$0xff] }
 0x1ea   : > { %5712 = vmatpush3.bf16.msra.mxu1 %v5711_v14  ;;  %v3038_v14 = vld [vmem:[%s8728_s5 + $0x10] sm:$0xff] }
 0x1eb   : > { %5744 = vmatpush3.bf16.msra.mxu0 %v5743_v30  ;;  %5714 = vmatprep.subr.bf16.mxu1 %v5713_v24  ;;  %v5759_v30 = vpack.c.bf16 %v4279_v50, %v4278_v13  ;;  %v3039_v24 = vld [vmem:[%s8728_s5 + $0x18] sm:$0xff]  ;;  %v4286_v12 = vld [vmem:[%s8728_s5 + $0x150] sm:$0xff] }
 0x1ec   : > { %5746 = vmatprep.subr.bf16.mxu0 %v5745_v59  ;;  %v5791_v63 = vpack.c.bf16 %v3039_v24, %v3038_v14  ;;  %v5761_v59 = vpack.c.bf16 %v4297_v48, %v4296_v0  ;;  %v3046_v13 = vld [vmem:[%s8728_s5 + $0x50] sm:$0xff]  ;;  %v3047_v50 = vld [vmem:[%s8728_s5 + $0x58] sm:$0xff]  ;;  %v4305_v24 = vld [vmem:[%s8728_s5 + $0x1e8] sm:$0xff] }
 0x1ed   : > { %v3064_v0 = vld [vmem:[%s8728_s5 + $0xe0] sm:$0xff]  ;;  %v5807_v48 = vpack.c.bf16 %v3047_v50, %v3046_v13 }
 0x1ee   : > { %5716 = vmatpush3.bf16.msra.mxu1 %v5715_v36 }
 0x1ef   : > { %5748 = vmatpush3.bf16.msra.mxu0 %v5747_v22  ;;  %5718 = vmatprep.subr.bf16.mxu1 %v5717_v9 }
 0x1f0   : > { %5750 = vmatprep.subr.bf16.mxu0 %v5749_v40  ;;  %v8161_v40 = vld [vmem:[%s8727_s4] ss:$0 sm:$0xff] }
 0x1f2   : > { %5720 = vmatpush3.bf16.msra.mxu1 %v5719_v25  ;;  %v4280_v25 = vld [vmem:[%s8728_s5 + $0x120] sm:$0xff] }
 0x1f3   : > { %5752 = vmatpush3.bf16.msra.mxu0 %v5751_v27  ;;  %5754 = vmatprep.subr.bf16.mxu1 %v5753_v54  ;;  %v4281_v27 = vld [vmem:[%s8728_s5 + $0x128] sm:$0xff]  ;;  %v5801_v54 = vpack.c.bf16 %v3061_v33, %v3060_v51 }
 0x1f4   : > { %5786 = vmatprep.subr.bf16.mxu0 %v5785_v39 }
 0x1f5   : > { %2883 = vmatmul.mubr.f32.vlgmr.msra.gmra.mrb[20].mxu1 %v2814_v28  ;;  %v5763_v28 = vpack.c.bf16 %v4281_v27, %v4280_v25  ;;  %v4290_v25 = vld [vmem:[%s8728_s5 + $0x170] sm:$0xff]  ;;  %v4291_v27 = vld [vmem:[%s8728_s5 + $0x178] sm:$0xff] }
 0x1f6   : > { %3017 = vmatmul.mubr.f32.vlgmr.msra.gmra.mrb[18].mxu0 %v2948_v23  ;;  %v3041_v23 = vld [vmem:[%s8728_s5 + $0x28] sm:$0xff] }
 0x1f7   : > { %5788 = vmatpush3.bf16.msra.mxu0 %v5787_v3  ;;  %v5773_v3 = vpack.c.bf16 %v4303_v60, %v4302_v47 }
 0x1f8   : > { %5790 = vmatprep.subr.bf16.mxu0 %v5789_v55  ;;  %v4287_v55 = vld [vmem:[%s8728_s5 + $0x158] sm:$0xff] }
 0x1f9   : > { %v5775_v14 = vpack.c.bf16 %v4287_v55, %v4286_v12 }
 0x1fb   : > { %5792 = vmatpush3.bf16.msra.mxu0 %v5791_v63 }
 0x1fc   : > { %v4588_v31 = vpop.f32.mrb[6].mxu0  ;;  %5794 = vmatprep.subr.bf16.mxu0 %v5793_v11 }
 0x1fd   : > { %v4589_v32 = vpop.f32.mrb[7].mxu0 }
 0x1fe   : > { %v4590_v34 = vadd.f32 %v4589_v32, %v4588_v31  ;;  %v5795_v31 = vpack.c.bf16 %v3041_v23, %v3040_v19  ;;  %v3050_v19 = vld [vmem:[%s8728_s5 + $0x70] sm:$0xff]  ;;  %v4324_v23 = vld [vmem:[%s8728_s5 + $0x280] sm:$0xff] }
 0x1ff   : > { %v4553_v35 = vpop.f32.mrb[8].mxu1 }
 0x200   : > { %v4554_v43 = vpop.f32.mrb[9].mxu1  ;;  %5796 = vmatpush3.bf16.msra.mxu0 %v5795_v31  ;;  %v4325_v31 = vld [vmem:[%s8728_s5 + $0x288] sm:$0xff] }
 0x201   : > { %v4555_v44 = vadd.f32 %v4554_v43, %v4553_v35  ;;  %v4299_v35 = vld [vmem:[%s8728_s5 + $0x1b8] sm:$0xff]  ;;  %v3058_v43 = vld [vmem:[%s8728_s5 + $0xb0] sm:$0xff] }
 0x203   : > { %v1374_v41 = vadd.f32 %v4555_v44, %v8027_v29  ;;  %v5755_v29 = vpack.c.bf16 %v4277_v52, %v4276_v58  ;;  %v4285_v58 = vld [vmem:[%s8728_s5 + $0x148] sm:$0xff]  ;;  %v3044_v52 = vld [vmem:[%s8728_s5 + $0x40] sm:$0xff] }
 0x204   : > { %v5771_v39 = vpack.c.bf16 %v4285_v58, %v4284_v45 }
 0x205   : > { %v1495_v37 = vadd.f32 %v4590_v34, %v1374_v41  ;;  %5756 = vmatpush3.bf16.msra.mxu1 %v5755_v29  ;;  %v4298_v34 = vld [vmem:[%s8728_s5 + $0x1b0] sm:$0xff]  ;;  %v3059_v41 = vld [vmem:[%s8728_s5 + $0xb8] sm:$0xff]  ;;  %v3045_v29 = vld [vmem:[%s8728_s5 + $0x48] sm:$0xff] }
 0x206   : > { %5758 = vmatprep.subr.bf16.mxu1 %v5757_v6  ;;  %v5765_v44 = vpack.c.bf16 %v4299_v35, %v4298_v34  ;;  %v5803_v61 = vpack.c.bf16 %v3045_v29, %v3044_v52  ;;  %v5805_v6 = vpack.c.bf16 %v3063_v10, %v3062_v5  ;;  %v4357_v34 = vld [vmem:[%s8728_s5 + $0x388] sm:$0xff]  ;;  %v5783_v35 = vpack.c.bf16 %v4291_v27, %v4290_v25 }
 0x209   : > { %5760 = vmatpush3.bf16.msra.mxu1 %v5759_v30  ;;  %v4304_v30 = vld [vmem:[%s8728_s5 + $0x1e0] sm:$0xff] }
 0x20a   : > { %5762 = vmatprep.subr.bf16.mxu1 %v5761_v59  ;;  %v5777_v63 = vpack.c.bf16 %v4305_v24, %v4304_v30  ;;  %v3065_v59 = vld [vmem:[%s8728_s5 + $0xe8] sm:$0xff] }
 0x20b   : > { %v5809_v11 = vpack.c.bf16 %v3065_v59, %v3064_v0  ;;  %v4309_v59 = vld [vmem:[%s8728_s5 + $0x208] sm:$0xff] }
 0x20d   : > { %5764 = vmatpush3.bf16.msra.mxu1 %v5763_v28  ;;  %v3051_v28 = vld [vmem:[%s8728_s5 + $0x78] sm:$0xff] }
 0x20e   : > { %5766 = vmatprep.subr.bf16.mxu1 %v5765_v44  ;;  %v5817_v44 = vpack.c.bf16 %v4325_v31, %v4324_v23  ;;  %v4342_v23 = vld [vmem:[%s8728_s5 + $0x310] sm:$0xff]  ;;  %v4343_v31 = vld [vmem:[%s8728_s5 + $0x318] sm:$0xff] }
 0x21c   : > { %v4658_v42 = vpop.f32.mrb[8].mxu0 }
 0x21d   : > { %v4659_v46 = vpop.f32.mrb[9].mxu0 }
 0x21e   : > { %v4660_v26 = vadd.f32 %v4659_v46, %v4658_v42  ;;  %v4283_v42 = vld [vmem:[%s8728_s5 + $0x138] sm:$0xff]  ;;  %v5797_v46 = vpack.c.bf16 %v3059_v41, %v3058_v43  ;;  %v5815_v43 = vpack.c.bf16 %v3051_v28, %v3050_v19 }
 0x21f   : > { %v4623_v49 = vpop.f32.mrb[10].mxu1 }
 0x220   : > { %v4624_v1 = vpop.f32.mrb[11].mxu1  ;;  %5798 = vmatprep.subr.bf16.mxu0 %v5797_v46 }
 0x221   : > { %v4625_v53 = vadd.f32 %v4624_v1, %v4623_v49  ;;  %v3042_v49 = vld [vmem:[%s8728_s5 + $0x30] sm:$0xff]  ;;  %v3043_v1 = vld [vmem:[%s8728_s5 + $0x38] sm:$0xff] }
 0x223   : > { %v1616_v57 = vadd.f32 %v4625_v53, %v1495_v37  ;;  %v4282_v37 = vld [vmem:[%s8728_s5 + $0x130] sm:$0xff]  ;;  %v4300_v53 = vld [vmem:[%s8728_s5 + $0x1c0] sm:$0xff] }
 0x225   : > { %v1737_v17 = vadd.f32 %v4660_v26, %v1616_v57  ;;  %v5767_v26 = vpack.c.bf16 %v4283_v42, %v4282_v37  ;;  %v5799_v57 = vpack.c.bf16 %v3043_v1, %v3042_v49 }
 0x227   : > { %5768 = vmatpush3.bf16.msra.mxu1 %v5767_v26  ;;  %5800 = vmatpush3.bf16.msra.mxu0 %v5799_v57 }
 0x228   : > { %5802 = vmatprep.subr.bf16.mxu0 %v5801_v54 }
 0x22b   : > { %5804 = vmatpush3.bf16.msra.mxu0 %v5803_v61 }
 0x22c   : > { %5806 = vmatprep.subr.bf16.mxu0 %v5805_v6 }
 0x22f   : > { %5808 = vmatpush3.bf16.msra.mxu0 %v5807_v48 }
 0x230   : > { %5810 = vmatprep.subr.bf16.mxu0 %v5809_v11  ;;  %v4327_v11 = vld [vmem:[%s8728_s5 + $0x298] sm:$0xff] }
 0x23c   : > { %v4728_v15 = vpop.f32.mrb[10].mxu0 }
 0x23d   : > { %v4729_v16 = vpop.f32.mrb[11].mxu0 }
 0x23e   : > { %v4730_v36 = vadd.f32 %v4729_v16, %v4728_v15  ;;  %v3048_v15 = vld [vmem:[%s8728_s5 + $0x60] sm:$0xff]  ;;  %v3049_v16 = vld [vmem:[%s8728_s5 + $0x68] sm:$0xff] }
 0x23f   : > { %v4693_v22 = vpop.f32.mrb[12].mxu1 }
 0x240   : > { %v4694_v9 = vpop.f32.mrb[13].mxu1 }
 0x241   : > { %v4695_v21 = vadd.f32 %v4694_v9, %v4693_v22  ;;  %v4307_v22 = vld [vmem:[%s8728_s5 + $0x1f8] sm:$0xff]  ;;  %v3066_v9 = vld [vmem:[%s8728_s5 + $0xf0] sm:$0xff] }
 0x243   : > { %v1858_v7 = vadd.f32 %v4695_v21, %v1737_v17  ;;  %v4301_v17 = vld [vmem:[%s8728_s5 + $0x1c8] sm:$0xff]  ;;  %v3067_v21 = vld [vmem:[%s8728_s5 + $0xf8] sm:$0xff] }
 0x244   : > { %v5769_v62 = vpack.c.bf16 %v4301_v17, %v4300_v53 }
 0x245   : > { %v1979_v56 = vadd.f32 %v4730_v36, %v1858_v7  ;;  %v4306_v36 = vld [vmem:[%s8728_s5 + $0x1f0] sm:$0xff]  ;;  %v5779_v7 = vpack.c.bf16 %v4289_v38, %v4288_v8  ;;  %v4340_v8 = vld [vmem:[%s8728_s5 + $0x300] sm:$0xff] }
 0x246   : > { %5770 = vmatprep.subr.bf16.mxu1 %v5769_v62  ;;  %v4326_v38 = vld [vmem:[%s8728_s5 + $0x290] sm:$0xff] }
 0x247   : > { %v1987_v18 = vadd.f32 %v8161_v40, %v1979_v56  ;;  %5772 = vmatpush3.bf16.msra.mxu1 %v5771_v39  ;;  %v5811_v56 = vpack.c.bf16 %v3049_v16, %v3048_v15  ;;  %v4358_v15 = vld [vmem:[%s8728_s5 + $0x390] sm:$0xff]  ;;  %v4359_v16 = vld [vmem:[%s8728_s5 + $0x398] sm:$0xff] }
 0x248   : > { %5774 = vmatprep.subr.bf16.mxu1 %v5773_v3 }
 0x249   : > { %vm1988_vm14 = vcmp.gt.f32.partialorder %v1987_v18, 0.0  ;;  %v1989_v20 = vmul.f32 0.01, %v1987_v18  ;;  %5812 = vmatpush3.bf16.msra.mxu0 %v5811_v56  ;;  %v4311_v56 = vld [vmem:[%s8728_s5 + $0x218] sm:$0xff] }
 0x24b   : > { %v1990_v32 = vsel %vm1988_vm14, %v1987_v18, %v1989_v20  ;;  %5776 = vmatpush3.bf16.msra.mxu1 %v5775_v14  ;;  %v5781_v18 = vpack.c.bf16 %v4307_v22, %v4306_v36  ;;  %v5813_v20 = vpack.c.bf16 %v3067_v21, %v3066_v9 }
 0x24c   : > { %1991 = vst [vmem:[#allocation3] sm:$0x3f] %v1990_v32  ;;  %5778 = vmatprep.subr.bf16.mxu1 %v5777_v63  ;;  %v4356_v32 = vld [vmem:[%s8728_s5 + $0x380] sm:$0xff] }
 0x24d   : > { %5814 = vmatprep.subr.bf16.mxu0 %v5813_v20  ;;  %v5849_v41 = vpack.c.bf16 %v4357_v34, %v4356_v32  ;;  %v4308_v63 = vld [vmem:[%s8728_s5 + $0x200] sm:$0xff]  ;;  %v5821_v34 = vpack.c.bf16 %v4327_v11, %v4326_v38 }
 0x24e   : > { %5816 = vmatpush3.bf16.msra.mxu0 %v5815_v43  ;;  %v5819_v9 = vpack.c.bf16 %v4309_v59, %v4308_v63  ;;  %v4328_v32 = vld [vmem:[%s8728_s5 + $0x2a0] sm:$0xff]  ;;  %v4329_v43 = vld [vmem:[%s8728_s5 + $0x2a8] sm:$0xff]  ;;  %v4334_v63 = vld [vmem:[%s8728_s5 + $0x2d0] sm:$0xff] }
 0x24f   : > { %5780 = vmatpush3.bf16.msra.mxu1 %v5779_v7  ;;  %5850 = vmatprep.subr.bf16.mxu0 %v5849_v41  ;;  %v4310_v7 = vld [vmem:[%s8728_s5 + $0x210] sm:$0xff]  ;;  %v4361_v41 = vld [vmem:[%s8728_s5 + $0x3a8] sm:$0xff]  ;;  %v4335_v59 = vld [vmem:[%s8728_s5 + $0x2d8] sm:$0xff] }
 0x250   : > { %5782 = vmatprep.subr.bf16.mxu1 %v5781_v18 }
 0x253   : > { %5784 = vmatpush3.bf16.msra.mxu1 %v5783_v35  ;;  %v5853_v35 = vpack.c.bf16 %v4359_v16, %v4358_v15  ;;  %v4318_v15 = vld [vmem:[%s8728_s5 + $0x250] sm:$0xff]  ;;  %v4319_v16 = vld [vmem:[%s8728_s5 + $0x258] sm:$0xff] }
 0x254   : > { %5818 = vmatprep.subr.bf16.mxu1 %v5817_v44  ;;  %v4360_v44 = vld [vmem:[%s8728_s5 + $0x3a0] sm:$0xff] }
 0x268   : > { %v4763_v37 = vpop.f32.mrb[14].mxu1 }
 0x269   : > { %v4764_v42 = vpop.f32.mrb[15].mxu1  ;;  %v4798_v46 = vpop.f32.mrb[12].mxu0 }
 0x26a   : > { %v4765_v26 = vadd.f32 %v4764_v42, %v4763_v37  ;;  %v4799_v49 = vpop.f32.mrb[13].mxu0 }
 0x26b   : > { %v4800_v1 = vadd.f32 %v4799_v49, %v4798_v46  ;;  %v5823_v46 = vpack.c.bf16 %v4311_v56, %v4310_v7  ;;  %v4312_v49 = vld [vmem:[%s8728_s5 + $0x220] sm:$0xff]  ;;  %v4337_v56 = vld [vmem:[%s8728_s5 + $0x2e8] sm:$0xff] }
 0x26c   : > { %v4336_v7 = vld [vmem:[%s8728_s5 + $0x2e0] sm:$0xff] }
 0x26d   : > { %v2228_v53 = vadd.f32 %v4800_v1, %v4765_v26  ;;  %v5855_v26 = vpack.c.bf16 %v4343_v31, %v4342_v23  ;;  %v4313_v1 = vld [vmem:[%s8728_s5 + $0x228] sm:$0xff]  ;;  %v4320_v23 = vld [vmem:[%s8728_s5 + $0x260] sm:$0xff] }
 0x26e   : > { %v4321_v31 = vld [vmem:[%s8728_s5 + $0x268] sm:$0xff] }
 0x288   : > { %v4833_v57 = vpop.f32.mrb[16].mxu1 }
 0x289   : > { %v4834_v17 = vpop.f32.mrb[17].mxu1  ;;  %v4868_v51 = vpop.f32.mrb[14].mxu0 }
 0x28a   : > { %v4835_v33 = vadd.f32 %v4834_v17, %v4833_v57  ;;  %v4869_v62 = vpop.f32.mrb[15].mxu0  ;;  %v5857_v57 = vpack.c.bf16 %v4361_v41, %v4360_v44  ;;  %v4344_v17 = vld [vmem:[%s8728_s5 + $0x320] sm:$0xff]  ;;  %v4338_v44 = vld [vmem:[%s8728_s5 + $0x2f0] sm:$0xff]  ;;  %v4339_v41 = vld [vmem:[%s8728_s5 + $0x2f8] sm:$0xff] }
 0x28b   : > { %v4870_v54 = vadd.f32 %v4869_v62, %v4868_v51  ;;  %v4345_v51 = vld [vmem:[%s8728_s5 + $0x328] sm:$0xff]  ;;  %v4331_v62 = vld [vmem:[%s8728_s5 + $0x2b8] sm:$0xff] }
 0x28c   : > { %v2352_v45 = vadd.f32 %v4835_v33, %v2228_v53  ;;  %v5825_v53 = vpack.c.bf16 %v4329_v43, %v4328_v32  ;;  %v4330_v33 = vld [vmem:[%s8728_s5 + $0x2b0] sm:$0xff]  ;;  %v5841_v32 = vpack.c.bf16 %v4337_v56, %v4336_v7  ;;  %v4353_v43 = vld [vmem:[%s8728_s5 + $0x368] sm:$0xff]  ;;  %v4408_v7 = vld [vmem:[%s8728_s5 + $0x520] sm:$0xff] }
 0x28e   : > { %v2486_v58 = vadd.f32 %v4870_v54, %v2352_v45  ;;  %v4362_v54 = vld [vmem:[%s8728_s5 + $0x3b0] sm:$0xff]  ;;  %v4363_v45 = vld [vmem:[%s8728_s5 + $0x3b8] sm:$0xff] }
 0x2a8   : > { %v4903_v52 = vpop.f32.mrb[18].mxu1 }
 0x2a9   : > { %v4904_v39 = vpop.f32.mrb[19].mxu1  ;;  %v4938_v29 = vpop.f32.mrb[16].mxu0 }
 0x2aa   : > { %v4905_v47 = vadd.f32 %v4904_v39, %v4903_v52  ;;  %v4939_v60 = vpop.f32.mrb[17].mxu0  ;;  %v5859_v52 = vpack.c.bf16 %v4345_v51, %v4344_v17  ;;  %v4314_v39 = vld [vmem:[%s8728_s5 + $0x230] sm:$0xff]  ;;  %v4355_v51 = vld [vmem:[%s8728_s5 + $0x378] sm:$0xff] }
 0x2ab   : > { %v4940_v61 = vadd.f32 %v4939_v60, %v4938_v29  ;;  %v4315_v29 = vld [vmem:[%s8728_s5 + $0x238] sm:$0xff]  ;;  %v5861_v60 = vpack.c.bf16 %v4363_v45, %v4362_v54  ;;  %v4354_v17 = vld [vmem:[%s8728_s5 + $0x370] sm:$0xff]  ;;  %v4420_v54 = vld [vmem:[%s8728_s5 + $0x580] sm:$0xff] }
 0x2ac   : > { %v2620_v3 = vadd.f32 %v4905_v47, %v2486_v58  ;;  %v5827_v58 = vpack.c.bf16 %v4313_v1, %v4312_v49  ;;  %v5829_v47 = vpack.c.bf16 %v4331_v62, %v4330_v33  ;;  %v4322_v49 = vld [vmem:[%s8728_s5 + $0x270] sm:$0xff]  ;;  %v4323_v1 = vld [vmem:[%s8728_s5 + $0x278] sm:$0xff]  ;;  %v4388_v33 = vld [vmem:[%s8728_s5 + $0x480] sm:$0xff] }
 0x2ad   : > { %v4389_v62 = vld [vmem:[%s8728_s5 + $0x488] sm:$0xff] }
 0x2ae   : > { %v2754_v5 = vadd.f32 %v4940_v61, %v2620_v3  ;;  %v4346_v61 = vld [vmem:[%s8728_s5 + $0x330] sm:$0xff]  ;;  %v4347_v3 = vld [vmem:[%s8728_s5 + $0x338] sm:$0xff]  ;;  %v4421_v45 = vld [vmem:[%s8728_s5 + $0x588] sm:$0xff] }
 0x2c8   : > { %v4973_v10 = vpop.f32.mrb[20].mxu1 }
 0x2c9   : > { %v4974_v12 = vpop.f32.mrb[21].mxu1  ;;  %v5008_v6 = vpop.f32.mrb[18].mxu0 }
 0x2ca   : > { %v4975_v55 = vadd.f32 %v4974_v12, %v4973_v10  ;;  %v5009_v13 = vpop.f32.mrb[19].mxu0  ;;  %v4333_v10 = vld [vmem:[%s8728_s5 + $0x2c8] sm:$0xff]  ;;  %v4364_v12 = vld [vmem:[%s8728_s5 + $0x3c0] sm:$0xff] }
 0x2cb   : > { %v5010_v50 = vadd.f32 %v5009_v13, %v5008_v6  ;;  %v4365_v6 = vld [vmem:[%s8728_s5 + $0x3c8] sm:$0xff]  ;;  %v5863_v13 = vpack.c.bf16 %v4347_v3, %v4346_v61  ;;  %v4404_v61 = vld [vmem:[%s8728_s5 + $0x500] sm:$0xff] }
 0x2cc   : > { %v2888_v14 = vadd.f32 %v4975_v55, %v2754_v5  ;;  %v4332_v5 = vld [vmem:[%s8728_s5 + $0x2c0] sm:$0xff]  ;;  %v5831_v55 = vpack.c.bf16 %v4315_v29, %v4314_v39  ;;  %v5881_v39 = vpack.c.bf16 %v4389_v62, %v4388_v33  ;;  %v5913_v29 = vpack.c.bf16 %v4421_v45, %v4420_v54  ;;  %v4405_v3 = vld [vmem:[%s8728_s5 + $0x508] sm:$0xff]  ;;  %v4398_v45 = vld [vmem:[%s8728_s5 + $0x4d0] sm:$0xff] }
 0x2cd   : > { %v4412_v33 = vld [vmem:[%s8728_s5 + $0x540] sm:$0xff]  ;;  %v4413_v54 = vld [vmem:[%s8728_s5 + $0x548] sm:$0xff] }
 0x2ce   : > { %v3022_v30 = vadd.f32 %v5010_v50, %v2888_v14  ;;  %v4316_v50 = vld [vmem:[%s8728_s5 + $0x240] sm:$0xff]  ;;  %v4317_v14 = vld [vmem:[%s8728_s5 + $0x248] sm:$0xff] }
 0x2cf   : > { %v5835_v38 = vpack.c.bf16 %v4317_v14, %v4316_v50 }
 0x2d0   : > { %v3030_v24 = vadd.f32 %v8161_v40, %v3022_v30  ;;  %v4341_v40 = vld [vmem:[%s8728_s5 + $0x308] sm:$0xff]  ;;  %v5833_v30 = vpack.c.bf16 %v4333_v10, %v4332_v5  ;;  %v4390_v5 = vld [vmem:[%s8728_s5 + $0x490] sm:$0xff]  ;;  %v4391_v10 = vld [vmem:[%s8728_s5 + $0x498] sm:$0xff] }
 0x2d1   : > { %v5851_v21 = vpack.c.bf16 %v4341_v40, %v4340_v8  ;;  %v4366_v8 = vld [vmem:[%s8728_s5 + $0x3d0] sm:$0xff]  ;;  %v4367_v40 = vld [vmem:[%s8728_s5 + $0x3d8] sm:$0xff] }
 0x2d2   : > { %vm3031_vm15 = vcmp.gt.f32.partialorder %v3030_v24, 0.0  ;;  %v3032_v0 = vmul.f32 0.01, %v3030_v24 }
 0x2d4   : > { %v3033_v48 = vsel %vm3031_vm15, %v3030_v24, %v3032_v0  ;;  %v5865_v24 = vpack.c.bf16 %v4365_v6, %v4364_v12  ;;  %v4348_v0 = vld [vmem:[%s8728_s5 + $0x340] sm:$0xff]  ;;  %v4422_v6 = vld [vmem:[%s8728_s5 + $0x590] sm:$0xff] }
 0x2d5   : > { %3034 = vst [vmem:[#allocation3 + $0x8] sm:$0x3f] %v3033_v48  ;;  %v4349_v48 = vld [vmem:[%s8728_s5 + $0x348] sm:$0xff] }
 0x2d6   : > { %v5867_v11 = vpack.c.bf16 %v4349_v48, %v4348_v0  ;;  %v4374_v0 = vld [vmem:[%s8728_s5 + $0x410] sm:$0xff]  ;;  %v4375_v48 = vld [vmem:[%s8728_s5 + $0x418] sm:$0xff] }
 0x2dc   : > { %v3069_v36 = vld [vmem:[#allocation3 + $0x1] ss:$8 sm:$0x3]  ;;  %v3035_v22 = vld [vmem:[#allocation3] ss:$8 sm:$0x3] }
 0x2dd   : > { %v3107_v18 = vrot.slane %v3069_v36, %v6376_v2  ;;  %v3111_v25 = vrot.slane %v3069_v36, %v6381_v4  ;;  %v3188_v27 = vrot.slane %v3035_v22, %v6376_v2  ;;  %v3192_v19 = vrot.slane %v3035_v22, %v6381_v4  ;;  %v8343_v20 = vld [vmem:[#allocation3 + $0x2] ss:$8 sm:$0x3]  ;;  %v8345_v28 = vld [vmem:[#allocation3 + $0x3] ss:$8 sm:$0x3] }
 0x2de   : > { %v3308_v37 = vrot.slane %v8343_v20, %v6381_v4  ;;  %v3425_v42 = vrot.slane %v8345_v28, %v6381_v4  ;;  %v5837_v36 = vpack.c.bf16 %v4335_v59, %v4334_v63  ;;  %v5869_v22 = vpack.c.bf16 %v4367_v40, %v4366_v8  ;;  %v8531_v12 = vld [vmem:[#allocation3 + $0x4] ss:$8 sm:$0x3]  ;;  %v8539_v50 = vld [vmem:[#allocation3 + $0x5] ss:$8 sm:$0x3] }
 0x2df   : > { %3178 = vmatprep.mubr.f32.mxu1 %v3111_v25  ;;  %3259 = vmatprep.mubr.f32.mxu0 %v3192_v19  ;;  %v4369_v25 = vld [vmem:[%s8728_s5 + $0x3e8] sm:$0xff]  ;;  %v3304_v14 = vrot.slane %v8343_v20, %v6376_v2  ;;  %v4406_v63 = vld [vmem:[%s8728_s5 + $0x510] sm:$0xff]  ;;  %v3542_v20 = vrot.slane %v8531_v12, %v6381_v4  ;;  %v5885_v59 = vpack.c.bf16 %v4391_v10, %v4390_v5  ;;  %v4407_v8 = vld [vmem:[%s8728_s5 + $0x518] sm:$0xff] }
 0x2e0   : > { %3179 = vmatmul.mubr.f32.vlgmr.msra.gmra.mrb[22].mxu1 %v3107_v18  ;;  %3260 = vmatmul.mubr.f32.vlgmr.msra.gmra.mrb[20].mxu0 %v3188_v27  ;;  %v4368_v18 = vld [vmem:[%s8728_s5 + $0x3e0] sm:$0xff]  ;;  %v5839_v27 = vpack.c.bf16 %v4319_v16, %v4318_v15  ;;  %v4425_v16 = vld [vmem:[%s8728_s5 + $0x5a8] sm:$0xff]  ;;  %v4414_v5 = vld [vmem:[%s8728_s5 + $0x550] sm:$0xff] }
 0x2e1   : > { %5820 = vmatpush3.bf16.msra.mxu1 %v5819_v9  ;;  %5852 = vmatpush3.bf16.msra.mxu0 %v5851_v21  ;;  %v4350_v9 = vld [vmem:[%s8728_s5 + $0x350] sm:$0xff]  ;;  %v4351_v21 = vld [vmem:[%s8728_s5 + $0x358] sm:$0xff]  ;;  %v4392_v40 = vld [vmem:[%s8728_s5 + $0x4a0] sm:$0xff] }
 0x2e2   : > { %3375 = vmatprep.mubr.f32.mxu1 %v3308_v37  ;;  %3492 = vmatprep.mubr.f32.mxu0 %v3425_v42  ;;  %v5871_v19 = vpack.c.bf16 %v4351_v21, %v4350_v9  ;;  %v4370_v37 = vld [vmem:[%s8728_s5 + $0x3f0] sm:$0xff]  ;;  %v4371_v42 = vld [vmem:[%s8728_s5 + $0x3f8] sm:$0xff]  ;;  %v4424_v15 = vld [vmem:[%s8728_s5 + $0x5a0] sm:$0xff] }
 0x2e3   : > { %5822 = vmatprep.subr.bf16.mxu1 %v5821_v34  ;;  %5854 = vmatprep.subr.bf16.mxu0 %v5853_v35  ;;  %v5873_v34 = vpack.c.bf16 %v4369_v25, %v4368_v18  ;;  %v4352_v35 = vld [vmem:[%s8728_s5 + $0x360] sm:$0xff]  ;;  %v5921_v56 = vpack.c.bf16 %v4425_v16, %v4424_v15  ;;  %v4409_v18 = vld [vmem:[%s8728_s5 + $0x528] sm:$0xff]  ;;  %v4394_v25 = vld [vmem:[%s8728_s5 + $0x4b0] sm:$0xff] }
 0x2e4   : > { %v4376_v21 = vld [vmem:[%s8728_s5 + $0x420] sm:$0xff]  ;;  %v4435_v15 = vld [vmem:[%s8728_s5 + $0x5f8] sm:$0xff] }
 0x2e5   : > { %5824 = vmatpush3.bf16.msra.mxu1 %v5823_v46  ;;  %5856 = vmatpush3.bf16.msra.mxu0 %v5855_v26  ;;  %v5843_v46 = vpack.c.bf16 %v4321_v31, %v4320_v23  ;;  %v5875_v26 = vpack.c.bf16 %v4353_v43, %v4352_v35  ;;  %v4427_v23 = vld [vmem:[%s8728_s5 + $0x5b8] sm:$0xff]  ;;  %v4378_v35 = vld [vmem:[%s8728_s5 + $0x430] sm:$0xff] }
 0x2e6   : > { %5826 = vmatprep.subr.bf16.mxu1 %v5825_v53  ;;  %5858 = vmatprep.subr.bf16.mxu0 %v5857_v57  ;;  %v5845_v53 = vpack.c.bf16 %v4339_v41, %v4338_v44  ;;  %v5877_v57 = vpack.c.bf16 %v4371_v42, %v4370_v37  ;;  %v4379_v43 = vld [vmem:[%s8728_s5 + $0x438] sm:$0xff]  ;;  %v4410_v44 = vld [vmem:[%s8728_s5 + $0x530] sm:$0xff]  ;;  %v4396_v42 = vld [vmem:[%s8728_s5 + $0x4c0] sm:$0xff] }
 0x2e7   : > { %v4411_v37 = vld [vmem:[%s8728_s5 + $0x538] sm:$0xff] }
 0x2e9   : > { %5828 = vmatpush3.bf16.msra.mxu1 %v5827_v58  ;;  %5860 = vmatpush3.bf16.msra.mxu0 %v5859_v52  ;;  %v5847_v58 = vpack.c.bf16 %v4323_v1, %v4322_v49  ;;  %v5879_v52 = vpack.c.bf16 %v4355_v51, %v4354_v17  ;;  %v4429_v49 = vld [vmem:[%s8728_s5 + $0x5c8] sm:$0xff]  ;;  %v5895_v1 = vpack.c.bf16 %v4379_v43, %v4378_v35  ;;  %v4380_v17 = vld [vmem:[%s8728_s5 + $0x440] sm:$0xff] }
 0x2ea   : > { %5830 = vmatprep.subr.bf16.mxu1 %v5829_v47  ;;  %5862 = vmatprep.subr.bf16.mxu0 %v5861_v60  ;;  %v4372_v47 = vld [vmem:[%s8728_s5 + $0x400] sm:$0xff]  ;;  %v4373_v60 = vld [vmem:[%s8728_s5 + $0x408] sm:$0xff] }
 0x2eb   : > { %v4381_v51 = vld [vmem:[%s8728_s5 + $0x448] sm:$0xff] }
 0x2ed   : > { %5832 = vmatpush3.bf16.msra.mxu1 %v5831_v55  ;;  %5864 = vmatpush3.bf16.msra.mxu0 %v5863_v13  ;;  %v4423_v55 = vld [vmem:[%s8728_s5 + $0x598] sm:$0xff]  ;;  %v5883_v13 = vpack.c.bf16 %v4373_v60, %v4372_v47  ;;  %v5931_v47 = vpack.c.bf16 %v4413_v54, %v4412_v33 }
 0x2ee   : > { %5834 = vmatprep.subr.bf16.mxu1 %v5833_v30  ;;  %5866 = vmatprep.subr.bf16.mxu0 %v5865_v24  ;;  %v3421_v30 = vrot.slane %v8345_v28, %v6376_v2  ;;  %v5915_v24 = vpack.c.bf16 %v4405_v3, %v4404_v61  ;;  %v5917_v28 = vpack.c.bf16 %v4423_v55, %v4422_v6  ;;  %v4382_v61 = vld [vmem:[%s8728_s5 + $0x450] sm:$0xff]  ;;  %v4383_v3 = vld [vmem:[%s8728_s5 + $0x458] sm:$0xff]  ;;  %v4400_v55 = vld [vmem:[%s8728_s5 + $0x4e0] sm:$0xff] }
 0x2ef   : > { %v4415_v6 = vld [vmem:[%s8728_s5 + $0x558] sm:$0xff] }
 0x2f1   : > { %5836 = vmatpush3.bf16.msra.mxu1 %v5835_v38  ;;  %5868 = vmatpush3.bf16.msra.mxu0 %v5867_v11  ;;  %v4393_v38 = vld [vmem:[%s8728_s5 + $0x4a8] sm:$0xff]  ;;  %v3659_v11 = vrot.slane %v8539_v50, %v6381_v4 }
 0x2f2   : > { %5838 = vmatprep.subr.bf16.mxu1 %v5837_v36  ;;  %5870 = vmatprep.subr.bf16.mxu0 %v5869_v22  ;;  %v5887_v36 = vpack.c.bf16 %v4375_v48, %v4374_v0  ;;  %v5919_v22 = vpack.c.bf16 %v4407_v8, %v4406_v63  ;;  %v5889_v9 = vpack.c.bf16 %v4393_v38, %v4392_v40  ;;  %v4377_v4 = vld [vmem:[%s8728_s5 + $0x428] sm:$0xff]  ;;  %v4384_v63 = vld [vmem:[%s8728_s5 + $0x460] sm:$0xff]  ;;  %v4402_v40 = vld [vmem:[%s8728_s5 + $0x4f0] sm:$0xff] }
 0x2f3   : > { %v5891_v31 = vpack.c.bf16 %v4377_v4, %v4376_v21  ;;  %v5935_v0 = vpack.c.bf16 %v4415_v6, %v4414_v5  ;;  %v4417_v8 = vld [vmem:[%s8728_s5 + $0x568] sm:$0xff]  ;;  %v4403_v38 = vld [vmem:[%s8728_s5 + $0x4f8] sm:$0xff] }
 0x2f4   : > { %v4387_v21 = vld [vmem:[%s8728_s5 + $0x478] sm:$0xff] }
 0x2f5   : > { %5840 = vmatpush3.bf16.msra.mxu1 %v5839_v27  ;;  %5872 = vmatpush3.bf16.msra.mxu0 %v5871_v19  ;;  %v4395_v27 = vld [vmem:[%s8728_s5 + $0x4b8] sm:$0xff]  ;;  %v4426_v19 = vld [vmem:[%s8728_s5 + $0x5b0] sm:$0xff] }
 0x2f6   : > { %5842 = vmatprep.subr.bf16.mxu1 %v5841_v32  ;;  %5874 = vmatprep.subr.bf16.mxu0 %v5873_v34  ;;  %v5923_v32 = vpack.c.bf16 %v4409_v18, %v4408_v7  ;;  %v5893_v34 = vpack.c.bf16 %v4395_v27, %v4394_v25  ;;  %v5925_v41 = vpack.c.bf16 %v4427_v23, %v4426_v19  ;;  %v4418_v7 = vld [vmem:[%s8728_s5 + $0x570] sm:$0xff] }
 0x2f7   : > { %v3538_v27 = vrot.slane %v8531_v12, %v6376_v2  ;;  %v3655_v19 = vrot.slane %v8539_v50, %v6376_v2 }
 0x2f9   : > { %5844 = vmatpush3.bf16.msra.mxu1 %v5843_v46  ;;  %5876 = vmatpush3.bf16.msra.mxu0 %v5875_v26  ;;  %v4397_v46 = vld [vmem:[%s8728_s5 + $0x4c8] sm:$0xff]  ;;  %v4428_v26 = vld [vmem:[%s8728_s5 + $0x5c0] sm:$0xff] }
 0x2fa   : > { %5846 = vmatprep.subr.bf16.mxu1 %v5845_v53  ;;  %5878 = vmatprep.subr.bf16.mxu0 %v5877_v57  ;;  %v5927_v53 = vpack.c.bf16 %v4411_v37, %v4410_v44  ;;  %v5897_v57 = vpack.c.bf16 %v4397_v46, %v4396_v42  ;;  %v5929_v62 = vpack.c.bf16 %v4429_v49, %v4428_v26 }
 0x2fd   : > { %5848 = vmatpush3.bf16.msra.mxu1 %v5847_v58  ;;  %5880 = vmatpush3.bf16.msra.mxu0 %v5879_v52  ;;  %v4399_v58 = vld [vmem:[%s8728_s5 + $0x4d8] sm:$0xff]  ;;  %v4430_v52 = vld [vmem:[%s8728_s5 + $0x5d0] sm:$0xff] }
 0x2fe   : > { %5882 = vmatprep.subr.bf16.mxu1 %v5881_v39  ;;  %5914 = vmatprep.subr.bf16.mxu0 %v5913_v29  ;;  %v4431_v39 = vld [vmem:[%s8728_s5 + $0x5d8] sm:$0xff]  ;;  %v5899_v29 = vpack.c.bf16 %v4381_v51, %v4380_v17  ;;  %v5901_v60 = vpack.c.bf16 %v4399_v58, %v4398_v45 }
 0x2ff   : > { %v5933_v10 = vpack.c.bf16 %v4431_v39, %v4430_v52  ;;  %v3738_v52 = vld [vmem:[%s8730_s7] sm:$0x1] }
 0x300   : > { %3376 = vmatmul.mubr.f32.vlgmr.msra.gmra.mrb[24].mxu1 %v3304_v14  ;;  %3493 = vmatmul.mubr.f32.vlgmr.msra.gmra.mrb[22].mxu0 %v3421_v30  ;;  %v4432_v14 = vld [vmem:[%s8728_s5 + $0x5e0] sm:$0xff]  ;;  %v4433_v30 = vld [vmem:[%s8728_s5 + $0x5e8] sm:$0xff] }
 0x301   : > { %5884 = vmatpush3.bf16.msra.mxu1 %v5883_v13  ;;  %3609 = vmatprep.mubr.f32.mxu1 %v3542_v20  ;;  %v4401_v13 = vld [vmem:[%s8728_s5 + $0x4e8] sm:$0xff] }
 0x302   : > { %5916 = vmatpush3.bf16.msra.mxu0 %v5915_v24  ;;  %3726 = vmatprep.mubr.f32.mxu0 %v3659_v11  ;;  %v5903_v24 = vpack.c.bf16 %v4383_v3, %v4382_v61  ;;  %v5905_v48 = vpack.c.bf16 %v4401_v13, %v4400_v55  ;;  %v4385_v20 = vld [vmem:[%s8728_s5 + $0x468] sm:$0xff]  ;;  %v4434_v11 = vld [vmem:[%s8728_s5 + $0x5f0] sm:$0xff] }
 0x303   : > { %5886 = vmatprep.subr.bf16.mxu1 %v5885_v59  ;;  %5918 = vmatprep.subr.bf16.mxu0 %v5917_v28  ;;  %v4416_v59 = vld [vmem:[%s8728_s5 + $0x560] sm:$0xff]  ;;  %v5937_v28 = vpack.c.bf16 %v4433_v30, %v4432_v14  ;;  %v5907_v16 = vpack.c.bf16 %v4385_v20, %v4384_v63  ;;  %v5941_v4 = vpack.c.bf16 %v4435_v15, %v4434_v11 }
 0x305   : > { %5888 = vmatpush3.bf16.msra.mxu1 %v5887_v36  ;;  %v5939_v36 = vpack.c.bf16 %v4417_v8, %v4416_v59 }
 0x306   : > { %5920 = vmatpush3.bf16.msra.mxu0 %v5919_v22  ;;  %5890 = vmatprep.subr.bf16.mxu1 %v5889_v9  ;;  %v5909_v22 = vpack.c.bf16 %v4403_v38, %v4402_v40  ;;  %v4386_v9 = vld [vmem:[%s8728_s5 + $0x470] sm:$0xff] }
 0x307   : > { %5922 = vmatprep.subr.bf16.mxu0 %v5921_v56  ;;  %v4419_v56 = vld [vmem:[%s8728_s5 + $0x578] sm:$0xff]  ;;  %v5911_v18 = vpack.c.bf16 %v4387_v21, %v4386_v9 }
 0x308   : > { %v5943_v25 = vpack.c.bf16 %v4419_v56, %v4418_v7 }
 0x309   : > { %5892 = vmatpush3.bf16.msra.mxu1 %v5891_v31 }
 0x30a   : > { %5924 = vmatpush3.bf16.msra.mxu0 %v5923_v32  ;;  %5894 = vmatprep.subr.bf16.mxu1 %v5893_v34 }
 0x30b   : > { %5926 = vmatprep.subr.bf16.mxu0 %v5925_v41 }
 0x30d   : > { %5896 = vmatpush3.bf16.msra.mxu1 %v5895_v1 }
 0x30e   : > { %5928 = vmatpush3.bf16.msra.mxu0 %v5927_v53  ;;  %5898 = vmatprep.subr.bf16.mxu1 %v5897_v57 }
 0x30f   : > { %5930 = vmatprep.subr.bf16.mxu0 %v5929_v62  ;;  %v3733_v62 = vld [vmem:[%s8729_s6] sm:$0x1] }
 0x311   : > { %5900 = vmatpush3.bf16.msra.mxu1 %v5899_v29 }
 0x312   : > { %5932 = vmatpush3.bf16.msra.mxu0 %v5931_v47  ;;  %5902 = vmatprep.subr.bf16.mxu1 %v5901_v60  ;;  %v3743_v60 = vld [vmem:[#allocation4] sm:$0x1] }
 0x313   : > { %5934 = vmatprep.subr.bf16.mxu0 %v5933_v10 }
 0x315   : > { %5904 = vmatpush3.bf16.msra.mxu1 %v5903_v24 }
 0x316   : > { %5936 = vmatpush3.bf16.msra.mxu0 %v5935_v0  ;;  %5906 = vmatprep.subr.bf16.mxu1 %v5905_v48 }
 0x317   : > { %5938 = vmatprep.subr.bf16.mxu0 %v5937_v28 }
 0x319   : > { %5908 = vmatpush3.bf16.msra.mxu1 %v5907_v16 }
 0x31a   : > { %5940 = vmatpush3.bf16.msra.mxu0 %v5939_v36  ;;  %5910 = vmatprep.subr.bf16.mxu1 %v5909_v22 }
 0x31b   : > { %5942 = vmatprep.subr.bf16.mxu0 %v5941_v4 }
 0x31d   : > { %5912 = vmatpush3.bf16.msra.mxu1 %v5911_v18 }
 0x31e   : > { %5944 = vmatpush3.bf16.msra.mxu0 %v5943_v25 }
 0x320   : > { %3610 = vmatmul.mubr.f32.vlgmr.msra.gmra.mrb[26].mxu1 %v3538_v27 }
 0x321   : > { %3727 = vmatmul.mubr.f32.vlgmr.msra.gmra.mrb[24].mxu0 %v3655_v19 }
 0x3b3   : > { %v5043_v23 = vpop.f32.mrb[22].mxu1  ;;  %v5078_v31 = vpop.f32.mrb[20].mxu0 }
 0x3b4   : > { %v5044_v32 = vpop.f32.mrb[23].mxu1  ;;  %v5079_v34 = vpop.f32.mrb[21].mxu0 }
 0x3b5   : > { %v5045_v35 = vadd.f32 %v5044_v32, %v5043_v23  ;;  %v5080_v43 = vadd.f32 %v5079_v34, %v5078_v31 }
 0x3b7   : > { %v3262_v44 = vadd.f32 %v5080_v43, %v5045_v35 }
 0x3d3   : > { %v5113_v41 = vpop.f32.mrb[24].mxu1  ;;  %v5148_v37 = vpop.f32.mrb[22].mxu0 }
 0x3d4   : > { %v5114_v42 = vpop.f32.mrb[25].mxu1  ;;  %v5149_v46 = vpop.f32.mrb[23].mxu0 }
 0x3d5   : > { %v5115_v26 = vadd.f32 %v5114_v42, %v5113_v41  ;;  %v5150_v49 = vadd.f32 %v5149_v46, %v5148_v37 }
 0x3d7   : > { %v3381_v12 = vadd.f32 %v5115_v26, %v3262_v44 }
 0x3d9   : > { %v3498_v1 = vadd.f32 %v5150_v49, %v3381_v12 }
 0x3f3   : > { %v5183_v53 = vpop.f32.mrb[26].mxu1 }
 0x3f4   : > { %v5218_v57 = vpop.f32.mrb[24].mxu0  ;;  %v5184_v2 = vpop.f32.mrb[27].mxu1 }
 0x3f5   : > { %v5185_v50 = vadd.f32 %v5184_v2, %v5183_v53  ;;  %v5219_v17 = vpop.f32.mrb[25].mxu0 }
 0x3f6   : > { %v5220_v51 = vadd.f32 %v5219_v17, %v5218_v57 }
 0x3f7   : > { %v3615_v33 = vadd.f32 %v5185_v50, %v3498_v1 }
 0x3f9   : > { %v3732_v54 = vadd.f32 %v5220_v51, %v3615_v33 }
 0x3fb   : > { %v3734_v45 = vadd.f32 %v3733_v62, %v3732_v54 }
 0x3fd   : > { %vm3735_vm0 = vcmp.gt.f32.partialorder %v3734_v45, 0.0  ;;  %v3736_v58 = vmul.f32 0.01, %v3734_v45 }
 0x3ff   : > { %v3737_v39 = vsel %vm3735_vm0, %v3734_v45, %v3736_v58 }
 0x400   : > { %v3739_v29 = vmul.f32 %v3738_v52, %v3737_v39 }
 0x402   : > { %v3740_v47 = vsel %vm1900_vm13, %v3739_v29, 0.0 }
 0x403   : > { %3741 = vadd.xlane.f32.xlu0 %v3740_v47 }
 0x490   : > { %v3742_v61 = vpop.xlane.xlu0 %3741 }
 0x491   : > { %v3744_v3 = vadd.f32 %v3743_v60, %v3742_v61 }
 0x493   : > { %3746 = vst.msk [vmem:[%s330_s22] sm:$0x1] %vm3745_vm1, %v3744_v3 }
 0x494 PF: > { %s21_s11 = sadd.s32 1, %s6039_s11  }
 0x495   : > { %p18_p4 = scmp.ge.s32.totalorder %s21_s11, 4  }
 0x497   :  { %20 = sbr.rel (!%p18_p4) target bundleno = 3 (0x3), region = 106 }

</bundles_post_ra>
